<compile_context>
chip_gen: v7x
topology: tpu7x:2x2x1
jax: 0.10.0
libtpu: 0.0.40
codegen_flags: <defaults>
</compile_context>

<pallas_src>
import jax
import jax.numpy as jnp
from jax import lax
from jax.experimental import pallas as pl
from jax.experimental.pallas import tpu as pltpu


def _round_up(x, m):
    return ((x + m - 1) // m) * m


def _mish(x):
    """Mish with one exp + one approx reciprocal (+1 Newton-Raphson step):
       mish(x) = x * (1 - 2 / (e^x * (e^x + 2) + 2)).
    The exp argument is clamped at 20 so the denominator stays finite; for
    x > 20 the exact value equals x to f32 precision anyway."""
    ex = jnp.exp(jnp.minimum(x, 20.0))
    den = ex * (ex + 2.0) + 2.0
    r = pl.reciprocal(den, approx=True)     # EUP slot (otherwise idle next to exp)
    r = r * (2.0 - den * r)                 # one NR step -> ~f32-accurate 1/den
    return x * (1.0 - 2.0 * r)


def _mish_reference(x):
    """PyTorch-style Mish (softplus threshold=20); used only by the JAX reference."""
    sp = jnp.where(x > 20.0, x, jnp.log1p(jnp.exp(jnp.minimum(x, 20.0))))
    return x * jnp.tanh(sp)


def _make_dark_block_kernel(H, W, Sh, Cip, Cpp, d, compute_dtype):
    """H, W: image size; Sh: rows per strip; Cip/Cpp: lane-padded inplanes /
    planes; d: dilation; compute_dtype: storage dtype for MXU operands."""
    SW = Sh * W               # output rows per strip (flattened)
    HALO = d * W              # halo rows above / below the strip
    L = SW + 2 * HALO         # rows of the y1 / z working buffer

    def kernel(x_ref, xh_ref, w1_ref, b1_ref, w2_ref, b2_ref, o_ref):
        s = pl.program_id(1)

        # conv1 (1x1) over the strip plus its d-row halos (bn1 scale folded
        # into w1).  The halo rows of y1 are recomputed per strip from the
        # small x_halo side input; concat offsets are multiples of W.
        xh = xh_ref[0, 0]                                         # (2*HALO, Cpp)
        xb = jnp.concatenate([xh[:HALO], x_ref[0], xh[HALO:]], axis=0)
        y1 = jnp.dot(xb, w1_ref[...], preferred_element_type=jnp.float32)
        y1 = _mish(y1 + b1_ref[...])                              # (L, Cip) f32

        # conv2's zero padding acts on y1 (i.e. after conv1+bn1+mish, exactly
        # like the PyTorch module), so halo rows outside the image are zeroed.
        row = lax.broadcasted_iota(jnp.int32, (L, 1), 0)
        g = row + (s * SW - HALO)                                 # global flat row
        y1 = jnp.where((g >= 0) & (g < H * W), y1, 0.0).astype(compute_dtype)

        # kw-im2col on the lane axis (lane-aligned since Cip % 128 == 0):
        #   z[i, kw*Cip + c] = y1[i + (kw-1)*d, c]  within the same image row.
        # The +-d row shifts are XLU rotations; wrapped / cross-row entries are
        # killed by the wpos masks.
        wpos = row % W
        left = jnp.where(wpos >= d, pltpu.roll(y1, shift=d, axis=0), 0)
        right = jnp.where(wpos < W - d, pltpu.roll(y1, shift=L - d, axis=0), 0)
        z = jnp.concatenate([left, y1, right], axis=1)            # (L, 3*Cip)

        # conv2 (3x3, dilation d): one MXU matmul (K = 3*Cip) per kh tap on a
        # sublane-aligned row slice of z -- no padded scratch, no store/reload.
        acc = jnp.dot(z[:SW], w2_ref[0], preferred_element_type=jnp.float32)
        acc = acc + jnp.dot(z[HALO:HALO + SW], w2_ref[1],
                            preferred_element_type=jnp.float32)
        acc = acc + jnp.dot(z[2 * HALO:2 * HALO + SW], w2_ref[2],
                            preferred_element_type=jnp.float32)

        # bn2 bias (scale folded into w2) + Mish + residual, fused in the store.
        y2 = _mish(acc + b2_ref[...])
        o_ref[0] = (y2 + x_ref[0].astype(jnp.float32)).astype(o_ref.dtype)

    return kernel


def _pick_strip_rows(H, W, d, N, Cip, Cpp, in_bytes, out_bytes,
                     budget_bytes=28 * 1024 * 1024, min_total_steps=8):
    """Pick the largest divisor of H whose per-step working set fits the VMEM
    budget, preferring choices that still give >= min_total_steps pipelined
    grid steps (DMA hiding / megacore & v7x dual-TC occupancy) and a strip
    that is at least ~256 rows of matmul M (MXU efficiency)."""
    per_row = W * (2 * Cpp * in_bytes        # x strip block (double-buffered)
                   + 2 * Cpp * out_bytes     # out strip block (double-buffered)
                   + 3 * Cip * in_bytes      # z (kw-im2col of y1)
                   + Cip * 4                 # y1 pre-activation (f32)
                   + Cip * in_bytes          # y1 cast for the MXU
                   + Cpp * 4)                # conv2 f32 accumulator
    max_rows = max(1, budget_bytes // per_row)
    # candidate strip heights: divisors of H with sublane-friendly Sh*W
    divs = [s for s in range(1, H + 1)
            if H % s == 0 and ((s * W) % 8 == 0 or s == H)]
    fits = [s for s in divs if s <= max_rows] or [min(divs)]
    deep = [s for s in fits
            if N * (H // s) >= min_total_steps and s * W >= 256]
    return max(deep) if deep else max(fits)


def dark_block_forward(x_nhwc, w1, s1, b1, w2, s2, b2, dilation=1,
                       compute_dtype=jnp.bfloat16, out_dtype=None,
                       strip_rows=None, vmem_limit_bytes=64 * 1024 * 1024):
    """Fused DarkBlock forward.

    x_nhwc : (N, H, W, planes) float32
    w1     : (planes, inplanes)         conv1 1x1 weight as a matrix
    s1, b1 : (1, inplanes)              folded bn1 scale / bias
    w2     : (3, 3, inplanes, planes)   conv2 weight (HWIO)
    s2, b2 : (1, planes)                folded bn2 scale / bias
    compute_dtype : storage dtype for x / weights / im2col (bf16 default);
                    bias adds, Mish and MXU accumulation stay f32.
    out_dtype     : output dtype (defaults to compute_dtype).
    strip_rows    : rows of H per grid step (None -> auto-sized for VMEM).
    """
    N, H, W, Cp = x_nhwc.shape
    Ci = w1.shape[1]
    d = int(dilation)
    cdt = jnp.dtype(compute_dtype)
    odt = jnp.dtype(compute_dtype if out_dtype is None else out_dtype)

    # Pad channels to multiples of 128 so the z lane-concat, the MXU N dim and
    # the output stores are lane-dense (padded channels stay exactly zero).
    Cip = _round_up(Ci, 128)
    Cpp = _round_up(Cp, 128)

    if strip_rows is None:
        Sh = _pick_strip_rows(H, W, d, N, Cip, Cpp, cdt.itemsize, odt.itemsize)
    else:
        Sh = int(strip_rows)
        if H % Sh != 0:
            raise ValueError(f"strip_rows={Sh} must divide H={H}")
    num_strips = H // Sh

    # Fold BN scales into the conv weights; pad to the lane-aligned shapes.
    w1f = jnp.zeros((Cpp, Cip), cdt).at[:Cp, :Ci].set(
        (w1 * s1.reshape(1, Ci)).astype(cdt))
    b1f = jnp.zeros((1, Cip), jnp.float32).at[:, :Ci].set(
        b1.reshape(1, Ci).astype(jnp.float32))
    w2s = (w2 * s2.reshape(1, 1, 1, Cp)).astype(cdt)            # (3,3,Ci,Cp)
    w2f = jnp.zeros((3, 3, Cip, Cpp), cdt).at[:, :, :Ci, :Cp].set(w2s)
    w2f = w2f.reshape(3, 3 * Cip, Cpp)                          # rows: kw*Cip + c
    b2f = jnp.zeros((1, Cpp), jnp.float32).at[:, :Cp].set(
        b2.reshape(1, Cp).astype(jnp.float32))

    # Channel-padded, spatially flattened input ...
    x_flat = jnp.zeros((N, H * W, Cpp), cdt).at[:, :, :Cp].set(
        x_nhwc.reshape(N, H * W, Cp).astype(cdt))

    # ... and a small per-strip halo tensor holding the d rows above and below
    # each strip (zeros outside the image), so the strip blocks themselves stay
    # plain non-overlapping BlockSpec tiles.
    xpad = jnp.pad(x_flat.reshape(N, H, W, Cpp),
                   ((0, 0), (d, d), (0, 0), (0, 0)))
    halos = []
    for s in range(num_strips):
        top = xpad[:, s * Sh: s * Sh + d]                        # rows [sSh-d, sSh)
        bot = xpad[:, (s + 1) * Sh + d: (s + 1) * Sh + 2 * d]    # rows [(s+1)Sh, +d)
        halos.append(jnp.concatenate([top, bot], axis=1))
    x_halo = jnp.stack(halos, axis=1).reshape(N, num_strips, 2 * d * W, Cpp)

    kernel = _make_dark_block_kernel(H, W, Sh, Cip, Cpp, d, cdt)

    def const_spec(shape, single_buffer):
        zeros = (0,) * len(shape)
        index_map = lambda b, s: zeros
        if single_buffer:
            return pl.BlockSpec(shape, index_map, pipeline_mode=pl.Buffered(1))
        return pl.BlockSpec(shape, index_map)

    def run(single_buffer_weights):
        grid_spec = pltpu.PrefetchScalarGridSpec(
            num_scalar_prefetch=0,
            grid=(N, num_strips),
            in_specs=[
                pl.BlockSpec((1, Sh * W, Cpp), lambda b, s: (b, s, 0)),
                pl.BlockSpec((1, 1, 2 * d * W, Cpp), lambda b, s: (b, s, 0, 0)),
                const_spec((Cpp, Cip), single_buffer_weights),
                const_spec((1, Cip), single_buffer_weights),
                const_spec((3, 3 * Cip, Cpp), single_buffer_weights),
                const_spec((1, Cpp), single_buffer_weights),
            ],
            out_specs=pl.BlockSpec((1, Sh * W, Cpp), lambda b, s: (b, s, 0)),
        )
        return pl.pallas_call(
            kernel,
            out_shape=jax.ShapeDtypeStruct((N, H * W, Cpp), odt),
            grid_spec=grid_spec,
            compiler_params=pltpu.CompilerParams(
                dimension_semantics=("parallel", "parallel"),
                vmem_limit_bytes=vmem_limit_bytes),
        )(x_flat, x_halo, w1f, b1f, w2f, b2f)

    try:
        out = run(True)       # constant operands single-buffered (saves a w2 copy)
    except Exception:
        # TODO(synk): pl.Buffered(1) single-buffering of constant operands is
        # not supported on this jax version; fall back to default double
        # buffering (costs one extra VMEM copy of w2 and the biases).
        out = run(False)

    return out.reshape(N, H, W, Cpp)[:, :, :, :Cp]


def _reference_forward(x_nhwc, w1, s1, b1, w2, s2, b2, dilation=1):
    """Pure-JAX reference (NHWC), faithful to the PyTorch module in eval mode."""
    d = int(dilation)
    y1 = jnp.einsum('nhwc,cd->nhwd', x_nhwc, w1)
    y1 = _mish_reference(y1 * s1[0] + b1[0])
    y2 = lax.conv_general_dilated(
        y1, w2, window_strides=(1, 1), padding=[(d, d), (d, d)],
        rhs_dilation=(d, d),
        dimension_numbers=('NHWC', 'HWIO', 'NHWC'))
    y2 = _mish_reference(y2 * s2[0] + b2[0])
    return y2 + x_nhwc


if __name__ == "__main__":
    # Small shapes consistent with the module:
    #   planes = block input/output channels, inplanes = hidden channels.
    N, H, W = 2, 16, 16
    planes, inplanes = 16, 32
    eps = 1e-4  # BatchNorm eps in the PyTorch module

    key = jax.random.PRNGKey(0)
    ks = jax.random.split(key, 11)

    # Input (NHWC); corresponds to a PyTorch NCHW input of shape (N, planes, H, W).
    x = jax.random.normal(ks[0], (N, H, W, planes), dtype=jnp.float32)

    # conv1: PyTorch weight (inplanes, planes, 1, 1), no bias.
    w1_pt = jax.random.normal(ks[1], (inplanes, planes, 1, 1), jnp.float32) * 0.1
    w1 = jnp.transpose(w1_pt[:, :, 0, 0], (1, 0))              # (planes, inplanes)

    # conv2: PyTorch weight (planes, inplanes, 3, 3), no bias.
    w2_pt = jax.random.normal(ks[2], (planes, inplanes, 3, 3), jnp.float32) * 0.05
    w2 = jnp.transpose(w2_pt, (2, 3, 1, 0))                    # (3, 3, inplanes, planes)

    # bn1 over inplanes, bn2 over planes; inference-mode fold to scale/bias.
    # TODO(synk): PyTorch in train mode would use batch statistics; we implement
    # inference-mode BatchNorm (running stats) folded to per-channel affine.
    gamma1 = 1.0 + 0.1 * jax.random.normal(ks[3], (inplanes,), jnp.float32)
    beta1 = 0.1 * jax.random.normal(ks[4], (inplanes,), jnp.float32)
    mean1 = 0.1 * jax.random.normal(ks[5], (inplanes,), jnp.float32)
    var1 = jnp.abs(jax.random.normal(ks[6], (inplanes,), jnp.float32)) + 0.5

    gamma2 = 1.0 + 0.1 * jax.random.normal(ks[7], (planes,), jnp.float32)
    beta2 = 0.1 * jax.random.normal(ks[8], (planes,), jnp.float32)
    mean2 = 0.1 * jax.random.normal(ks[9], (planes,), jnp.float32)
    var2 = jnp.abs(jax.random.normal(ks[10], (planes,), jnp.float32)) + 0.5

    s1 = (gamma1 / jnp.sqrt(var1 + eps)).reshape(1, inplanes)
    b1 = (beta1 - mean1 * gamma1 / jnp.sqrt(var1 + eps)).reshape(1, inplanes)
    s2 = (gamma2 / jnp.sqrt(var2 + eps)).reshape(1, planes)
    b2 = (beta2 - mean2 * gamma2 / jnp.sqrt(var2 + eps)).reshape(1, planes)

    # dilation=1, f32 storage, forced 4-row strips: multi-strip grid exercises
    # the halo recompute / boundary masking; strict check.
    ref1 = jax.block_until_ready(
        _reference_forward(x, w1, s1, b1, w2, s2, b2, dilation=1))
    out_f32 = jax.block_until_ready(
        dark_block_forward(x, w1, s1, b1, w2, s2, b2, dilation=1,
                           compute_dtype=jnp.float32, strip_rows=4))
    assert out_f32.shape == (N, H, W, planes)
    assert float(jnp.max(jnp.abs(out_f32 - ref1))) < 2e-4, "f32/d=1 kernel mismatch"

    # dilation=2, f32 storage: exercises a 2-row halo and the wider kw masks.
    ref2 = jax.block_until_ready(
        _reference_forward(x, w1, s1, b1, w2, s2, b2, dilation=2))
    out_d2 = jax.block_until_ready(
        dark_block_forward(x, w1, s1, b1, w2, s2, b2, dilation=2,
                           compute_dtype=jnp.float32, strip_rows=4))
    assert float(jnp.max(jnp.abs(out_d2 - ref2))) < 2e-4, "f32/d=2 kernel mismatch"

    # Default path: bf16 storage + bf16 output, auto strip sizing; looser check.
    out_bf16 = jax.block_until_ready(
        dark_block_forward(x, w1, s1, b1, w2, s2, b2, dilation=1))
    assert out_bf16.dtype == jnp.bfloat16
    assert float(jnp.max(jnp.abs(out_bf16.astype(jnp.float32) - ref1))) < 1e-1, \
        "bf16 kernel mismatch"

    print("KERNEL_OK")
</pallas_src>

<mosaic_0001>
module attributes {stable_mosaic.version = 11 : i64} {
  func.func @kernel(%arg0: i32, %arg1: i32, %arg2: memref<1x64x128xf32, #tpu.memory_space<vmem>>, %arg3: memref<1x1x32x128xf32, #tpu.memory_space<vmem>>, %arg4: memref<128x128xf32, #tpu.memory_space<vmem>>, %arg5: memref<1x128xf32, #tpu.memory_space<vmem>>, %arg6: memref<3x384x128xf32, #tpu.memory_space<vmem>>, %arg7: memref<1x128xf32, #tpu.memory_space<vmem>>, %arg8: memref<1x64x128xf32, #tpu.memory_space<vmem>>) attributes {dimension_semantics = [#tpu.dimension_semantics<parallel>, #tpu.dimension_semantics<parallel>], iteration_bounds = array<i64: 2, 4>, scalar_prefetch = 0 : i64, scratch_operands = 0 : i64, tpu.core_type = #tpu.core_type<tc>, window_params = [{transform_indices = @transform_0, window_bounds = array<i64: 1, 64, 128>}, {transform_indices = @transform_1, window_bounds = array<i64: 1, 1, 32, 128>}, {pipeline_mode = #tpu.pipeline_mode<synchronous>, transform_indices = @transform_2, window_bounds = array<i64: 128, 128>}, {pipeline_mode = #tpu.pipeline_mode<synchronous>, transform_indices = @transform_3, window_bounds = array<i64: 1, 128>}, {pipeline_mode = #tpu.pipeline_mode<synchronous>, transform_indices = @transform_4, window_bounds = array<i64: 3, 384, 128>}, {pipeline_mode = #tpu.pipeline_mode<synchronous>, transform_indices = @transform_5, window_bounds = array<i64: 1, 128>}, {transform_indices = @transform_6, window_bounds = array<i64: 1, 64, 128>}]} {
    %c0 = arith.constant 0 : index
    %c0_0 = arith.constant 0 : index
    %c0_1 = arith.constant 0 : index
    %c0_2 = arith.constant 0 : index
    %0 = vector.load %arg3[%c0, %c0_0, %c0_1, %c0_2] : memref<1x1x32x128xf32, #tpu.memory_space<vmem>>, vector<1x1x32x128xf32>
    %1 = vector.shape_cast %0 : vector<1x1x32x128xf32> to vector<32x128xf32>
    %2 = vector.extract_strided_slice %1 {offsets = [0, 0], sizes = [16, 128], strides = [1, 1]} : vector<32x128xf32> to vector<16x128xf32>
    %c0_3 = arith.constant 0 : index
    %c0_4 = arith.constant 0 : index
    %c0_5 = arith.constant 0 : index
    %3 = vector.load %arg2[%c0_3, %c0_4, %c0_5] : memref<1x64x128xf32, #tpu.memory_space<vmem>>, vector<1x64x128xf32>
    %4 = vector.shape_cast %3 : vector<1x64x128xf32> to vector<64x128xf32>
    %5 = vector.extract_strided_slice %1 {offsets = [16, 0], sizes = [16, 128], strides = [1, 1]} : vector<32x128xf32> to vector<16x128xf32>
    %6 = tpu.concatenate %2, %4, %5 in 0 : vector<16x128xf32>, vector<64x128xf32>, vector<16x128xf32> -> vector<96x128xf32>
    %c0_6 = arith.constant 0 : index
    %c0_7 = arith.constant 0 : index
    %7 = vector.load %arg4[%c0_6, %c0_7] : memref<128x128xf32, #tpu.memory_space<vmem>>, vector<128x128xf32>
    %cst = arith.constant dense<0.000000e+00> : vector<96x128xf32>
    %8 = tpu.matmul %6, %7, %cst {dimension_numbers = #tpu.dot_dimension_numbers<[1], [0], [0], [1], [0, 0, 1, 1], [], []>} : vector<96x128xf32>, vector<128x128xf32>, vector<96x128xf32> -> vector<96x128xf32>
    %c0_8 = arith.constant 0 : index
    %c0_9 = arith.constant 0 : index
    %9 = vector.load %arg5[%c0_8, %c0_9] : memref<1x128xf32, #tpu.memory_space<vmem>>, vector<1x128xf32>
    %10 = vector.broadcast %9 : vector<1x128xf32> to vector<96x128xf32>
    %11 = arith.addf %8, %10 : vector<96x128xf32>
    %cst_10 = arith.constant 2.000000e+01 : f32
    %12 = vector.broadcast %cst_10 : f32 to vector<96x128xf32>
    %13 = arith.minimumf %11, %12 : vector<96x128xf32>
    %14 = math.exp %13 : vector<96x128xf32>
    %cst_11 = arith.constant 2.000000e+00 : f32
    %15 = vector.broadcast %cst_11 : f32 to vector<96x128xf32>
    %16 = arith.addf %14, %15 : vector<96x128xf32>
    %17 = arith.mulf %14, %16 : vector<96x128xf32>
    %cst_12 = arith.constant 2.000000e+00 : f32
    %18 = vector.broadcast %cst_12 : f32 to vector<96x128xf32>
    %19 = arith.addf %17, %18 : vector<96x128xf32>
    %20 = tpu.reciprocal %19 {approx = true} : vector<96x128xf32> -> vector<96x128xf32>
    %21 = arith.mulf %19, %20 : vector<96x128xf32>
    %cst_13 = arith.constant 2.000000e+00 : f32
    %22 = vector.broadcast %cst_13 : f32 to vector<96x128xf32>
    %23 = arith.subf %22, %21 : vector<96x128xf32>
    %24 = arith.mulf %20, %23 : vector<96x128xf32>
    %cst_14 = arith.constant 2.000000e+00 : f32
    %25 = vector.broadcast %cst_14 : f32 to vector<96x128xf32>
    %26 = arith.mulf %25, %24 : vector<96x128xf32>
    %cst_15 = arith.constant 1.000000e+00 : f32
    %27 = vector.broadcast %cst_15 : f32 to vector<96x128xf32>
    %28 = arith.subf %27, %26 : vector<96x128xf32>
    %29 = arith.mulf %11, %28 : vector<96x128xf32>
    %30 = tpu.iota {dimensions = array<i32: 0>} : vector<96x1xi32>
    %c64_i32 = arith.constant 64 : i32
    %31 = arith.muli %arg1, %c64_i32 : i32
    %c16_i32 = arith.constant 16 : i32
    %32 = arith.subi %31, %c16_i32 : i32
    %33 = vector.broadcast %32 : i32 to vector<96x1xi32>
    %34 = arith.addi %30, %33 : vector<96x1xi32>
    %c0_i32 = arith.constant 0 : i32
    %35 = vector.broadcast %c0_i32 : i32 to vector<96x1xi32>
    %36 = arith.cmpi sge, %34, %35 : vector<96x1xi32>
    %c256_i32 = arith.constant 256 : i32
    %37 = vector.broadcast %c256_i32 : i32 to vector<96x1xi32>
    %38 = arith.cmpi slt, %34, %37 : vector<96x1xi32>
    %39 = arith.andi %36, %38 : vector<96x1xi1>
    %cst_16 = arith.constant 0.000000e+00 : f32
    %40 = vector.shape_cast %39 : vector<96x1xi1> to vector<96x1xi1>
    %41 = vector.broadcast %40 : vector<96x1xi1> to vector<96x128xi1>
    %42 = vector.broadcast %cst_16 : f32 to vector<96x128xf32>
    %43 = arith.select %41, %29, %42 : vector<96x128xi1>, vector<96x128xf32>
    %c16_i32_17 = arith.constant 16 : i32
    %c0_i32_18 = arith.constant 0 : i32
    %44 = arith.cmpi eq, %c16_i32_17, %c0_i32_18 : i32
    %c1_i32 = arith.constant 1 : i32
    %45 = arith.select %44, %c1_i32, %c16_i32_17 : i32
    %46 = vector.broadcast %45 : i32 to vector<96x1xi32>
    %47 = arith.remsi %30, %46 : vector<96x1xi32>
    %c0_i32_19 = arith.constant 0 : i32
    %48 = vector.broadcast %c0_i32_19 : i32 to vector<96x1xi32>
    %49 = arith.cmpi ne, %47, %48 : vector<96x1xi32>
    %c0_i32_20 = arith.constant 0 : i32
    %50 = vector.broadcast %c0_i32_20 : i32 to vector<96x1xi32>
    %51 = arith.cmpi slt, %47, %50 : vector<96x1xi32>
    %c0_i32_21 = arith.constant 0 : i32
    %52 = arith.cmpi slt, %45, %c0_i32_21 : i32
    %53 = vector.broadcast %52 : i1 to vector<96x1xi1>
    %54 = vector.broadcast %53 : vector<96x1xi1> to vector<96x1xi1>
    %55 = arith.xori %51, %54 : vector<96x1xi1>
    %56 = arith.andi %55, %49 : vector<96x1xi1>
    %57 = vector.broadcast %45 : i32 to vector<96x1xi32>
    %58 = arith.addi %47, %57 : vector<96x1xi32>
    %59 = arith.select %56, %58, %47 : vector<96x1xi1>, vector<96x1xi32>
    %c1_i32_22 = arith.constant 1 : i32
    %60 = vector.broadcast %c1_i32_22 : i32 to vector<96x1xi32>
    %61 = arith.cmpi sge, %59, %60 : vector<96x1xi32>
    %c1_i32_23 = arith.constant 1 : i32
    %62 = tpu.dynamic_rotate %43 by %c1_i32_23 dim 0 : vector<96x128xf32>, i32 -> vector<96x128xf32>
    %c0_i32_24 = arith.constant 0 : i32
    %63 = arith.sitofp %c0_i32_24 : i32 to f32
    %64 = vector.shape_cast %61 : vector<96x1xi1> to vector<96x1xi1>
    %65 = vector.broadcast %64 : vector<96x1xi1> to vector<96x128xi1>
    %66 = vector.broadcast %63 : f32 to vector<96x128xf32>
    %67 = arith.select %65, %62, %66 : vector<96x128xi1>, vector<96x128xf32>
    %c15_i32 = arith.constant 15 : i32
    %68 = vector.broadcast %c15_i32 : i32 to vector<96x1xi32>
    %69 = arith.cmpi slt, %59, %68 : vector<96x1xi32>
    %c95_i32 = arith.constant 95 : i32
    %70 = tpu.dynamic_rotate %43 by %c95_i32 dim 0 : vector<96x128xf32>, i32 -> vector<96x128xf32>
    %c0_i32_25 = arith.constant 0 : i32
    %71 = arith.sitofp %c0_i32_25 : i32 to f32
    %72 = vector.shape_cast %69 : vector<96x1xi1> to vector<96x1xi1>
    %73 = vector.broadcast %72 : vector<96x1xi1> to vector<96x128xi1>
    %74 = vector.broadcast %71 : f32 to vector<96x128xf32>
    %75 = arith.select %73, %70, %74 : vector<96x128xi1>, vector<96x128xf32>
    %76 = tpu.concatenate %67, %43, %75 in 1 : vector<96x128xf32>, vector<96x128xf32>, vector<96x128xf32> -> vector<96x384xf32>
    %77 = vector.extract_strided_slice %76 {offsets = [0, 0], sizes = [64, 384], strides = [1, 1]} : vector<96x384xf32> to vector<64x384xf32>
    %c0_26 = arith.constant 0 : index
    %c0_27 = arith.constant 0 : index
    %c0_28 = arith.constant 0 : index
    %78 = vector.load %arg6[%c0_26, %c0_27, %c0_28] : memref<3x384x128xf32, #tpu.memory_space<vmem>>, vector<1x384x128xf32>
    %79 = vector.shape_cast %78 : vector<1x384x128xf32> to vector<384x128xf32>
    %cst_29 = arith.constant dense<0.000000e+00> : vector<64x128xf32>
    %80 = tpu.matmul %77, %79, %cst_29 {dimension_numbers = #tpu.dot_dimension_numbers<[1], [0], [0], [1], [0, 0, 1, 1], [], []>} : vector<64x384xf32>, vector<384x128xf32>, vector<64x128xf32> -> vector<64x128xf32>
    %81 = vector.extract_strided_slice %76 {offsets = [16, 0], sizes = [64, 384], strides = [1, 1]} : vector<96x384xf32> to vector<64x384xf32>
    %c1 = arith.constant 1 : index
    %c0_30 = arith.constant 0 : index
    %c0_31 = arith.constant 0 : index
    %82 = vector.load %arg6[%c1, %c0_30, %c0_31] : memref<3x384x128xf32, #tpu.memory_space<vmem>>, vector<1x384x128xf32>
    %83 = vector.shape_cast %82 : vector<1x384x128xf32> to vector<384x128xf32>
    %cst_32 = arith.constant dense<0.000000e+00> : vector<64x128xf32>
    %84 = tpu.matmul %81, %83, %cst_32 {dimension_numbers = #tpu.dot_dimension_numbers<[1], [0], [0], [1], [0, 0, 1, 1], [], []>} : vector<64x384xf32>, vector<384x128xf32>, vector<64x128xf32> -> vector<64x128xf32>
    %85 = arith.addf %80, %84 : vector<64x128xf32>
    %86 = vector.extract_strided_slice %76 {offsets = [32, 0], sizes = [64, 384], strides = [1, 1]} : vector<96x384xf32> to vector<64x384xf32>
    %c2 = arith.constant 2 : index
    %c0_33 = arith.constant 0 : index
    %c0_34 = arith.constant 0 : index
    %87 = vector.load %arg6[%c2, %c0_33, %c0_34] : memref<3x384x128xf32, #tpu.memory_space<vmem>>, vector<1x384x128xf32>
    %88 = vector.shape_cast %87 : vector<1x384x128xf32> to vector<384x128xf32>
    %cst_35 = arith.constant dense<0.000000e+00> : vector<64x128xf32>
    %89 = tpu.matmul %86, %88, %cst_35 {dimension_numbers = #tpu.dot_dimension_numbers<[1], [0], [0], [1], [0, 0, 1, 1], [], []>} : vector<64x384xf32>, vector<384x128xf32>, vector<64x128xf32> -> vector<64x128xf32>
    %90 = arith.addf %85, %89 : vector<64x128xf32>
    %c0_36 = arith.constant 0 : index
    %c0_37 = arith.constant 0 : index
    %91 = vector.load %arg7[%c0_36, %c0_37] : memref<1x128xf32, #tpu.memory_space<vmem>>, vector<1x128xf32>
    %92 = vector.broadcast %91 : vector<1x128xf32> to vector<64x128xf32>
    %93 = arith.addf %90, %92 : vector<64x128xf32>
    %cst_38 = arith.constant 2.000000e+01 : f32
    %94 = vector.broadcast %cst_38 : f32 to vector<64x128xf32>
    %95 = arith.minimumf %93, %94 : vector<64x128xf32>
    %96 = math.exp %95 : vector<64x128xf32>
    %cst_39 = arith.constant 2.000000e+00 : f32
    %97 = vector.broadcast %cst_39 : f32 to vector<64x128xf32>
    %98 = arith.addf %96, %97 : vector<64x128xf32>
    %99 = arith.mulf %96, %98 : vector<64x128xf32>
    %cst_40 = arith.constant 2.000000e+00 : f32
    %100 = vector.broadcast %cst_40 : f32 to vector<64x128xf32>
    %101 = arith.addf %99, %100 : vector<64x128xf32>
    %102 = tpu.reciprocal %101 {approx = true} : vector<64x128xf32> -> vector<64x128xf32>
    %103 = arith.mulf %101, %102 : vector<64x128xf32>
    %cst_41 = arith.constant 2.000000e+00 : f32
    %104 = vector.broadcast %cst_41 : f32 to vector<64x128xf32>
    %105 = arith.subf %104, %103 : vector<64x128xf32>
    %106 = arith.mulf %102, %105 : vector<64x128xf32>
    %cst_42 = arith.constant 2.000000e+00 : f32
    %107 = vector.broadcast %cst_42 : f32 to vector<64x128xf32>
    %108 = arith.mulf %107, %106 : vector<64x128xf32>
    %cst_43 = arith.constant 1.000000e+00 : f32
    %109 = vector.broadcast %cst_43 : f32 to vector<64x128xf32>
    %110 = arith.subf %109, %108 : vector<64x128xf32>
    %111 = arith.mulf %93, %110 : vector<64x128xf32>
    %c0_44 = arith.constant 0 : index
    %c0_45 = arith.constant 0 : index
    %c0_46 = arith.constant 0 : index
    %112 = vector.load %arg2[%c0_44, %c0_45, %c0_46] : memref<1x64x128xf32, #tpu.memory_space<vmem>>, vector<1x64x128xf32>
    %113 = vector.shape_cast %112 : vector<1x64x128xf32> to vector<64x128xf32>
    %114 = arith.addf %111, %113 : vector<64x128xf32>
    %c0_47 = arith.constant 0 : index
    %c0_48 = arith.constant 0 : index
    %c0_49 = arith.constant 0 : index
    %115 = vector.load %arg8[%c0_47, %c0_48, %c0_49] : memref<1x64x128xf32, #tpu.memory_space<vmem>>, vector<1x64x128xf32>
    %116 = vector.shape_cast %115 : vector<1x64x128xf32> to vector<64x128xf32>
    %117 = vector.shape_cast %114 : vector<64x128xf32> to vector<1x64x128xf32>
    tpu.vector_store %arg8[%c0_47, %c0_48, %c0_49], %117 {strides = array<i32>} : memref<1x64x128xf32, #tpu.memory_space<vmem>>, vector<1x64x128xf32>,
    return
  }
  func.func @transform_0(%arg0: i32, %arg1: i32) -> (i32, i32, i32) {
    %c0_i32 = arith.constant 0 : i32
    %c0_i32_0 = arith.constant 0 : i32
    return %arg0, %arg1, %c0_i32 : i32, i32, i32
  }
  func.func @transform_1(%arg0: i32, %arg1: i32) -> (i32, i32, i32, i32) {
    %c0_i32 = arith.constant 0 : i32
    %c0_i32_0 = arith.constant 0 : i32
    %c0_i32_1 = arith.constant 0 : i32
    return %arg0, %arg1, %c0_i32, %c0_i32_0 : i32, i32, i32, i32
  }
  func.func @transform_2(%arg0: i32, %arg1: i32) -> (i32, i32) {
    %c0_i32 = arith.constant 0 : i32
    %c0_i32_0 = arith.constant 0 : i32
    %c0_i32_1 = arith.constant 0 : i32
    return %c0_i32, %c0_i32_0 : i32, i32
  }
  func.func @transform_3(%arg0: i32, %arg1: i32) -> (i32, i32) {
    %c0_i32 = arith.constant 0 : i32
    %c0_i32_0 = arith.constant 0 : i32
    %c0_i32_1 = arith.constant 0 : i32
    return %c0_i32, %c0_i32_0 : i32, i32
  }
  func.func @transform_4(%arg0: i32, %arg1: i32) -> (i32, i32, i32) {
    %c0_i32 = arith.constant 0 : i32
    %c0_i32_0 = arith.constant 0 : i32
    %c0_i32_1 = arith.constant 0 : i32
    %c0_i32_2 = arith.constant 0 : i32
    return %c0_i32, %c0_i32_0, %c0_i32_1 : i32, i32, i32
  }
  func.func @transform_5(%arg0: i32, %arg1: i32) -> (i32, i32) {
    %c0_i32 = arith.constant 0 : i32
    %c0_i32_0 = arith.constant 0 : i32
    %c0_i32_1 = arith.constant 0 : i32
    return %c0_i32, %c0_i32_0 : i32, i32
  }
  func.func @transform_6(%arg0: i32, %arg1: i32) -> (i32, i32, i32) {
    %c0_i32 = arith.constant 0 : i32
    %c0_i32_0 = arith.constant 0 : i32
    return %arg0, %arg1, %c0_i32 : i32, i32, i32
  }
}

module attributes {stable_mosaic.version = 11 : i64} {
  func.func @kernel(%arg0: i32, %arg1: i32, %arg2: memref<1x64x128xf32, #tpu.memory_space<vmem>>, %arg3: memref<1x1x32x128xf32, #tpu.memory_space<vmem>>, %arg4: memref<128x128xf32, #tpu.memory_space<vmem>>, %arg5: memref<1x128xf32, #tpu.memory_space<vmem>>, %arg6: memref<3x384x128xf32, #tpu.memory_space<vmem>>, %arg7: memref<1x128xf32, #tpu.memory_space<vmem>>, %arg8: memref<1x64x128xf32, #tpu.memory_space<vmem>>) attributes {dimension_semantics = [#tpu.dimension_semantics<parallel>, #tpu.dimension_semantics<parallel>], iteration_bounds = array<i64: 2, 4>, scalar_prefetch = 0 : i64, scratch_operands = 0 : i64, tpu.core_type = #tpu.core_type<tc>, window_params = [{transform_indices = @transform_0, window_bounds = array<i64: 1, 64, 128>}, {transform_indices = @transform_1, window_bounds = array<i64: 1, 1, 32, 128>}, {pipeline_mode = #tpu.pipeline_mode<synchronous>, transform_indices = @transform_2, window_bounds = array<i64: 128, 128>}, {pipeline_mode = #tpu.pipeline_mode<synchronous>, transform_indices = @transform_3, window_bounds = array<i64: 1, 128>}, {pipeline_mode = #tpu.pipeline_mode<synchronous>, transform_indices = @transform_4, window_bounds = array<i64: 3, 384, 128>}, {pipeline_mode = #tpu.pipeline_mode<synchronous>, transform_indices = @transform_5, window_bounds = array<i64: 1, 128>}, {transform_indices = @transform_6, window_bounds = array<i64: 1, 64, 128>}]} {
    %c0 = arith.constant 0 : index
    %c0_0 = arith.constant 0 : index
    %c0_1 = arith.constant 0 : index
    %c0_2 = arith.constant 0 : index
    %0 = vector.load %arg3[%c0, %c0_0, %c0_1, %c0_2] : memref<1x1x32x128xf32, #tpu.memory_space<vmem>>, vector<1x1x32x128xf32>
    %1 = vector.shape_cast %0 : vector<1x1x32x128xf32> to vector<32x128xf32>
    %2 = vector.extract_strided_slice %1 {offsets = [0, 0], sizes = [16, 128], strides = [1, 1]} : vector<32x128xf32> to vector<16x128xf32>
    %c0_3 = arith.constant 0 : index
    %c0_4 = arith.constant 0 : index
    %c0_5 = arith.constant 0 : index
    %3 = vector.load %arg2[%c0_3, %c0_4, %c0_5] : memref<1x64x128xf32, #tpu.memory_space<vmem>>, vector<1x64x128xf32>
    %4 = vector.shape_cast %3 : vector<1x64x128xf32> to vector<64x128xf32>
    %5 = vector.extract_strided_slice %1 {offsets = [16, 0], sizes = [16, 128], strides = [1, 1]} : vector<32x128xf32> to vector<16x128xf32>
    %6 = tpu.concatenate %2, %4, %5 in 0 : vector<16x128xf32>, vector<64x128xf32>, vector<16x128xf32> -> vector<96x128xf32>
    %c0_6 = arith.constant 0 : index
    %c0_7 = arith.constant 0 : index
    %7 = vector.load %arg4[%c0_6, %c0_7] : memref<128x128xf32, #tpu.memory_space<vmem>>, vector<128x128xf32>
    %cst = arith.constant dense<0.000000e+00> : vector<96x128xf32>
    %8 = tpu.matmul %6, %7, %cst {dimension_numbers = #tpu.dot_dimension_numbers<[1], [0], [0], [1], [0, 0, 1, 1], [], []>} : vector<96x128xf32>, vector<128x128xf32>, vector<96x128xf32> -> vector<96x128xf32>
    %c0_8 = arith.constant 0 : index
    %c0_9 = arith.constant 0 : index
    %9 = vector.load %arg5[%c0_8, %c0_9] : memref<1x128xf32, #tpu.memory_space<vmem>>, vector<1x128xf32>
    %10 = vector.broadcast %9 : vector<1x128xf32> to vector<96x128xf32>
    %11 = arith.addf %8, %10 : vector<96x128xf32>
    %cst_10 = arith.constant 2.000000e+01 : f32
    %12 = vector.broadcast %cst_10 : f32 to vector<96x128xf32>
    %13 = arith.minimumf %11, %12 : vector<96x128xf32>
    %14 = math.exp %13 : vector<96x128xf32>
    %cst_11 = arith.constant 2.000000e+00 : f32
    %15 = vector.broadcast %cst_11 : f32 to vector<96x128xf32>
    %16 = arith.addf %14, %15 : vector<96x128xf32>
    %17 = arith.mulf %14, %16 : vector<96x128xf32>
    %cst_12 = arith.constant 2.000000e+00 : f32
    %18 = vector.broadcast %cst_12 : f32 to vector<96x128xf32>
    %19 = arith.addf %17, %18 : vector<96x128xf32>
    %20 = tpu.reciprocal %19 {approx = true} : vector<96x128xf32> -> vector<96x128xf32>
    %21 = arith.mulf %19, %20 : vector<96x128xf32>
    %cst_13 = arith.constant 2.000000e+00 : f32
    %22 = vector.broadcast %cst_13 : f32 to vector<96x128xf32>
    %23 = arith.subf %22, %21 : vector<96x128xf32>
    %24 = arith.mulf %20, %23 : vector<96x128xf32>
    %cst_14 = arith.constant 2.000000e+00 : f32
    %25 = vector.broadcast %cst_14 : f32 to vector<96x128xf32>
    %26 = arith.mulf %25, %24 : vector<96x128xf32>
    %cst_15 = arith.constant 1.000000e+00 : f32
    %27 = vector.broadcast %cst_15 : f32 to vector<96x128xf32>
    %28 = arith.subf %27, %26 : vector<96x128xf32>
    %29 = arith.mulf %11, %28 : vector<96x128xf32>
    %30 = tpu.iota {dimensions = array<i32: 0>} : vector<96x1xi32>
    %c64_i32 = arith.constant 64 : i32
    %31 = arith.muli %arg1, %c64_i32 : i32
    %c16_i32 = arith.constant 16 : i32
    %32 = arith.subi %31, %c16_i32 : i32
    %33 = vector.broadcast %32 : i32 to vector<96x1xi32>
    %34 = arith.addi %30, %33 : vector<96x1xi32>
    %c0_i32 = arith.constant 0 : i32
    %35 = vector.broadcast %c0_i32 : i32 to vector<96x1xi32>
    %36 = arith.cmpi sge, %34, %35 : vector<96x1xi32>
    %c256_i32 = arith.constant 256 : i32
    %37 = vector.broadcast %c256_i32 : i32 to vector<96x1xi32>
    %38 = arith.cmpi slt, %34, %37 : vector<96x1xi32>
    %39 = arith.andi %36, %38 : vector<96x1xi1>
    %cst_16 = arith.constant 0.000000e+00 : f32
    %40 = vector.shape_cast %39 : vector<96x1xi1> to vector<96x1xi1>
    %41 = vector.broadcast %40 : vector<96x1xi1> to vector<96x128xi1>
    %42 = vector.broadcast %cst_16 : f32 to vector<96x128xf32>
    %43 = arith.select %41, %29, %42 : vector<96x128xi1>, vector<96x128xf32>
    %c16_i32_17 = arith.constant 16 : i32
    %c0_i32_18 = arith.constant 0 : i32
    %44 = arith.cmpi eq, %c16_i32_17, %c0_i32_18 : i32
    %c1_i32 = arith.constant 1 : i32
    %45 = arith.select %44, %c1_i32, %c16_i32_17 : i32
    %46 = vector.broadcast %45 : i32 to vector<96x1xi32>
    %47 = arith.remsi %30, %46 : vector<96x1xi32>
    %c0_i32_19 = arith.constant 0 : i32
    %48 = vector.broadcast %c0_i32_19 : i32 to vector<96x1xi32>
    %49 = arith.cmpi ne, %47, %48 : vector<96x1xi32>
    %c0_i32_20 = arith.constant 0 : i32
    %50 = vector.broadcast %c0_i32_20 : i32 to vector<96x1xi32>
    %51 = arith.cmpi slt, %47, %50 : vector<96x1xi32>
    %c0_i32_21 = arith.constant 0 : i32
    %52 = arith.cmpi slt, %45, %c0_i32_21 : i32
    %53 = vector.broadcast %52 : i1 to vector<96x1xi1>
    %54 = vector.broadcast %53 : vector<96x1xi1> to vector<96x1xi1>
    %55 = arith.xori %51, %54 : vector<96x1xi1>
    %56 = arith.andi %55, %49 : vector<96x1xi1>
    %57 = vector.broadcast %45 : i32 to vector<96x1xi32>
    %58 = arith.addi %47, %57 : vector<96x1xi32>
    %59 = arith.select %56, %58, %47 : vector<96x1xi1>, vector<96x1xi32>
    %c1_i32_22 = arith.constant 1 : i32
    %60 = vector.broadcast %c1_i32_22 : i32 to vector<96x1xi32>
    %61 = arith.cmpi sge, %59, %60 : vector<96x1xi32>
    %c1_i32_23 = arith.constant 1 : i32
    %62 = tpu.dynamic_rotate %43 by %c1_i32_23 dim 0 : vector<96x128xf32>, i32 -> vector<96x128xf32>
    %c0_i32_24 = arith.constant 0 : i32
    %63 = arith.sitofp %c0_i32_24 : i32 to f32
    %64 = vector.shape_cast %61 : vector<96x1xi1> to vector<96x1xi1>
    %65 = vector.broadcast %64 : vector<96x1xi1> to vector<96x128xi1>
    %66 = vector.broadcast %63 : f32 to vector<96x128xf32>
    %67 = arith.select %65, %62, %66 : vector<96x128xi1>, vector<96x128xf32>
    %c15_i32 = arith.constant 15 : i32
    %68 = vector.broadcast %c15_i32 : i32 to vector<96x1xi32>
    %69 = arith.cmpi slt, %59, %68 : vector<96x1xi32>
    %c95_i32 = arith.constant 95 : i32
    %70 = tpu.dynamic_rotate %43 by %c95_i32 dim 0 : vector<96x128xf32>, i32 -> vector<96x128xf32>
    %c0_i32_25 = arith.constant 0 : i32
    %71 = arith.sitofp %c0_i32_25 : i32 to f32
    %72 = vector.shape_cast %69 : vector<96x1xi1> to vector<96x1xi1>
    %73 = vector.broadcast %72 : vector<96x1xi1> to vector<96x128xi1>
    %74 = vector.broadcast %71 : f32 to vector<96x128xf32>
    %75 = arith.select %73, %70, %74 : vector<96x128xi1>, vector<96x128xf32>
    %76 = tpu.concatenate %67, %43, %75 in 1 : vector<96x128xf32>, vector<96x128xf32>, vector<96x128xf32> -> vector<96x384xf32>
    %77 = vector.extract_strided_slice %76 {offsets = [0, 0], sizes = [64, 384], strides = [1, 1]} : vector<96x384xf32> to vector<64x384xf32>
    %c0_26 = arith.constant 0 : index
    %c0_27 = arith.constant 0 : index
    %c0_28 = arith.constant 0 : index
    %78 = vector.load %arg6[%c0_26, %c0_27, %c0_28] : memref<3x384x128xf32, #tpu.memory_space<vmem>>, vector<1x384x128xf32>
    %79 = vector.shape_cast %78 : vector<1x384x128xf32> to vector<384x128xf32>
    %cst_29 = arith.constant dense<0.000000e+00> : vector<64x128xf32>
    %80 = tpu.matmul %77, %79, %cst_29 {dimension_numbers = #tpu.dot_dimension_numbers<[1], [0], [0], [1], [0, 0, 1, 1], [], []>} : vector<64x384xf32>, vector<384x128xf32>, vector<64x128xf32> -> vector<64x128xf32>
    %81 = vector.extract_strided_slice %76 {offsets = [16, 0], sizes = [64, 384], strides = [1, 1]} : vector<96x384xf32> to vector<64x384xf32>
    %c1 = arith.constant 1 : index
    %c0_30 = arith.constant 0 : index
    %c0_31 = arith.constant 0 : index
    %82 = vector.load %arg6[%c1, %c0_30, %c0_31] : memref<3x384x128xf32, #tpu.memory_space<vmem>>, vector<1x384x128xf32>
    %83 = vector.shape_cast %82 : vector<1x384x128xf32> to vector<384x128xf32>
    %cst_32 = arith.constant dense<0.000000e+00> : vector<64x128xf32>
    %84 = tpu.matmul %81, %83, %cst_32 {dimension_numbers = #tpu.dot_dimension_numbers<[1], [0], [0], [1], [0, 0, 1, 1], [], []>} : vector<64x384xf32>, vector<384x128xf32>, vector<64x128xf32> -> vector<64x128xf32>
    %85 = arith.addf %80, %84 : vector<64x128xf32>
    %86 = vector.extract_strided_slice %76 {offsets = [32, 0], sizes = [64, 384], strides = [1, 1]} : vector<96x384xf32> to vector<64x384xf32>
    %c2 = arith.constant 2 : index
    %c0_33 = arith.constant 0 : index
    %c0_34 = arith.constant 0 : index
    %87 = vector.load %arg6[%c2, %c0_33, %c0_34] : memref<3x384x128xf32, #tpu.memory_space<vmem>>, vector<1x384x128xf32>
    %88 = vector.shape_cast %87 : vector<1x384x128xf32> to vector<384x128xf32>
    %cst_35 = arith.constant dense<0.000000e+00> : vector<64x128xf32>
    %89 = tpu.matmul %86, %88, %cst_35 {dimension_numbers = #tpu.dot_dimension_numbers<[1], [0], [0], [1], [0, 0, 1, 1], [], []>} : vector<64x384xf32>, vector<384x128xf32>, vector<64x128xf32> -> vector<64x128xf32>
    %90 = arith.addf %85, %89 : vector<64x128xf32>
    %c0_36 = arith.constant 0 : index
    %c0_37 = arith.constant 0 : index
    %91 = vector.load %arg7[%c0_36, %c0_37] : memref<1x128xf32, #tpu.memory_space<vmem>>, vector<1x128xf32>
    %92 = vector.broadcast %91 : vector<1x128xf32> to vector<64x128xf32>
    %93 = arith.addf %90, %92 : vector<64x128xf32>
    %cst_38 = arith.constant 2.000000e+01 : f32
    %94 = vector.broadcast %cst_38 : f32 to vector<64x128xf32>
    %95 = arith.minimumf %93, %94 : vector<64x128xf32>
    %96 = math.exp %95 : vector<64x128xf32>
    %cst_39 = arith.constant 2.000000e+00 : f32
    %97 = vector.broadcast %cst_39 : f32 to vector<64x128xf32>
    %98 = arith.addf %96, %97 : vector<64x128xf32>
    %99 = arith.mulf %96, %98 : vector<64x128xf32>
    %cst_40 = arith.constant 2.000000e+00 : f32
    %100 = vector.broadcast %cst_40 : f32 to vector<64x128xf32>
    %101 = arith.addf %99, %100 : vector<64x128xf32>
    %102 = tpu.reciprocal %101 {approx = true} : vector<64x128xf32> -> vector<64x128xf32>
    %103 = arith.mulf %101, %102 : vector<64x128xf32>
    %cst_41 = arith.constant 2.000000e+00 : f32
    %104 = vector.broadcast %cst_41 : f32 to vector<64x128xf32>
    %105 = arith.subf %104, %103 : vector<64x128xf32>
    %106 = arith.mulf %102, %105 : vector<64x128xf32>
    %cst_42 = arith.constant 2.000000e+00 : f32
    %107 = vector.broadcast %cst_42 : f32 to vector<64x128xf32>
    %108 = arith.mulf %107, %106 : vector<64x128xf32>
    %cst_43 = arith.constant 1.000000e+00 : f32
    %109 = vector.broadcast %cst_43 : f32 to vector<64x128xf32>
    %110 = arith.subf %109, %108 : vector<64x128xf32>
    %111 = arith.mulf %93, %110 : vector<64x128xf32>
    %c0_44 = arith.constant 0 : index
    %c0_45 = arith.constant 0 : index
    %c0_46 = arith.constant 0 : index
    %112 = vector.load %arg2[%c0_44, %c0_45, %c0_46] : memref<1x64x128xf32, #tpu.memory_space<vmem>>, vector<1x64x128xf32>
    %113 = vector.shape_cast %112 : vector<1x64x128xf32> to vector<64x128xf32>
    %114 = arith.addf %111, %113 : vector<64x128xf32>
    %c0_47 = arith.constant 0 : index
    %c0_48 = arith.constant 0 : index
    %c0_49 = arith.constant 0 : index
    %115 = vector.load %arg8[%c0_47, %c0_48, %c0_49] : memref<1x64x128xf32, #tpu.memory_space<vmem>>, vector<1x64x128xf32>
    %116 = vector.shape_cast %115 : vector<1x64x128xf32> to vector<64x128xf32>
    %117 = vector.shape_cast %114 : vector<64x128xf32> to vector<1x64x128xf32>
    tpu.vector_store %arg8[%c0_47, %c0_48, %c0_49], %117 {strides = array<i32>} : memref<1x64x128xf32, #tpu.memory_space<vmem>>, vector<1x64x128xf32>,
    return
  }
  func.func @transform_0(%arg0: i32, %arg1: i32) -> (i32, i32, i32) {
    %c0_i32 = arith.constant 0 : i32
    %c0_i32_0 = arith.constant 0 : i32
    return %arg0, %arg1, %c0_i32 : i32, i32, i32
  }
  func.func @transform_1(%arg0: i32, %arg1: i32) -> (i32, i32, i32, i32) {
    %c0_i32 = arith.constant 0 : i32
    %c0_i32_0 = arith.constant 0 : i32
    %c0_i32_1 = arith.constant 0 : i32
    return %arg0, %arg1, %c0_i32, %c0_i32_0 : i32, i32, i32, i32
  }
  func.func @transform_2(%arg0: i32, %arg1: i32) -> (i32, i32) {
    %c0_i32 = arith.constant 0 : i32
    %c0_i32_0 = arith.constant 0 : i32
    %c0_i32_1 = arith.constant 0 : i32
    return %c0_i32, %c0_i32_0 : i32, i32
  }
  func.func @transform_3(%arg0: i32, %arg1: i32) -> (i32, i32) {
    %c0_i32 = arith.constant 0 : i32
    %c0_i32_0 = arith.constant 0 : i32
    %c0_i32_1 = arith.constant 0 : i32
    return %c0_i32, %c0_i32_0 : i32, i32
  }
  func.func @transform_4(%arg0: i32, %arg1: i32) -> (i32, i32, i32) {
    %c0_i32 = arith.constant 0 : i32
    %c0_i32_0 = arith.constant 0 : i32
    %c0_i32_1 = arith.constant 0 : i32
    %c0_i32_2 = arith.constant 0 : i32
    return %c0_i32, %c0_i32_0, %c0_i32_1 : i32, i32, i32
  }
  func.func @transform_5(%arg0: i32, %arg1: i32) -> (i32, i32) {
    %c0_i32 = arith.constant 0 : i32
    %c0_i32_0 = arith.constant 0 : i32
    %c0_i32_1 = arith.constant 0 : i32
    return %c0_i32, %c0_i32_0 : i32, i32
  }
  func.func @transform_6(%arg0: i32, %arg1: i32) -> (i32, i32, i32) {
    %c0_i32 = arith.constant 0 : i32
    %c0_i32_0 = arith.constant 0 : i32
    return %arg0, %arg1, %c0_i32 : i32, i32, i32
  }
}

</mosaic_0001>

<bundles_post_ra>
// kernel: tpu_custom_call.1
= control target key start
LH: loop header
LB: loop body
LE: loop exit
PB: predicated region body
PF: predicated region fallthrough
CT: control target
= control target key end

     0   :  { %s4894_s0 = inlined_call_operand.hbm [shape: f32[2,256,128], index: 0, kind: input, shape index: {}]   ;;  %s4895_s1 = inlined_call_operand.hbm [shape: f32[2,4,32,128], index: 1, kind: input, shape index: {}]   ;;  %s4896_s2 = inlined_call_operand.hbm [shape: f32[128,128], index: 2, kind: input, shape index: {}]   ;;  %s4897_s3 = inlined_call_operand.hbm [shape: f32[1,128], index: 3, kind: input, shape index: {}]   ;;  %s4898_s4 = inlined_call_operand.hbm [shape: f32[3,384,128], index: 4, kind: input, shape index: {}]   ;;  %s4899_s5 = inlined_call_operand.hbm [shape: f32[1,128], index: 5, kind: input, shape index: {}]   ;;  %s4900_s6 = inlined_call_operand.hbm [shape: f32[2,256,128], index: 6, kind: output, shape index: {}]  }
   0x1   :  { %4964 = sst [smem:[#allocation50_spill]] %s4894_s0 }
   0x2   :  { %4965 = sst [smem:[#allocation51_spill]] %s4896_s2 }
   0x3   :  { %4966 = sst [smem:[#allocation52_spill]] %s4897_s3 }
   0x4   :  { %4967 = sst [smem:[#allocation53_spill]] %s4898_s4 }
   0x5   :  { %4968 = sst [smem:[#allocation54_spill]] %s4899_s5 }
   0x6   :  { %4969 = sst [smem:[#allocation55_spill]] %s4900_s6 }
   0x7   :  { %11 = vsyncpa [#allocation3], 0 }
   0x8   :  { %13 = vsyncpa [#allocation3 + $0x1], 0 }
   0x9   :  { %14 = vsyncpa [#allocation6], 0 }
   0xa   :  { %16 = vsyncpa [#allocation6 + $0x1], 0 }
   0xb   :  { %17 = vsyncpa [#allocation9], 0 }
   0xc   :  { %18 = vsyncpa [#allocation12], 0 }
   0xd   :  { %19 = vsyncpa [#allocation4], 0 }
   0xe   :  { %21 = vsyncpa [#allocation4 + $0x1], 0  ;;  %s3545_s21 = smov 0   ;;  %s3547_s22 = smov 0  }
   0xf   :  { %s3549_s23 = smov 0   ;;  %s3551_s24 = smov 0  }
  0x10   :  { %s3553_s25 = smov 0   ;;  %s3555_s26 = smov 0  }
  0x11   :  { %s3557_s27 = smov 0   ;;  %s3559_s28 = smov 0  }
  0x12 LB: > { %4970 = sst [smem:[#allocation20_spill]] %s3469_s21  ;;  %s3586_s29 = sadd.s32 4294967295, %s3497_s28   ;;  %s3497_s28 = sphi %s3559_s28, %s27_s28   ;;  %s3493_s27 = sphi %s3557_s27, %s5170_s27   ;;  %s3489_s26 = sphi %s3555_s26, %s5169_s26   ;;  %s3485_s25 = sphi %s3553_s25, %s5168_s25   ;;  %s3481_s24 = sphi %s3551_s24, %s5167_s24   ;;  %s3477_s23 = sphi %s3549_s23, %s5166_s23   ;;  %s3473_s22 = sphi %s3547_s22, %s5165_s22   ;;  %s3469_s21 = sphi %s3545_s21, %s5164_s21  }
  0x13   : > { %4971 = sst [smem:[#allocation21_spill]] %s3485_s25  ;;  %s2184_s30 = sadd.s32 4294967294, %s3497_s28  }
  0x14   : > { %p61_p0 = scmp.ne.s32.totalorder %s3473_s22, %s3469_s21  ;;  %p4901_p1 = scmp.eq.s32.totalorder %s3586_s29, 0 }
  0x15   : > { %p205_p3 = scmp.eq.s32.totalorder %s2184_s30, 7  ;;  %p2185_p5 = scmp.ge.s32.totalorder %s3497_s28, 1 }
  0x16   : > { %p3595_p4 = por %p4901_p1, %p61_p0  ;;  %p212_p7 = scmp.lt.s32.totalorder %s3497_s28, 9 }
  0x17   : > { %p3600_p6 = por %p205_p3, %p61_p0  ;;  %s3499_s10 = smov [#allocation7]  }
  0x18   : > { %s4972_s7 = scalar_select %p3595_p4, 1, 0 }
  0x19   : > { %s4973_s8 = scalar_select %p3600_p6, 1, 0 }
  0x1a   : > { %p3605_p8 = pnand %p2185_p5, %p212_p7  ;;  %s224_s11 = sshll.u32 %s3499_s10, 4  ;;  %s3609_s11 = int_to_ptr.vmem [resolvable:$true] %s224_s11 }
  0x1b   : > { %4974 = sst [smem:[#allocation22_spill]] %s4973_s8  ;;  %s3500_s13 = smov [#allocation8]  }
  0x1c   : > { %s4975_s9 = scalar_select %p3605_p8, 1, 0 }
  0x1d   : > { %p3017_p9 = pneg %p3605_p8  ;;  %s238_s14 = sshll.u32 %s3500_s13, 4  ;;  %s3619_s14 = int_to_ptr.vmem [resolvable:$true] %s238_s14 }
  0x1e   : > { %s3501_s15 = smov [#allocation10]   ;;  %s4977_s2 = sld [smem:[#allocation51_spill]] }
  0x1f   : > { %p3615_p10 = pnand %p3017_p9, %p4901_p1  ;;  %s3621_s16 = sshll.u32 %s3501_s15, 4  ;;  %s249_s16 = int_to_ptr.vmem [resolvable:$true] %s3621_s16 }
  0x21   : > { %p3631_p12 = pneg %p3615_p10 }
  0x24   : > { %s3211_s19 = scalar_lea.hbm %s4977_s2, 2048 }
  0x25   : > { %p3212_p11 = scmp.ne.s32.totalorder %s4977_s2, %s3211_s19  ;;  %p3218_p3 = scmp.lt.u32.totalorder %s3211_s19, %s4977_s2 }
  0x27   : > { %p3214_p13 = pnand %p3631_p12, %p3212_p11 }
  0x29   : > { %p3215_p0 = pneg %p3214_p13 }
  0x2b   : > { %p3220_p5 = pnand %p3218_p3, %p3215_p0 }
  0x2d   : > { %3223 = shalt.err (!%p3220_p5)
}
  0x2e   : > { %s3224_s17 = scalar_lea.vmem %s3609_s11, 2048  ;;  %p3232_p2 = scmp.lt.s32.totalorder %s3609_s11, %s3609_s11 }
  0x2f   : > { %p3225_p7 = scmp.ne.s32.totalorder %s3609_s11, %s3224_s17  ;;  %p3233_p6 = scmp.lt.s32.totalorder %s3224_s17, %s3224_s17 }
  0x31   : > { %p3227_p9 = pnand %p3225_p7, %p3631_p12  ;;  %p3234_p11 = por %p3233_p6, %p3232_p2 }
  0x33   : > { %p3228_p1 = pneg %p3227_p9 }
  0x35   : > { %p3235_p13 = pnand %p3234_p11, %p3228_p1 }
  0x37   : > { %3238 = shalt.err (!%p3235_p13)
}
  0x38   : > { %s4907_s18 = smov 128   ;;  %s4909_s19 = smov 8  }
  0x39   : > { %3020 = dma.hbm_to_vmem [thread:$0]  (!%p3615_p10), %s4977_s2, 2048, %s3609_s11, [#allocation6], %s4907_s18, %s4907_s18, %s4909_s19  }
  0x3a   : > { %s4979_s3 = sld [smem:[#allocation52_spill]] }
  0x40   : > { %s3239_s17 = scalar_lea.hbm %s4979_s3, 16 }
  0x41   : > { %p3240_p1 = scmp.ne.s32.totalorder %s4979_s3, %s3239_s17  ;;  %p3246_p0 = scmp.lt.u32.totalorder %s3239_s17, %s4979_s3 }
  0x43   : > { %p3242_p2 = pnand %p3240_p1, %p3631_p12 }
  0x45   : > { %p3243_p6 = pneg %p3242_p2 }
  0x47   : > { %p3248_p3 = pnand %p3246_p0, %p3243_p6 }
  0x49   : > { %3251 = shalt.err (!%p3248_p3)
}
  0x4a   : > { %s3252_s11 = scalar_lea.vmem %s3619_s14, 16  ;;  %s3259_s21 = scalar_lea.vmem %s3619_s14, 32 }
  0x4b   : > { %p3253_p5 = scmp.ne.s32.totalorder %s3619_s14, %s3252_s11  ;;  %p3260_p11 = scmp.lt.s32.totalorder %s3619_s14, %s3619_s14 }
  0x4c   : > { %p3261_p13 = scmp.lt.s32.totalorder %s3259_s21, %s3252_s11 }
  0x4d   : > { %p3255_p7 = pnand %p3253_p5, %p3631_p12 }
  0x4e   : > { %p3262_p1 = por %p3261_p13, %p3260_p11 }
  0x4f   : > { %p3256_p9 = pneg %p3255_p7 }
  0x51   : > { %p3263_p2 = pnand %p3262_p1, %p3256_p9 }
  0x53   : > { %3266 = shalt.err (!%p3263_p2)
}
  0x54   : > { %3023 = dma.hbm_to_vmem [thread:$0]  (!%p3615_p10), %s4979_s3, 16, %s3619_s14, [#allocation9]  }
  0x55   : > { %s4980_s4 = sld [smem:[#allocation53_spill]] }
  0x5b   : > { %s3267_s30 = scalar_lea.hbm %s4980_s4, 18432 }
  0x5c   : > { %p3268_p6 = scmp.ne.s32.totalorder %s4980_s4, %s3267_s30  ;;  %p3274_p5 = scmp.lt.u32.totalorder %s3267_s30, %s4980_s4 }
  0x5e   : > { %p3270_p0 = pnand %p3268_p6, %p3631_p12 }
  0x60   : > { %p3271_p3 = pneg %p3270_p0 }
  0x62   : > { %p3276_p7 = pnand %p3274_p5, %p3271_p3 }
  0x64   : > { %3279 = shalt.err (!%p3276_p7)
}
  0x65   : > { %s3280_s21 = scalar_lea.vmem %s249_s16, 18432  ;;  %p3288_p1 = scmp.lt.s32.totalorder %s249_s16, %s249_s16 }
  0x66   : > { %p3281_p9 = scmp.ne.s32.totalorder %s249_s16, %s3280_s21  ;;  %p3289_p2 = scmp.lt.s32.totalorder %s3280_s21, %s3280_s21 }
  0x68   : > { %p3283_p11 = pnand %p3281_p9, %p3631_p12  ;;  %p3290_p4 = por %p3289_p2, %p3288_p1 }
  0x6a   : > { %p3284_p13 = pneg %p3283_p11 }
  0x6c   : > { %p3291_p8 = pnand %p3290_p4, %p3284_p13 }
  0x6e   : > { %3294 = shalt.err (!%p3291_p8)
}
  0x6f   : > { %3026 = dma.hbm_to_vmem [thread:$0]  (!%p3615_p10), %s4980_s4, 18432, %s249_s16, [#allocation9], %s4907_s18, %s4907_s18, %s4909_s19  }
  0x70   : > { %s3504_s25 = smov [#allocation11]   ;;  %s4981_s5 = sld [smem:[#allocation54_spill]] }
  0x71   : > { %s262_s8 = sshll.u32 %s3504_s25, 4  ;;  %s263_s8 = int_to_ptr.vmem [resolvable:$true] %s262_s8 }
  0x76   : > { %s3295_s13 = scalar_lea.hbm %s4981_s5, 16 }
  0x77   : > { %p3296_p4 = scmp.ne.s32.totalorder %s4981_s5, %s3295_s13  ;;  %p3302_p0 = scmp.lt.u32.totalorder %s3295_s13, %s4981_s5 }
  0x79   : > { %p3298_p8 = pnand %p3296_p4, %p3631_p12 }
  0x7b   : > { %p3299_p6 = pneg %p3298_p8 }
  0x7d   : > { %p3304_p3 = pnand %p3302_p0, %p3299_p6 }
  0x7f   : > { %3307 = shalt.err (!%p3304_p3)
}
  0x80   : > { %s3308_s16 = scalar_lea.vmem %s263_s8, 16  ;;  %s3315_s14 = scalar_lea.vmem %s263_s8, 32 }
  0x81   : > { %p3309_p5 = scmp.ne.s32.totalorder %s263_s8, %s3308_s16  ;;  %p3316_p11 = scmp.lt.s32.totalorder %s263_s8, %s263_s8 }
  0x82   : > { %p3317_p13 = scmp.lt.s32.totalorder %s3315_s14, %s3308_s16 }
  0x83   : > { %p3311_p7 = pnand %p3309_p5, %p3631_p12 }
  0x84   : > { %p3318_p1 = por %p3317_p13, %p3316_p11 }
  0x85   : > { %p3312_p9 = pneg %p3311_p7 }
  0x87   : > { %p3319_p2 = pnand %p3318_p1, %p3312_p9 }
  0x89   : > { %3322 = shalt.err (!%p3319_p2)
}
  0x8a   : > { %3029 = dma.hbm_to_vmem [thread:$0]  (!%p3615_p10), %s4981_s5, 16, %s263_s8, [#allocation12]  }
  0x8b   : > { %s36_s10 = sadd.s32 1, %s3489_s26  ;;  %s39_s20 = sadd.s32 1, %s3493_s27 }
  0x8c   : > { %p37_p12 = scmp.ge.s32.totalorder %s36_s10, 4  ;;  %s48_s12 = sadd.s32 1, %s3477_s23 }
  0x8d   : > { %p55_p4 = scmp.ne.s32.totalorder %s3477_s23, %s3473_s22  ;;  %p56_p8 = scmp.eq.s32.totalorder %s3497_s28, 0 }
  0x8e   : > { %s5172_s10 = smov (%p37_p12, %s36_s10), 0  ;;  %s5174_s20 = smov (!%p37_p12, %s39_s20), %s3493_s27 }
  0x8f   : > { %s44_s30 = ssub.s32 %s3489_s26, %s5172_s10  ;;  %p3730_p6 = por %p56_p8, %p55_p4 }
  0x90   : > { %p41_p10 = scmp.ge.s32.totalorder %s5174_s20, 2  ;;  %p4983_p0 = scmp.eq.s32.totalorder %s3586_s29, 7 }
  0x91   : > { %p3045_p5 = scmp.lt.s32.totalorder %s3497_s28, 8  ;;  %s3742_s15 = sand.u32 1, %s3477_s23  }
  0x92   : > { %p3736_p3 = por %p4983_p0, %p55_p4  ;;  %s5176_s20 = smov (%p41_p10, %s5174_s20), 0 }
  0x93   : > { %4985 = sst [smem:[#allocation23_spill]] %s5176_s20  ;;  %s2191_s17 = sshll.u32 %s3742_s15, 6 }
  0x94   : > { %s43_s11 = ssub.s32 %s3493_s27, %s5176_s20  ;;  %s2192_s16 = sshll.u32 %s3489_s26, 3 }
  0x95   : > { %s45_s21 = sor.u32 %s44_s30, %s43_s11  ;;  %s2193_s14 = sshll.u32 %s3493_s27, 5 }
  0x96   : > { %p46_p7 = scmp.eq.s32.totalorder %s45_s21, 0  ;;  %s283_s6 = sadd.s32 %s2193_s14, %s2192_s16 }
  0x97   : > { %s277_s25 = scalar_lea.vmem [#allocation2], %s2191_s17  ;;  %s2194_s2 = sshll.u32 %s283_s6, 7 }
  0x98   : > { %s286_s18 = sshll.u32 %s277_s25, 4  ;;  %s4986_s0 = sld [smem:[#allocation50_spill]]  ;;  %s3754_s18 = int_to_ptr.vmem [resolvable:$true] %s286_s18 }
  0x99   : > { %s3752_s19 = scalar_select %p46_p7, %s3477_s23, %s48_s12  }
  0x9a   : > { %p3765_p9 = pnand %p3045_p5, %p3730_p6  ;;  %s2195_s17 = sshll.u32 %s3742_s15, 5 }
  0x9b   : > { %s274_s11 = scalar_lea.sflag [#allocation3], %s3742_s15 }
  0x9c   : > { %p3325_p13 = pneg %p3765_p9 }
  0x9e   : > { %s3759_s5 = scalar_lea.hbm %s4986_s0, %s2194_s2  ;;  %s3328_s4 = scalar_lea.hbm %s4986_s0, 8192 }
  0x9f   : > { %s3323_s21 = scalar_lea.hbm %s3759_s5, 1024  ;;  %p3329_p12 = scmp.lt.u32.totalorder %s3759_s5, %s4986_s0 }
  0xa0   : > { %p3324_p11 = scmp.ne.s32.totalorder %s3759_s5, %s3323_s21  ;;  %p3330_p4 = scmp.lt.u32.totalorder %s3328_s4, %s3323_s21 }
  0xa1   : > { %p3332_p6 = scmp.lt.u32.totalorder %s3323_s21, %s3759_s5 }
  0xa2   : > { %p3326_p1 = pnand %p3325_p13, %p3324_p11  ;;  %p3331_p8 = por %p3330_p4, %p3329_p12 }
  0xa4   : > { %p3327_p2 = pneg %p3326_p1  ;;  %p3333_p10 = por %p3332_p6, %p3331_p8 }
  0xa6   : > { %p3334_p0 = pnand %p3333_p10, %p3327_p2 }
  0xa8   : > { %3337 = shalt.err (!%p3334_p0)
}
  0xa9   : > { %s3338_s14 = scalar_lea.vmem %s3754_s18, 1024  ;;  %s3505_s6 = smov [#allocation2]  }
  0xaa   : > { %p3339_p5 = scmp.ne.s32.totalorder %s3754_s18, %s3338_s14  ;;  %s3343_s25 = sshll.u32 %s3505_s6, 4  ;;  %s3344_s25 = int_to_ptr.vmem [resolvable:$false] %s3343_s25 }
  0xab   : > { %s3345_s2 = scalar_lea.vmem %s3344_s25, 2048  ;;  %p3346_p1 = scmp.lt.s32.totalorder %s3754_s18, %s3344_s25 }
  0xac   : > { %p3341_p7 = pnand %p3339_p5, %p3325_p13  ;;  %p3347_p12 = scmp.lt.s32.totalorder %s3345_s2, %s3338_s14 }
  0xae   : > { %p3342_p11 = pneg %p3341_p7  ;;  %p3348_p4 = por %p3347_p12, %p3346_p1 }
  0xb0   : > { %p3349_p8 = pnand %p3348_p4, %p3342_p11 }
  0xb2   : > { %3352 = shalt.err (!%p3349_p8)
}
  0xb3   : > { %s4988_s21 = smov 8   ;;  %s4989_s3 = smov 128  }
  0xb4   : > { %3033 = dma.hbm_to_vmem [thread:$0]  (!%p3765_p9), %s3759_s5, 1024, %s3754_s18, %s274_s11, %s4989_s3, %s4989_s3, %s4988_s21  }
  0xb5   : > { %s2196_s4 = sshll.u32 %s3489_s26, 2  ;;  %s2197_s13 = sshll.u32 %s3493_s27, 4 }
  0xb6   : > { %s300_s16 = scalar_lea.vmem [#allocation5], %s2195_s17  ;;  %s306_s6 = sadd.s32 %s2197_s13, %s2196_s4 }
  0xb7   : > { %s309_s14 = sshll.u32 %s300_s16, 4  ;;  %s2198_s25 = sshll.u32 %s306_s6, 7  ;;  %s3806_s14 = int_to_ptr.vmem [resolvable:$true] %s309_s14 }
  0xb8   : > { %s3811_s0 = scalar_lea.hbm %s4895_s1, %s2198_s25  ;;  %s4990_s20 = sand.u32 1, %s3497_s28  }
  0xb9   : > { %s3815_s5 = scalar_lea.sflag [#allocation6], %s4990_s20  ;;  %s3353_s18 = scalar_lea.hbm %s3811_s0, 512 }
  0xba   : > { %p3354_p2 = scmp.ne.s32.totalorder %s3811_s0, %s3353_s18  ;;  %s3358_s11 = scalar_lea.hbm %s4895_s1, 4096 }
  0xbb   : > { %p3359_p0 = scmp.lt.u32.totalorder %s3811_s0, %s4895_s1  ;;  %p3360_p5 = scmp.lt.u32.totalorder %s3358_s11, %s3353_s18 }
  0xbc   : > { %p3356_p6 = pnand %p3354_p2, %p3325_p13  ;;  %p3362_p11 = scmp.lt.u32.totalorder %s3353_s18, %s3811_s0 }
  0xbd   : > { %p3361_p7 = por %p3360_p5, %p3359_p0 }
  0xbe   : > { %p3357_p10 = pneg %p3356_p6 }
  0xbf   : > { %p3363_p1 = por %p3362_p11, %p3361_p7 }
  0xc1   : > { %p3364_p12 = pnand %p3363_p1, %p3357_p10 }
  0xc3   : > { %3367 = shalt.err (!%p3364_p12)
}
  0xc4   : > { %s3368_s20 = scalar_lea.vmem %s3806_s14, 512  ;;  %s3506_s13 = smov [#allocation5]  }
  0xc5   : > { %p3369_p4 = scmp.ne.s32.totalorder %s3806_s14, %s3368_s20  ;;  %s3373_s16 = sshll.u32 %s3506_s13, 4  ;;  %s3374_s16 = int_to_ptr.vmem [resolvable:$false] %s3373_s16 }
  0xc6   : > { %s3375_s6 = scalar_lea.vmem %s3374_s16, 1024  ;;  %p3376_p6 = scmp.lt.s32.totalorder %s3806_s14, %s3374_s16 }
  0xc7   : > { %p3371_p8 = pnand %p3369_p4, %p3325_p13  ;;  %p3377_p0 = scmp.lt.s32.totalorder %s3375_s6, %s3368_s20 }
  0xc9   : > { %p3372_p2 = pneg %p3371_p8  ;;  %p3378_p5 = por %p3377_p0, %p3376_p6 }
  0xcb   : > { %p3379_p7 = pnand %p3378_p5, %p3372_p2 }
  0xcd   : > { %3382 = shalt.err (!%p3379_p7)
}
  0xce   : > { %3036 = dma.hbm_to_vmem [thread:$0]  (!%p3765_p9), %s3811_s0, 512, %s3806_s14, %s3815_s5, %s4989_s3, %s4989_s3, %s4988_s21  }
  0xcf   : > { %p4991_p13 = scmp.ne.s32.totalorder %s4975_s9, 0 }
  0xd1   : > { %321 = sbr.rel (%p4991_p13) target bundleno = 927 (0x39f), region = 44 }
  0xd8   : > { %s3847_s25 = sand.u32 1, %s3473_s22   ;;  %p4992_p10 = scmp.ne.s32.totalorder %s4972_s7, 0 }
  0xd9   : > { %s2200_s2 = sshll.u32 %s3847_s25, 6  ;;  %s324_s18 = scalar_lea.sflag [#allocation3], %s3847_s25 }
  0xda   : > { %s3853_s30 = scalar_lea.vmem [#allocation2], %s2200_s2 }
  0xdb   : > { %3444 = dma.done.wait (%p4992_p10), %s324_s18, 1024  }
  0xdc   : > { %3446 = vsyncadd (%p4992_p10), %s324_s18, 4294966272  ;;  %s332_s0 = sand.u32 1, %s3586_s29   ;;  %s2201_s9 = sshll.u32 %s3847_s25, 5 }
  0xdd   : > { %s333_s21 = scalar_lea.sflag [#allocation6], %s332_s0  ;;  %s3861_s3 = scalar_lea.vmem [#allocation5], %s2201_s9 }
  0xde   : > { %3448 = dma.done.wait (%p4992_p10), %s333_s21, 512  }
  0xdf   : > { %3450 = vsyncadd (%p4992_p10), %s333_s21, 4294966784  ;;  %p4993_p9 = scmp.eq.s32.totalorder %s3586_s29, 0 }
  0xe1   : > { %3452 = dma.done.wait (%p4993_p9), [#allocation6], 2048   ;;  %p4994_p11 = pmov %p4993_p9 }
  0xe2   : > { %p4995_p1 = pmov %p4993_p9 }
  0xe3   : > { %3454 = vsyncadd (%p4994_p11), [#allocation6], 4294965248 }
  0xe4   : > { %3456 = dma.done.wait (%p4995_p1), [#allocation9], 18448   ;;  %p4996_p12 = pmov %p4995_p1 }
  0xe5   : > { %p4997_p4 = pmov %p4995_p1 }
  0xe6   : > { %3458 = vsyncadd (%p4996_p12), [#allocation9], 4294948848 }
  0xe7   : > { %3460 = dma.done.wait (%p4997_p4), [#allocation12], 16   ;;  %p4998_p8 = pmov %p4995_p1 }
  0xe8   : > { %v400_v0 = vld [vmem:[#allocation7] sm:$0xff]  ;;  %v401_v1 = vld [vmem:[#allocation7 + $0x8] sm:$0xff]  ;;  %v402_v2 = vld [vmem:[#allocation7 + $0x10] sm:$0xff]  ;;  %s2208_s29 = sshll.u32 %s3481_s24, 6  ;;  %s4809_s14 = scalar_lea.vmem [#allocation13], %s2200_s2 }
  0xe9   : > { %3462 = vsyncadd (%p4998_p8), [#allocation12], 4294967280  ;;  %v2715_v3 = vpack.c.bf16 %v401_v1, %v400_v0  ;;  %v403_v4 = vld [vmem:[#allocation7 + $0x18] sm:$0xff]  ;;  %v404_v6 = vld [vmem:[#allocation7 + $0x20] sm:$0xff]  ;;  %s2209_s7 = sadd.s32 4294967280, %s2208_s29  ;;  %s5158_s5 = sld [smem:[#allocation21_spill]] }
  0xea   : > { %v2719_v5 = vpack.c.bf16 %v403_v4, %v402_v2  ;;  %v405_v7 = vld [vmem:[#allocation7 + $0x28] sm:$0xff]  ;;  %v388_v9 = vld [vmem:[%s3861_s3] sm:$0xff]  ;;  %v406_v10 = vld [vmem:[#allocation7 + $0x30] sm:$0xff]  ;;  %s2260_s15 = sshll.u32 %s3481_s24, 3  ;;  %s2029_s24 = sshll.u32 %s4809_s14, 4  ;;  %s4832_s24 = int_to_ptr.vmem [resolvable:$true] %s2029_s24 }
  0xeb   : > { %2716 = vmatprep.subr.bf16.mxu0 %v2715_v3  ;;  %v2723_v8 = vpack.c.bf16 %v405_v7, %v404_v6  ;;  %v407_v11 = vld [vmem:[#allocation7 + $0x38] sm:$0xff]  ;;  %2565 = vmatprep.mubr.f32.mxu0 %v388_v9  ;;  %v408_v13 = vld [vmem:[#allocation7 + $0x40] sm:$0xff]  ;;  %v409_v14 = vld [vmem:[#allocation7 + $0x48] sm:$0xff]  ;;  %s5159_s13 = sld [smem:[#allocation55_spill]]  ;;  %s2014_s6 = scalar_lea.sflag [#allocation4], %s3847_s25 }
  0xec   : > { %2718 = vmatpush3.bf16.msra.mxu0 %v2715_v3  ;;  %v2727_v12 = vpack.c.bf16 %v407_v11, %v406_v10  ;;  %v2731_v15 = vpack.c.bf16 %v409_v14, %v408_v13  ;;  %v410_v16 = vld [vmem:[#allocation7 + $0x50] sm:$0xff]  ;;  %v411_v17 = vld [vmem:[#allocation7 + $0x58] sm:$0xff]  ;;  %v412_v19 = vld [vmem:[#allocation7 + $0x60] sm:$0xff]  ;;  %s3383_s2 = scalar_lea.vmem %s4832_s24, 1024  ;;  %s3507_s18 = smov [#allocation13]  }
  0xed   : > { %2720 = vmatprep.subr.bf16.mxu0 %v2719_v5  ;;  %v2735_v18 = vpack.c.bf16 %v411_v17, %v410_v16  ;;  %v413_v20 = vld [vmem:[#allocation7 + $0x68] sm:$0xff]  ;;  %v414_v22 = vld [vmem:[#allocation7 + $0x70] sm:$0xff]  ;;  %v415_v23 = vld [vmem:[#allocation7 + $0x78] sm:$0xff]  ;;  %p3384_p2 = scmp.ne.s32.totalorder %s4832_s24, %s3383_s2  ;;  %s3387_s0 = sshll.u32 %s3507_s18, 4  ;;  %s3388_s0 = int_to_ptr.vmem [resolvable:$false] %s3387_s0 }
  0xee   : > { %v2739_v21 = vpack.c.bf16 %v413_v20, %v412_v19  ;;  %v2743_v24 = vpack.c.bf16 %v415_v23, %v414_v22  ;;  %v389_v25 = vld [vmem:[%s3861_s3 + $0x8] sm:$0xff]  ;;  %v392_v26 = vld [vmem:[%s3853_s30] sm:$0xff]  ;;  %v394_v28 = vld [vmem:[%s3853_s30 + $0x10] sm:$0xff]  ;;  %s3389_s9 = scalar_lea.vmem %s3388_s0, 2048  ;;  %p3390_p5 = scmp.lt.s32.totalorder %s4832_s24, %s3388_s0 }
  0xef   : > { %v393_v27 = vld [vmem:[%s3853_s30 + $0x8] sm:$0xff]  ;;  %v395_v29 = vld [vmem:[%s3853_s30 + $0x18] sm:$0xff]  ;;  %v396_v30 = vld [vmem:[%s3853_s30 + $0x20] sm:$0xff]  ;;  %s2261_s17 = sshll.u32 %s5158_s5, 5  ;;  %p3385_p6 = pnand %p3384_p2, %p3736_p3 }
  0xf0   : > { %2722 = vmatpush3.bf16.msra.mxu0 %v2719_v5  ;;  %v397_v31 = vld [vmem:[%s3853_s30 + $0x28] sm:$0xff]  ;;  %v398_v32 = vld [vmem:[%s3853_s30 + $0x30] sm:$0xff]  ;;  %v399_v33 = vld [vmem:[%s3853_s30 + $0x38] sm:$0xff]  ;;  %s2026_s11 = sadd.s32 %s2261_s17, %s2260_s15  ;;  %p3391_p7 = scmp.lt.s32.totalorder %s3389_s9, %s3383_s2 }
  0xf1   : > { %2724 = vmatprep.subr.bf16.mxu0 %v2723_v8  ;;  %v390_v34 = vld [vmem:[%s3861_s3 + $0x10] sm:$0xff]  ;;  %v391_v35 = vld [vmem:[%s3861_s3 + $0x18] sm:$0xff]  ;;  %v1159_v36 = vld [vmem:[#allocation10 + $0x200] sm:$0xff]  ;;  %s2262_s12 = sshll.u32 %s2026_s11, 7  ;;  %p3386_p0 = pneg %p3385_p6 }
  0xf2   : > { %v1160_v37 = vld [vmem:[#allocation10 + $0x208] sm:$0xff]  ;;  %v1143_v39 = vld [vmem:[#allocation10 + $0x180] sm:$0xff]  ;;  %v1161_v44 = vld [vmem:[#allocation10 + $0x210] sm:$0xff]  ;;  %s4838_s16 = scalar_lea.hbm %s5159_s13, %s2262_s12  ;;  %p3392_p13 = por %p3391_p7, %p3390_p5 }
  0xf3   : > { %v2747_v38 = vpack.c.bf16 %v1160_v37, %v1159_v36  ;;  %v1144_v40 = vld [vmem:[#allocation10 + $0x188] sm:$0xff]  ;;  %v1175_v42 = vld [vmem:[#allocation10 + $0x280] sm:$0xff]  ;;  %v1162_v45 = vld [vmem:[#allocation10 + $0x218] sm:$0xff] }
  0xf4   : > { %2726 = vmatpush3.bf16.msra.mxu0 %v2723_v8  ;;  %v2749_v41 = vpack.c.bf16 %v1144_v40, %v1143_v39  ;;  %v1176_v43 = vld [vmem:[#allocation10 + $0x288] sm:$0xff]  ;;  %v2751_v47 = vpack.c.bf16 %v1162_v45, %v1161_v44  ;;  %v1145_v48 = vld [vmem:[#allocation10 + $0x190] sm:$0xff]  ;;  %v1146_v49 = vld [vmem:[#allocation10 + $0x198] sm:$0xff]  ;;  %p3393_p10 = pnand %p3392_p13, %p3386_p0 }
  0xf5   : > { %2728 = vmatprep.subr.bf16.mxu0 %v2727_v12  ;;  %2748 = vmatprep.subr.bf16.mxu1 %v2747_v38  ;;  %v2779_v46 = vpack.c.bf16 %v1176_v43, %v1175_v42  ;;  %v2753_v50 = vpack.c.bf16 %v1146_v49, %v1145_v48  ;;  %v1177_v51 = vld [vmem:[#allocation10 + $0x290] sm:$0xff]  ;;  %v1178_v52 = vld [vmem:[#allocation10 + $0x298] sm:$0xff]  ;;  %v1163_v53 = vld [vmem:[#allocation10 + $0x220] sm:$0xff] }
  0xf6   : > { %2750 = vmatpush3.bf16.msra.mxu1 %v2749_v41  ;;  %v1164_v54 = vld [vmem:[#allocation10 + $0x228] sm:$0xff]  ;;  %v2783_v55 = vpack.c.bf16 %v1178_v52, %v1177_v51  ;;  %v1147_v57 = vld [vmem:[#allocation10 + $0x1a0] sm:$0xff]  ;;  %v1165_v62 = vld [vmem:[#allocation10 + $0x230] sm:$0xff] }
  0xf7   : > { %2752 = vmatprep.subr.bf16.mxu1 %v2751_v47  ;;  %v2755_v56 = vpack.c.bf16 %v1164_v54, %v1163_v53  ;;  %v1148_v58 = vld [vmem:[#allocation10 + $0x1a8] sm:$0xff]  ;;  %v1179_v60 = vld [vmem:[#allocation10 + $0x2a0] sm:$0xff]  ;;  %v1166_v63 = vld [vmem:[#allocation10 + $0x238] sm:$0xff] }
  0xf8   : > { %2730 = vmatpush3.bf16.msra.mxu0 %v2727_v12  ;;  %v2757_v59 = vpack.c.bf16 %v1148_v58, %v1147_v57  ;;  %v1180_v61 = vld [vmem:[#allocation10 + $0x2a8] sm:$0xff]  ;;  %v2759_v1 = vpack.c.bf16 %v1166_v63, %v1165_v62  ;;  %v1149_v2 = vld [vmem:[#allocation10 + $0x1b0] sm:$0xff]  ;;  %v1150_v3 = vld [vmem:[#allocation10 + $0x1b8] sm:$0xff] }
  0xf9   : > { %2732 = vmatprep.subr.bf16.mxu0 %v2731_v15  ;;  %v2787_v0 = vpack.c.bf16 %v1180_v61, %v1179_v60  ;;  %v2761_v4 = vpack.c.bf16 %v1150_v3, %v1149_v2  ;;  %v1181_v5 = vld [vmem:[#allocation10 + $0x2b0] sm:$0xff]  ;;  %v1182_v6 = vld [vmem:[#allocation10 + $0x2b8] sm:$0xff]  ;;  %v1167_v7 = vld [vmem:[#allocation10 + $0x240] sm:$0xff] }
  0xfa   : > { %2754 = vmatpush3.bf16.msra.mxu1 %v2753_v50  ;;  %v1168_v8 = vld [vmem:[#allocation10 + $0x248] sm:$0xff]  ;;  %v2791_v9 = vpack.c.bf16 %v1182_v6, %v1181_v5  ;;  %v1151_v11 = vld [vmem:[#allocation10 + $0x1c0] sm:$0xff]  ;;  %v1169_v16 = vld [vmem:[#allocation10 + $0x250] sm:$0xff] }
  0xfb   : > { %2756 = vmatprep.subr.bf16.mxu1 %v2755_v56  ;;  %v2763_v10 = vpack.c.bf16 %v1168_v8, %v1167_v7  ;;  %v1152_v12 = vld [vmem:[#allocation10 + $0x1c8] sm:$0xff]  ;;  %v1183_v14 = vld [vmem:[#allocation10 + $0x2c0] sm:$0xff]  ;;  %v1170_v17 = vld [vmem:[#allocation10 + $0x258] sm:$0xff]  ;;  %v704_v56 = vlaneseq }
  0xfc   : > { %2734 = vmatpush3.bf16.msra.mxu0 %v2731_v15  ;;  %v2765_v13 = vpack.c.bf16 %v1152_v12, %v1151_v11  ;;  %v1184_v15 = vld [vmem:[#allocation10 + $0x2c8] sm:$0xff]  ;;  %v2767_v19 = vpack.c.bf16 %v1170_v17, %v1169_v16  ;;  %v1153_v20 = vld [vmem:[#allocation10 + $0x1d0] sm:$0xff]  ;;  %v1158_v39 = vld [vmem:[#allocation10 + $0x1f8] sm:$0xff]  ;;  %v3925_v11 = vstv %s2209_s7 }
  0xfd   : > { %2736 = vmatprep.subr.bf16.mxu0 %v2735_v18  ;;  %v1185_v23 = vld [vmem:[#allocation10 + $0x2d0] sm:$0xff]  ;;  %v1190_v42 = vld [vmem:[#allocation10 + $0x2f8] sm:$0xff]  ;;  %v1110_v44 = vld [vmem:[#allocation10 + $0x80] sm:$0xff] }
  0xfe   : > { %2758 = vmatpush3.bf16.msra.mxu1 %v2757_v59  ;;  %v1157_v38 = vld [vmem:[#allocation10 + $0x1f0] sm:$0xff]  ;;  %v1111_v45 = vld [vmem:[#allocation10 + $0x88] sm:$0xff]  ;;  %v1126_v47 = vld [vmem:[#allocation10 + $0x100] sm:$0xff] }
  0xff   : > { %2760 = vmatprep.subr.bf16.mxu1 %v2759_v1  ;;  %v2777_v40 = vpack.c.bf16 %v1158_v39, %v1157_v38  ;;  %v1189_v41 = vld [vmem:[#allocation10 + $0x2f0] sm:$0xff]  ;;  %v1127_v48 = vld [vmem:[#allocation10 + $0x108] sm:$0xff]  ;;  %v3894_v50 = vld [vmem:[#allocation8] ss:$0 sm:$0xff] }
 0x100   : > { %2738 = vmatpush3.bf16.msra.mxu0 %v2735_v18  ;;  %v2795_v18 = vpack.c.bf16 %v1184_v15, %v1183_v14  ;;  %v2807_v43 = vpack.c.bf16 %v1190_v42, %v1189_v41  ;;  %v3891_v49 = vpack.c.bf16 %v1127_v48, %v1126_v47 }
 0x101   : > { %2740 = vmatprep.subr.bf16.mxu0 %v2739_v21 }
 0x102   : > { %2762 = vmatpush3.bf16.msra.mxu1 %v2761_v4  ;;  %4999 = vst [vmem:[#allocation24_spill] sm:$0xff] %v3891_v49 }
 0x103   : > { %2764 = vmatprep.subr.bf16.mxu1 %v2763_v10 }
 0x104   : > { %2742 = vmatpush3.bf16.msra.mxu0 %v2739_v21  ;;  %v1154_v21 = vld [vmem:[#allocation10 + $0x1d8] sm:$0xff] }
 0x105   : > { %2744 = vmatprep.subr.bf16.mxu0 %v2743_v24  ;;  %v2769_v22 = vpack.c.bf16 %v1154_v21, %v1153_v20 }
 0x106   : > { %2766 = vmatpush3.bf16.msra.mxu1 %v2765_v13 }
 0x107   : > { %2768 = vmatprep.subr.bf16.mxu1 %v2767_v19 }
 0x108   : > { %2746 = vmatpush3.bf16.msra.mxu0 %v2743_v24  ;;  %v1186_v24 = vld [vmem:[#allocation10 + $0x2d8] sm:$0xff] }
 0x109   : > { %2780 = vmatprep.subr.bf16.mxu0 %v2779_v46 }
 0x10a   : > { %2770 = vmatpush3.bf16.msra.mxu1 %v2769_v22 }
 0x10b   : > { %2566 = vmatmul.mubr.f32.vlgmr.msra.gmra.mrb[0].mxu0 %v389_v25  ;;  %v1171_v25 = vld [vmem:[#allocation10 + $0x260] sm:$0xff] }
 0x10c   : > { %2568 = vmatprep.mubr.f32.mxu0 %v392_v26  ;;  %2782 = vmatpush3.bf16.msra.mxu0 %v2779_v46  ;;  %v1172_v26 = vld [vmem:[#allocation10 + $0x268] sm:$0xff]  ;;  %v2811_v46 = vpack.c.bf16 %v1111_v45, %v1110_v44 }
 0x10d   : > { %2784 = vmatprep.subr.bf16.mxu0 %v2783_v55 }
 0x10f   : > { %2569 = vmatmul.mubr.f32.gmra.mrb[2].mxu0 %v393_v27  ;;  %v2799_v27 = vpack.c.bf16 %v1186_v24, %v1185_v23 }
 0x110   : > { %2571 = vmatprep.mubr.f32.mxu0 %v394_v28  ;;  %2786 = vmatpush3.bf16.msra.mxu0 %v2783_v55  ;;  %v2771_v28 = vpack.c.bf16 %v1172_v26, %v1171_v25 }
 0x111   : > { %2788 = vmatprep.subr.bf16.mxu0 %v2787_v0 }
 0x112   : > { %2772 = vmatprep.subr.bf16.mxu1 %v2771_v28 }
 0x113   : > { %2572 = vmatmul.mubr.f32.gmra.mrb[4].mxu0 %v395_v29  ;;  %v1155_v29 = vld [vmem:[#allocation10 + $0x1e0] sm:$0xff] }
 0x114   : > { %2574 = vmatprep.mubr.f32.mxu0 %v396_v30  ;;  %2790 = vmatpush3.bf16.msra.mxu0 %v2787_v0  ;;  %v1156_v30 = vld [vmem:[#allocation10 + $0x1e8] sm:$0xff]  ;;  %v3911_v0 = vshrl.u32 %v704_v56, 7 }
 0x115   : > { %2792 = vmatprep.subr.bf16.mxu0 %v2791_v9 }
 0x116   : > { %v3928_v12 = vadd.s32 24, %v3911_v0  ;;  %v3932_v16 = vadd.s32 32, %v3911_v0  ;;  %v3941_v21 = vadd.s32 16, %v3911_v0  ;;  %v3949_v24 = vadd.s32 40, %v3911_v0 }
 0x117   : > { %2575 = vmatmul.mubr.f32.gmra.mrb[6].mxu0 %v397_v31  ;;  %v2773_v31 = vpack.c.bf16 %v1156_v30, %v1155_v29  ;;  %v3953_v25 = vadd.s32 %v3925_v11, %v3911_v0  ;;  %v3984_v45 = vadd.s32 64, %v3911_v0  ;;  %vm4931_vm13 = vcmp.lt.s32.totalorder %v3911_v0, 1 }
 0x118   : > { %2577 = vmatprep.mubr.f32.mxu0 %v398_v32  ;;  %2794 = vmatpush3.bf16.msra.mxu0 %v2791_v9  ;;  %v1187_v32 = vld [vmem:[#allocation10 + $0x2e0] sm:$0xff]  ;;  %v3922_v9 = vadd.s32 8, %v3911_v0  ;;  %v3957_v26 = vadd.s32 %v3925_v11, %v3928_v12  ;;  %v3962_v30 = vadd.s32 %v3925_v11, %v3932_v16  ;;  %v3975_v39 = vadd.s32 %v3925_v11, %v3941_v21 }
 0x119   : > { %2796 = vmatprep.subr.bf16.mxu0 %v2795_v18  ;;  %2774 = vmatpush3.bf16.msra.mxu1 %v2773_v31  ;;  %v3980_v42 = vadd.s32 %v3925_v11, %v3949_v24  ;;  %5003 = vst [vmem:[#allocation28_spill] sm:$0xff] %v3984_v45  ;;  %vm732_vm2 = vcmp.ge.s32.totalorder %v3953_v25, 0  ;;  %vm744_vm3 = vcmp.lt.s32.totalorder %v3953_v25, 256 }
 0x11a   : > { %5000 = vst [vmem:[#allocation25_spill] sm:$0xff] %v3922_v9  ;;  %v3945_v22 = vadd.s32 %v3925_v11, %v3922_v9  ;;  %vm735_vm4 = vcmp.ge.s32.totalorder %v3957_v26, 0  ;;  %vm747_vm5 = vcmp.lt.s32.totalorder %v3957_v26, 256  ;;  %vm734_vm6 = vcmp.ge.s32.totalorder %v3975_v39, 0  ;;  %vm4145_vm11 = vmand %vm732_vm2, %vm744_vm3 }
 0x11b   : > { %2578 = vmatmul.mubr.f32.gmra.mrb[8].mxu0 %v399_v33  ;;  %v1188_v33 = vld [vmem:[#allocation10 + $0x2e8] sm:$0xff]  ;;  %vm746_vm7 = vcmp.lt.s32.totalorder %v3975_v39, 256  ;;  %vm736_vm9 = vcmp.ge.s32.totalorder %v3962_v30, 0  ;;  %vm748_vm10 = vcmp.lt.s32.totalorder %v3962_v30, 256  ;;  %vm737_vm14 = vcmp.ge.s32.totalorder %v3980_v42, 0  ;;  %vm4184_vm2 = vmand %vm735_vm4, %vm747_vm5 }
 0x11c   : > { %2580 = vmatprep.mubr.f32.mxu0 %v390_v34  ;;  %2798 = vmatpush3.bf16.msra.mxu0 %v2795_v18  ;;  %v1173_v34 = vld [vmem:[#allocation10 + $0x270] sm:$0xff]  ;;  %v2803_v36 = vpack.c.bf16 %v1188_v33, %v1187_v32  ;;  %v3968_v33 = vadd.s32 72, %v3911_v0  ;;  %vm733_vm0 = vcmp.ge.s32.totalorder %v3945_v22, 0  ;;  %vm745_vm1 = vcmp.lt.s32.totalorder %v3945_v22, 256  ;;  %vm4203_vm3 = vmand %vm734_vm6, %vm746_vm7 }
 0x11d   : > { %2800 = vmatprep.subr.bf16.mxu0 %v2799_v27  ;;  %vm4130_vm8 = vmand %vm733_vm0, %vm745_vm1  ;;  %vm749_vm15 = vcmp.lt.s32.totalorder %v3980_v42, 256  ;;  %vm4933_vm4 = vcmp.lt.s32.totalorder %v3911_v0, 7  ;;  %v5051_v42 = vmov 0 }
 0x11e   : > { %5001 = vst [vmem:[#allocation26_spill] sm:$0xff] %v3968_v33  ;;  %vm4254_vm0 = vmand %vm736_vm9, %vm748_vm10 }
 0x11f   : > { %2581 = vmatmul.mubr.f32.gmra.mrb[10].mxu0 %v391_v35  ;;  %v1174_v35 = vld [vmem:[#allocation10 + $0x278] sm:$0xff]  ;;  %vm4290_vm9 = vmand %vm737_vm14, %vm749_vm15 }
 0x120   : > { %2802 = vmatpush3.bf16.msra.mxu0 %v2799_v27  ;;  %v2775_v37 = vpack.c.bf16 %v1174_v35, %v1173_v34 }
 0x121   : > { %2804 = vmatprep.subr.bf16.mxu0 %v2803_v36 }
 0x122   : > { %2776 = vmatprep.subr.bf16.mxu1 %v2775_v37 }
 0x123   : > { %2778 = vmatpush3.bf16.msra.mxu1 %v2777_v40 }
 0x124   : > { %2806 = vmatpush3.bf16.msra.mxu0 %v2803_v36  ;;  %2812 = vmatprep.subr.bf16.mxu1 %v2811_v46 }
 0x125   : > { %2808 = vmatprep.subr.bf16.mxu0 %v2807_v43 }
 0x128   : > { %2810 = vmatpush3.bf16.msra.mxu0 %v2807_v43 }
 0x129   : > { %2844 = vmatprep.subr.bf16.mxu0 %v3891_v49 }
 0x1de   : > { %v2567_v51 = vpop.f32.mrb[0].mxu0 }
 0x1df   : > { %v3897_v52 = vadd.f32 %v2567_v51, %v3894_v50  ;;  %v489_v53 = vpop.f32.mrb[1].mxu0 }
 0x1e0   : > { %v3900_v54 = vadd.f32 %v3894_v50, %v489_v53  ;;  %v3988_v53 = vadd.s32 %v3925_v11, %v3968_v33 }
 0x1e1   : > { %v549_v55 = vmin.f32 %v3897_v52, 20.0 }
 0x1e2   : > { %v548_v57 = vmin.f32 %v3900_v54, 20.0  ;;  %v2570_v58 = vpop.f32.mrb[2].mxu0 }
 0x1e3   : > { %v562_v59 = vmul.f32 1.442695, %v549_v55  ;;  %v3905_v60 = vadd.f32 %v2570_v58, %v3894_v50  ;;  %v499_v61 = vpop.f32.mrb[3].mxu0 }
 0x1e4   : > { %v560_v62 = vmul.f32 1.442695, %v548_v57  ;;  %v3909_v63 = vadd.f32 %v3894_v50, %v499_v61 }
 0x1e5   : > { %3123 = vpow2.f32 %v562_v59  ;;  %v551_v1 = vmin.f32 %v3905_v60, 20.0 }
 0x1e6   : > { %3125 = vpow2.f32 %v560_v62  ;;  %v550_v2 = vmin.f32 %v3909_v63, 20.0  ;;  %v2573_v3 = vpop.f32.mrb[4].mxu0 }
 0x1e7   : > { %v566_v4 = vmul.f32 1.442695, %v551_v1  ;;  %v3916_v5 = vadd.f32 %v2573_v3, %v3894_v50  ;;  %v509_v6 = vpop.f32.mrb[5].mxu0 }
 0x1e8   : > { %v564_v7 = vmul.f32 1.442695, %v550_v2  ;;  %v3919_v8 = vadd.f32 %v3894_v50, %v509_v6 }
 0x1e9   : > { %3127 = vpow2.f32 %v566_v4  ;;  %v553_v10 = vmin.f32 %v3916_v5, 20.0 }
 0x1ea   : > { %3129 = vpow2.f32 %v564_v7  ;;  %v552_v13 = vmin.f32 %v3919_v8, 20.0  ;;  %v2576_v14 = vpop.f32.mrb[6].mxu0  ;;  %v4004_v7 = vadd.s32 48, %v3911_v0 }
 0x1eb   : > { %v570_v15 = vmul.f32 1.442695, %v553_v10  ;;  %v3935_v17 = vadd.f32 %v2576_v14, %v3894_v50  ;;  %v519_v18 = vpop.f32.mrb[7].mxu0  ;;  %v4008_v14 = vadd.s32 88, %v3911_v0 }
 0x1ec   : > { %v568_v19 = vmul.f32 1.442695, %v552_v13  ;;  %v3938_v20 = vadd.f32 %v3894_v50, %v519_v18  ;;  %v4012_v18 = vld [vmem:[#allocation10 + $0x8] sm:$0xff] }
 0x1ed   : > { %3131 = vpow2.f32 %v570_v15  ;;  %v555_v23 = vmin.f32 %v3935_v17, 20.0  ;;  %5006 = vst [vmem:[#allocation31_spill] sm:$0xff] %v4008_v14  ;;  %v4010_v15 = vld [vmem:[#allocation10] sm:$0xff] }
 0x1ee   : > { %3133 = vpow2.f32 %v568_v19  ;;  %v554_v27 = vmin.f32 %v3938_v20, 20.0  ;;  %v2579_v28 = vpop.f32.mrb[8].mxu0 }
 0x1ef   : > { %v3124_v29 = vpop.eup %3123  ;;  %v574_v31 = vmul.f32 1.442695, %v555_v23  ;;  %v3965_v32 = vadd.f32 %v2579_v28, %v3894_v50  ;;  %v529_v34 = vpop.f32.mrb[9].mxu0 }
 0x1f0   : > { %v3126_v35 = vpop.eup %3125  ;;  %v585_v36 = vadd.f32 2.0, %v3124_v29  ;;  %v572_v37 = vmul.f32 1.442695, %v554_v27  ;;  %v3971_v38 = vadd.f32 %v3894_v50, %v529_v34 }
 0x1f1   : > { %v584_v40 = vadd.f32 2.0, %v3126_v35  ;;  %3135 = vpow2.f32 %v574_v31  ;;  %v557_v41 = vmin.f32 %v3965_v32, 20.0 }
 0x1f2   : > { %5002 = vst [vmem:[#allocation27_spill] sm:$0xff] %v3971_v38  ;;  %v597_v43 = vmul.f32 %v3124_v29, %v585_v36  ;;  %3137 = vpow2.f32 %v572_v37  ;;  %v556_v44 = vmin.f32 %v3971_v38, 20.0  ;;  %v2582_v46 = vpop.f32.mrb[10].mxu0  ;;  %v4022_v36 = vadd.s32 %v3925_v11, %v3984_v45  ;;  %v1130_v45 = vld [vmem:[#allocation10 + $0x120] sm:$0xff] }
 0x1f3   : > { %v3128_v47 = vpop.eup %3127  ;;  %v596_v48 = vmul.f32 %v3126_v35, %v584_v40  ;;  %v578_v51 = vmul.f32 1.442695, %v557_v41  ;;  %v3991_v55 = vadd.f32 %v2582_v46, %v3894_v50  ;;  %v539_v56 = vpop.f32.mrb[11].mxu0  ;;  %v4026_v40 = vld [vmem:[#allocation10 + $0x90] sm:$0xff]  ;;  %v4028_v41 = vld [vmem:[#allocation10 + $0x98] sm:$0xff] }
 0x1f4   : > { %v3130_v57 = vpop.eup %3129  ;;  %v3993_v58 = vadd.f32 2.0, %v597_v43  ;;  %v587_v59 = vadd.f32 2.0, %v3128_v47  ;;  %v576_v61 = vmul.f32 1.442695, %v556_v44  ;;  %v3996_v62 = vadd.f32 %v3894_v50, %v539_v56  ;;  %v4031_v46 = vld [vmem:[#allocation10 + $0x10] sm:$0xff] }
 0x1f5   : > { %5004 = vst [vmem:[#allocation29_spill] sm:$0xff] %v3991_v55  ;;  %v3998_v1 = vadd.f32 2.0, %v596_v48  ;;  %v586_v2 = vadd.f32 2.0, %v3130_v57  ;;  %3139 = vpow2.f32 %v578_v51  ;;  %v559_v3 = vmin.f32 %v3991_v55, 20.0  ;;  %5007 = vst [vmem:[#allocation32_spill] sm:$0xff] %v4031_v46 }
 0x1f6   : > { %5005 = vst [vmem:[#allocation30_spill] sm:$0xff] %v3996_v62  ;;  %3141 = vrcp.f32 %v3993_v58  ;;  %v599_v4 = vmul.f32 %v3128_v47, %v587_v59  ;;  %v558_v6 = vmin.f32 %v3996_v62, 20.0  ;;  %v4033_v47 = vld [vmem:[#allocation10 + $0x18] sm:$0xff]  ;;  %v4037_v48 = vadd.s32 %v3925_v11, %v4004_v7 }
 0x1f7   : > { %v3132_v10 = vpop.eup %3131  ;;  %3143 = vrcp.f32 %v3998_v1  ;;  %v598_v13 = vmul.f32 %v3130_v57, %v586_v2  ;;  %v582_v50 = vmul.f32 1.442695, %v559_v3  ;;  %v4040_v51 = vadd.s32 56, %v3911_v0  ;;  %v1128_v2 = vld [vmem:[#allocation10 + $0x110] sm:$0xff]  ;;  %v1129_v3 = vld [vmem:[#allocation10 + $0x118] sm:$0xff] }
 0x1f8   : > { %v3134_v19 = vpop.eup %3133  ;;  %v4014_v23 = vadd.f32 2.0, %v599_v4  ;;  %v589_v27 = vadd.f32 2.0, %v3132_v10  ;;  %3145 = vpow2.f32 %v576_v61  ;;  %v580_v28 = vmul.f32 1.442695, %v558_v6 }
 0x1f9   : > { %v4016_v29 = vadd.f32 2.0, %v598_v13  ;;  %v588_v31 = vadd.f32 2.0, %v3134_v19  ;;  %3147 = vpow2.f32 %v582_v50  ;;  %v4046_v61 = vadd.s32 %v3925_v11, %v4008_v14  ;;  %v4053_v50 = vld [vmem:[#allocation10 + $0xa0] sm:$0xff] }
 0x1fa   : > { %3149 = vrcp.f32 %v4014_v23  ;;  %v601_v35 = vmul.f32 %v3132_v10, %v589_v27  ;;  %5008 = vst [vmem:[#allocation33_spill] sm:$0xff] %v4053_v50  ;;  %v4057_v27 = vadd.s32 80, %v3911_v0  ;;  %v4074_v37 = vadd.s32 %v3925_v11, %v4040_v51 }
 0x1fb   : > { %v3136_v43 = vpop.eup %3135  ;;  %3151 = vrcp.f32 %v4016_v29  ;;  %v600_v44 = vmul.f32 %v3134_v19, %v588_v31  ;;  %v4061_v31 = vld [vmem:[#allocation10 + $0xa8] sm:$0xff]  ;;  %vm750_vm1 = vcmp.lt.s32.totalorder %v4037_v48, 256  ;;  %vm5050_vm10 = vcmp.ge.s32.totalorder %v4037_v48, 0 }
 0x1fc   : > { %v3138_v56 = vpop.eup %3137  ;;  %v4042_v57 = vadd.f32 2.0, %v601_v35  ;;  %v591_v59 = vadd.f32 2.0, %v3136_v43  ;;  %3153 = vpow2.f32 %v580_v28  ;;  %5009 = vst [vmem:[#allocation34_spill] sm:$0xff] %v4057_v27  ;;  %5010 = vst [vmem:[#allocation35_spill] sm:$0xff] %v4061_v31  ;;  %v4063_v35 = vld [vmem:[#allocation10 + $0x20] sm:$0xff]  ;;  %vm5053_vm15 = vcmp.lt.s32.totalorder %v4074_v37, 256 }
 0x1fd   : > { %v4048_v4 = vadd.f32 2.0, %v600_v44  ;;  %v590_v6 = vadd.f32 2.0, %v3138_v56  ;;  %5011 = vst [vmem:[#allocation36_spill] sm:$0xff] %v4063_v35  ;;  %v4065_v44 = vld [vmem:[#allocation10 + $0x28] sm:$0xff]  ;;  %vm4309_vm14 = vmand %vm5050_vm10, %vm750_vm1  ;;  %vm5060_vm10 = vcmp.lt.s32.totalorder %v3988_v53, 256 }
 0x1fe   : > { %3155 = vrcp.f32 %v4042_v57  ;;  %v603_v19 = vmul.f32 %v3136_v43, %v591_v59  ;;  %5012 = vst [vmem:[#allocation37_spill] sm:$0xff] %v4065_v44  ;;  %v4070_v59 = vpack.c.bf16 %v1129_v3, %v1128_v2  ;;  %v5052_v42 = vsel %vm4309_vm14, 4294967295, %v5051_v42 }
 0x1ff   : > { %v3140_v10 = vpop.eup %3139  ;;  %3157 = vrcp.f32 %v4048_v4  ;;  %v602_v43 = vmul.f32 %v3138_v56, %v590_v6  ;;  %v1131_v56 = vld [vmem:[#allocation10 + $0x128] sm:$0xff] }
 0x200   : > { %5013 = vst [vmem:[#allocation38_spill] sm:$0xff] %v4070_v59  ;;  %v3142_v28 = vpop.eup %3141  ;;  %v4078_v13 = vadd.f32 2.0, %v603_v19  ;;  %v593_v34 = vadd.f32 2.0, %v3140_v10  ;;  %v4089_v19 = vld [vmem:[#allocation10 + $0xb0] sm:$0xff]  ;;  %v4091_v59 = vld [vmem:[#allocation10 + $0xb8] sm:$0xff]  ;;  %v4102_v62 = vpack.c.bf16 %v1131_v56, %v1130_v45 }
 0x201   : > { %v3144_v2 = vpop.eup %3143  ;;  %v633_v3 = vmul.f32 %v3142_v28, %v3993_v58  ;;  %v4083_v6 = vadd.f32 2.0, %v602_v43  ;;  %5014 = vst [vmem:[#allocation39_spill] sm:$0xff] %v4089_v19  ;;  %5015 = vst [vmem:[#allocation40_spill] sm:$0xff] %v4091_v59  ;;  %v4097_v58 = vadd.s32 %v3925_v11, %v4057_v27 }
 0x202   : > { %v3146_v14 = vpop.eup %3145  ;;  %v632_v9 = vmul.f32 %v3144_v2, %v3998_v1  ;;  %3159 = vrcp.f32 %v4078_v13  ;;  %v605_v55 = vmul.f32 %v3140_v10, %v593_v34  ;;  %5016 = vst [vmem:[#allocation41_spill] sm:$0xff] %v4102_v62  ;;  %v4110_v10 = vld [vmem:[#allocation10 + $0x30] sm:$0xff] }
 0x203   : > { %v3148_v43 = vpop.eup %3147  ;;  %v645_v38 = vsub.f32 2.0, %v633_v3  ;;  %3161 = vrcp.f32 %v4083_v6  ;;  %v592_v33 = vadd.f32 2.0, %v3146_v14  ;;  %v4112_v3 = vld [vmem:[#allocation10 + $0x38] sm:$0xff] }
 0x204   : > { %v3150_v35 = vpop.eup %3149  ;;  %v644_v1 = vsub.f32 2.0, %v632_v9  ;;  %v4104_v44 = vadd.f32 2.0, %v605_v55  ;;  %v595_v34 = vadd.f32 2.0, %v3148_v43 }
 0x205   : > { %v3152_v27 = vpop.eup %3151  ;;  %v657_v50 = vmul.f32 %v3142_v28, %v645_v38  ;;  %v635_v45 = vmul.f32 %v3150_v35, %v4014_v23  ;;  %v604_v56 = vmul.f32 %v3146_v14, %v592_v33 }
 0x206   : > { %v3154_v55 = vpop.eup %3153  ;;  %v656_v62 = vmul.f32 %v3144_v2, %v644_v1  ;;  %v634_v31 = vmul.f32 %v3152_v27, %v4016_v29  ;;  %3163 = vrcp.f32 %v4104_v44  ;;  %v607_v49 = vmul.f32 %v3148_v43, %v595_v34  ;;  %v4155_v43 = vld [vmem:[#allocation10 + $0xc0] sm:$0xff] }
 0x207   : > { %v669_v46 = vmul.f32 2.0, %v657_v50  ;;  %v647_v11 = vsub.f32 2.0, %v635_v45  ;;  %v4118_v19 = vadd.f32 2.0, %v604_v56  ;;  %v594_v14 = vadd.f32 2.0, %v3154_v55 }
 0x208   : > { %v3156_v38 = vpop.eup %3155  ;;  %v668_v28 = vmul.f32 2.0, %v656_v62  ;;  %v646_v23 = vsub.f32 2.0, %v634_v31  ;;  %v4122_v33 = vadd.f32 2.0, %v607_v49  ;;  %v5029_v34 = vand.u32 15, %v3928_v12 }
 0x209   : > { %v3158_v9 = vpop.eup %3157  ;;  %v681_v2 = vsub.f32 1.0, %v669_v46  ;;  %v659_v1 = vmul.f32 %v3150_v35, %v647_v11  ;;  %v637_v29 = vmul.f32 %v3156_v38, %v4042_v57  ;;  %3165 = vrcp.f32 %v4118_v19 }
 0x20a   : > { %v680_v62 = vsub.f32 1.0, %v668_v28  ;;  %v658_v31 = vmul.f32 %v3152_v27, %v646_v23  ;;  %v636_v49 = vmul.f32 %v3158_v9, %v4048_v4  ;;  %3167 = vrcp.f32 %v4122_v33 }
 0x20b   : > { %v4139_v46 = vmul.f32 %v681_v2, %v3897_v52  ;;  %v671_v57 = vmul.f32 2.0, %v659_v1  ;;  %v649_v27 = vsub.f32 2.0, %v637_v29  ;;  %v5021_v4 = vand.u32 15, %v3941_v21  ;;  %v4157_v52 = vld [vmem:[#allocation10 + $0xc8] sm:$0xff] }
 0x20c   : > { %v5022_v35 = vmov 0  ;;  %v3160_v11 = vpop.eup %3159  ;;  %v4161_v25 = vmul.f32 %v680_v62, %v3900_v54  ;;  %v670_v45 = vmul.f32 2.0, %v658_v31  ;;  %v648_v56 = vsub.f32 2.0, %v636_v49  ;;  %v1133_v31 = vld [vmem:[#allocation10 + $0x138] sm:$0xff] }
 0x20d   : > { %vm4151_vm12 = vcmp.ge.s32.totalorder %v5021_v4, 1  ;;  %v606_v28 = vmul.f32 %v3154_v55, %v594_v14  ;;  %v3162_v21 = vpop.eup %3161  ;;  %v4169_v23 = vsel %vm4130_vm8, %v4139_v46, 0.0  ;;  %v683_v2 = vsub.f32 1.0, %v671_v57  ;;  %v1650_v57 = vld [vmem:[#allocation10 + $0x430] sm:$0xff] }
 0x20e   : > { %v5023_v35 = vsel %vm4151_vm12, 4294967295, %v5022_v35  ;;  %v661_v1 = vmul.f32 %v3156_v38, %v649_v27  ;;  %v639_v54 = vmul.f32 %v3160_v11, %v4078_v13  ;;  %v4930_v55 = vrot.slane %v4169_v23, 7 }
 0x20f   : > { %v4178_v14 = vsel %vm4145_vm11, %v4161_v25, 0.0  ;;  %v5024_v29 = vmov 0  ;;  %v682_v13 = vsub.f32 1.0, %v670_v45  ;;  %v4195_v49 = vmul.f32 %v683_v2, %v3905_v60 }
 0x210   : > { %v5025_v29 = vsel %vm4184_vm2, 4294967295, %v5024_v29  ;;  %v673_v26 = vmul.f32 2.0, %v661_v1  ;;  %v3164_v27 = vpop.eup %3163  ;;  %v660_v45 = vmul.f32 %v3158_v9, %v648_v56  ;;  %v651_v60 = vsub.f32 2.0, %v639_v54 }
 0x211   : > { %5026 = vst [vmem:[#allocation42_spill] sm:$0xff] %v5025_v29  ;;  %v4208_v4 = vmul.f32 %v682_v13, %v3909_v63  ;;  %v638_v2 = vmul.f32 %v3162_v21, %v4083_v6  ;;  %v4215_v1 = vsel %vm4184_vm2, %v4195_v49, 0.0  ;;  %v641_v38 = vmul.f32 %v3164_v27, %v4104_v44  ;;  %v5101_v29 = vld [vmem:[#allocation41_spill] sm:$0xff] }
 0x212   : > { %v685_v39 = vsub.f32 1.0, %v673_v26  ;;  %v4218_v59 = vadd.f32 2.0, %v606_v28  ;;  %vm4222_vm6 = vcmp.lt.s32.totalorder %v5029_v34, 15  ;;  %v5030_v63 = vmov 0 }
 0x213   : > { %v5031_v63 = vsel %vm4222_vm6, 4294967295, %v5030_v63  ;;  %v672_v9 = vmul.f32 2.0, %v660_v45  ;;  %v663_v6 = vmul.f32 %v3160_v11, %v651_v60  ;;  %v650_v56 = vsub.f32 2.0, %v638_v2  ;;  %2210 = vmatprep.mubr.msk.f32.mxu1 %vm4203_vm3, %v4208_v4  ;;  %v3166_v12 = vpop.eup %3165 }
 0x214   : > { %v4231_v54 = vsel %vm4203_vm3, %v4208_v4, 0.0  ;;  %v4237_v44 = vmul.f32 %v685_v39, %v3916_v5  ;;  %v653_v34 = vsub.f32 2.0, %v641_v38  ;;  %3169 = vrcp.f32 %v4218_v59  ;;  %v3168_v28 = vpop.eup %3167 }
 0x215   : > { %v962_v11 = vrot.slane %v4231_v54, 7  ;;  %v684_v13 = vsub.f32 1.0, %v672_v9  ;;  %v675_v26 = vmul.f32 2.0, %v663_v6  ;;  %v662_v45 = vmul.f32 %v3162_v21, %v650_v56 }
 0x216   : > { %5032 = vst [vmem:[#allocation43_spill] sm:$0xff] %v4237_v44  ;;  %v640_v60 = vmul.f32 %v3166_v12, %v4118_v19  ;;  %v5033_v2 = vand.u32 15, %v3932_v16  ;;  %v5034_v5 = vmov 0  ;;  %v5037_v38 = vmov 0 }
 0x217   : > { %v5038_v38 = vsel %vm4254_vm0, 4294967295, %v5037_v38  ;;  %v665_v39 = vmul.f32 %v3164_v27, %v653_v34  ;;  %v643_v9 = vmul.f32 %v3168_v28, %v4122_v33  ;;  %v4936_v21 = vrot.slane %v4231_v54, 1 }
 0x218   : > { %vm4246_vm5 = vcmp.ge.s32.totalorder %v5033_v2, 1  ;;  %5039 = vst [vmem:[#allocation45_spill] sm:$0xff] %v5038_v38  ;;  %v4264_v16 = vsel %vm4931_vm13, %v4930_v55, %v962_v11  ;;  %v5040_v19 = vand.u32 15, %v3949_v24  ;;  %v5041_v6 = vmov 0 }
 0x219   : > { %v5035_v5 = vsel %vm4246_vm5, 4294967295, %v5034_v5  ;;  %v4273_v30 = vmul.f32 %v684_v13, %v3919_v8  ;;  %v687_v27 = vsub.f32 1.0, %v675_v26  ;;  %v674_v56 = vmul.f32 2.0, %v662_v45  ;;  %2211 = vmatmul.mubr.msk.f32.vlgmr.msra.gmra.mrb[0].mxu1 %vm4151_vm12, %v4264_v16 }
 0x21a   : > { %5036 = vst [vmem:[#allocation44_spill] sm:$0xff] %v5035_v5  ;;  %vm4268_vm7 = vcmp.lt.s32.totalorder %v5040_v19, 15  ;;  %v652_v33 = vsub.f32 2.0, %v640_v60  ;;  %v677_v34 = vmul.f32 2.0, %v665_v39  ;;  %v655_v2 = vsub.f32 2.0, %v643_v9  ;;  %2212 = vmatprep.mubr.msk.f32.mxu1 %vm4184_vm2, %v4195_v49 }
 0x21b   : > { %v5042_v6 = vsel %vm4268_vm7, 4294967295, %v5041_v6  ;;  %5044 = vst [vmem:[#allocation47_spill] sm:$0xff] %v4273_v30  ;;  %v1036_v55 = vrot.slane %v4215_v1, 1  ;;  %v5045_v24 = vpack.c.bf16 %v4012_v18, %v4010_v15  ;;  %v963_v8 = vrot.slane %v4215_v1, 7 }
 0x21c   : > { %5043 = vst [vmem:[#allocation46_spill] sm:$0xff] %v5042_v6  ;;  %v5046_v13 = vmov 0  ;;  %v4297_v26 = vsel %vm4254_vm0, %v4273_v30, 0.0  ;;  %v4300_v15 = vmul.f32 %v687_v27, %v3935_v17  ;;  %v686_v18 = vsub.f32 1.0, %v674_v56  ;;  %v1121_v6 = vld [vmem:[#allocation10 + $0xd8] sm:$0xff] }
 0x21d   : > { %2814 = vmatpush3.bf16.msra.mxu1 %v5045_v24  ;;  %v5047_v13 = vsel %vm4290_vm9, 4294967295, %v5046_v13  ;;  %v664_v45 = vmul.f32 %v3166_v12, %v652_v33  ;;  %v5049_v1 = vpack.c.bf16 %v4028_v41, %v4026_v40  ;;  %v1037_v60 = vrot.slane %v4297_v26, 1 }
 0x21e   : > { %5048 = vst [vmem:[#allocation48_spill] sm:$0xff] %v5047_v13  ;;  %v689_v39 = vsub.f32 1.0, %v677_v34  ;;  %v667_v9 = vmul.f32 %v3168_v28, %v655_v2  ;;  %v4318_v17 = vsel %vm4933_vm4, %v4936_v21, %v1036_v55  ;;  %vm5054_vm13 = vcmp.ge.s32.totalorder %v4074_v37, 0  ;;  %v3170_v24 = vpop.eup %3169  ;;  %v5092_v21 = vld [vmem:[#allocation36_spill] sm:$0xff] }
 0x21f   : > { %2816 = vmatprep.subr.bf16.mxu1 %v5049_v1  ;;  %vm4324_vm2 = vmand %vm5054_vm13, %vm5053_vm15  ;;  %v5057_v41 = vand.u32 15, %v4040_v51  ;;  %v4335_v12 = vmul.f32 %v686_v18, %v3938_v20  ;;  %vm5061_vm4 = vcmp.ge.s32.totalorder %v3988_v53, 0  ;;  %v676_v37 = vmul.f32 2.0, %v664_v45  ;;  %2615 = vmatprep.mubr.f32.mxu0 %v4318_v17  ;;  %v5073_v45 = vld [vmem:[#allocation24_spill] sm:$0xff] }
 0x220   : > { %vm4341_vm12 = vmand %vm5061_vm4, %vm5060_vm10  ;;  %vm5064_vm13 = vcmp.lt.s32.totalorder %v3911_v0, 1  ;;  %v4353_v20 = vsel %vm4290_vm9, %v4237_v44, 0.0  ;;  %v4356_v19 = vmul.f32 %v689_v39, %v3965_v32  ;;  %v679_v53 = vmul.f32 2.0, %v667_v9  ;;  %v5067_v32 = vld [vmem:[#allocation32_spill] sm:$0xff]  ;;  %v5075_v9 = vld [vmem:[#allocation27_spill] sm:$0xff] }
 0x221   : > { %vm4330_vm1 = vcmp.lt.s32.totalorder %v5057_v41, 15  ;;  %v4348_v51 = vsel %vm5064_vm13, %v962_v11, %v963_v8  ;;  %vm5066_vm4 = vcmp.lt.s32.totalorder %v3911_v0, 7  ;;  %v1038_v56 = vrot.slane %v4353_v20, 1 }
 0x222   : > { %5065 = vst [vmem:[#allocation49_spill] sm:$0xff] %v4348_v51  ;;  %1261 = vmatmul.mubr.f32.gmra.mrb[2].mxu1 %v4348_v51  ;;  %v4361_v27 = vsel %vm5066_vm4, %v1036_v55, %v1037_v60  ;;  %v688_v33 = vsub.f32 1.0, %v676_v37  ;;  %v5068_v11 = vpack.c.bf16 %v4033_v47, %v5067_v32  ;;  %v964_v34 = vrot.slane %v4297_v26, 7  ;;  %v1135_v51 = vld [vmem:[#allocation10 + $0x148] sm:$0xff] }
 0x223   : > { %2616 = vmatmul.mubr.msk.f32.vlgmr.msra.gmra.mrb[12].mxu0 %vm4222_vm6, %v4361_v27  ;;  %v4376_v55 = vsel %vm4309_vm14, %v4335_v12, 0.0  ;;  %v4381_v2 = vsel %vm4324_vm2, %v4300_v15, 0.0  ;;  %v4386_v18 = vsel %vm4341_vm12, %v4356_v19, 0.0  ;;  %vm5069_vm13 = vcmp.lt.s32.totalorder %v4022_v36, 256  ;;  %2213 = vmatprep.mubr.msk.f32.mxu1 %vm4254_vm0, %v4273_v30 }
 0x224   : > { %2818 = vmatpush3.bf16.msra.mxu1 %v5068_v11  ;;  %vm5070_vm4 = vcmp.ge.s32.totalorder %v4022_v36, 0  ;;  %v691_v26 = vsub.f32 1.0, %v679_v53  ;;  %2846 = vmatpush3.bf16.msra.mxu0 %v5073_v45  ;;  %vm5074_vm10 = vcmp.lt.s32.totalorder %v3911_v0, 7  ;;  %v1039_v39 = vrot.slane %v4376_v55, 1  ;;  %v5081_v53 = vld [vmem:[#allocation35_spill] sm:$0xff]  ;;  %v5086_v45 = vld [vmem:[#allocation29_spill] sm:$0xff] }
 0x225   : > { %vm4392_vm15 = vmand %vm5070_vm4, %vm5069_vm13  ;;  %v4402_v1 = vsel %vm5074_vm10, %v1037_v60, %v1038_v56  ;;  %v4406_v41 = vmul.f32 %v688_v33, %v5075_v9  ;;  %vm5076_vm13 = vcmp.lt.s32.totalorder %v4046_v61, 256  ;;  %vm5077_vm4 = vcmp.ge.s32.totalorder %v4046_v61, 0  ;;  %v5082_v60 = vld [vmem:[#allocation33_spill] sm:$0xff]  ;;  %v5088_v9 = vld [vmem:[#allocation38_spill] sm:$0xff] }
 0x226   : > { %vm4412_vm6 = vmand %vm5077_vm4, %vm5076_vm13  ;;  %v5078_v36 = vmov 0  ;;  %v642_v37 = vmul.f32 %v3170_v24, %v4218_v59  ;;  %2618 = vmatprep.mubr.f32.mxu0 %v4402_v1  ;;  %v5083_v32 = vpack.c.bf16 %v5081_v53, %v5082_v60  ;;  %vm5084_vm10 = vcmp.lt.s32.totalorder %v3911_v0, 1  ;;  %2848 = vmatprep.subr.bf16.mxu0 %v5088_v9 }
 0x227   : > { %v5079_v36 = vsel %vm4412_vm6, 4294967295, %v5078_v36  ;;  %v4423_v33 = vsel %vm5084_vm10, %v963_v8, %v964_v34  ;;  %v1040_v11 = vrot.slane %v4381_v2, 1  ;;  %v4427_v61 = vmul.f32 %v691_v26, %v5086_v45  ;;  %v5091_v45 = vld [vmem:[#allocation37_spill] sm:$0xff] }
 0x228   : > { %5080 = vst [vmem:[#allocation32_spill] sm:$0xff] %v5079_v36  ;;  %2820 = vmatprep.subr.bf16.mxu1 %v5083_v32  ;;  %5085 = vst [vmem:[#allocation24_spill] sm:$0xff] %v4423_v33  ;;  %2214 = vmatmul.mubr.msk.f32.gmra.mrb[4].mxu1 %vm4246_vm5, %v4423_v33  ;;  %vm5089_vm13 = vcmp.lt.s32.totalorder %v3911_v0, 7  ;;  %v965_v53 = vrot.slane %v4353_v20, 7  ;;  %v960_v60 = vrot.slane %v4178_v14, 7  ;;  %v4443_v26 = vsel %vm4392_vm15, %v4406_v41, 0.0 }
 0x229   : > { %5087 = vst [vmem:[#allocation27_spill] sm:$0xff] %v4427_v61  ;;  %v4435_v59 = vsel %vm5089_vm13, %v1038_v56, %v1039_v39  ;;  %v654_v32 = vsub.f32 2.0, %v642_v37  ;;  %v5093_v56 = vpack.c.bf16 %v5091_v45, %v5092_v21  ;;  %vm5094_vm4 = vmmov %vm5089_vm13  ;;  %v1132_v8 = vld [vmem:[#allocation10 + $0x130] sm:$0xff]  ;;  %v4458_v62 = vsel %vm4412_vm6, %v4427_v61, 0.0  ;;  %2850 = vmatpush3.bf16.msra.mxu0 %v5088_v9  ;;  %2215 = vmatprep.mubr.msk.f32.mxu1 %vm4290_vm9, %v4237_v44  ;;  %v1102_v37 = vld [vmem:[#allocation10 + $0x40] sm:$0xff] }
 0x22a   : > { %5090 = vst [vmem:[#allocation35_spill] sm:$0xff] %v4435_v59  ;;  %2619 = vmatmul.mubr.msk.f32.gmra.mrb[14].mxu0 %vm4268_vm7, %v4435_v59  ;;  %v4453_v20 = vsel %vm5094_vm4, %v1039_v39, %v1040_v11  ;;  %v4466_v21 = vsel %vm5084_vm10, %v964_v34, %v965_v53  ;;  %v1041_v39 = vrot.slane %v4443_v26, 1  ;;  %v1103_v45 = vld [vmem:[#allocation10 + $0x48] sm:$0xff]  ;;  %v5096_v36 = vrot.slane %v4178_v14, 1  ;;  %vm5097_vm13 = vmmov %vm5094_vm4  ;;  %v1120_v9 = vld [vmem:[#allocation10 + $0xd0] sm:$0xff]  ;;  %2852 = vmatprep.subr.bf16.mxu0 %v5101_v29 }
 0x22b   : > { %2822 = vmatpush3.bf16.msra.mxu1 %v5093_v56  ;;  %v5095_v56 = vrot.slane %v4169_v23, 1  ;;  %v971_v13 = vrot.slane %v4458_v62, 7  ;;  %v4962_v44 = vrot.slane %v4458_v62, 1  ;;  %v666_v5 = vmul.f32 %v3170_v24, %v654_v32  ;;  %2621 = vmatprep.mubr.f32.mxu0 %v4453_v20  ;;  %v5098_v34 = vld [vmem:[#allocation40_spill] sm:$0xff]  ;;  %v5099_v33 = vld [vmem:[#allocation39_spill] sm:$0xff]  ;;  %vm5103_vm10 = vmmov %vm5094_vm4 }
 0x22c   : > { %v5100_v38 = vpack.c.bf16 %v5098_v34, %v5099_v33  ;;  %v966_v30 = vrot.slane %v4376_v55, 7  ;;  %v1134_v59 = vld [vmem:[#allocation10 + $0x140] sm:$0xff]  ;;  %1271 = vmatmul.mubr.f32.gmra.mrb[6].mxu1 %v4466_v21  ;;  %v5102_v24 = vrot.slane %v4386_v18, 1  ;;  %v5104_v55 = vand.u32 15, %v4004_v7 }
 0x22d   : > { %v4475_v61 = vsel %vm5097_vm13, %v5096_v36, %v5095_v56  ;;  %v4488_v36 = vsel %vm5094_vm4, %v1040_v11, %v1041_v39  ;;  %v678_v56 = vmul.f32 2.0, %v666_v5  ;;  %v5107_v11 = vpack.c.bf16 %v4112_v3, %v4110_v10  ;;  %2854 = vmatpush3.bf16.msra.mxu0 %v5101_v29  ;;  %2216 = vmatprep.mubr.msk.f32.mxu1 %vm4309_vm14, %v4335_v12 }
 0x22e   : > { %2824 = vmatprep.subr.bf16.mxu1 %v5100_v38  ;;  %v4494_v32 = vsel %vm5103_vm10, %v1041_v39, %v5102_v24  ;;  %v2855_v38 = vpack.c.bf16 %v1133_v31, %v1132_v8  ;;  %vm4498_vm13 = vcmp.ge.s32.totalorder %v5104_v55, 1  ;;  %2622 = vmatmul.mubr.msk.f32.gmra.mrb[16].mxu0 %vm4330_vm1, %v4488_v36  ;;  %v2829_v34 = vpack.c.bf16 %v1103_v45, %v1102_v37  ;;  %v1104_v39 = vld [vmem:[#allocation10 + $0x50] sm:$0xff]  ;;  %v1105_v37 = vld [vmem:[#allocation10 + $0x58] sm:$0xff] }
 0x22f   : > { %2826 = vmatpush3.bf16.msra.mxu1 %v5107_v11  ;;  %vm5108_vm4 = vcmp.lt.s32.totalorder %v3911_v0, 1  ;;  %v5109_v7 = vrot.slane %v4231_v54, 1  ;;  %v5110_v8 = vrot.slane %v4169_v23, 1  ;;  %v2831_v10 = vpack.c.bf16 %v1121_v6, %v1120_v9  ;;  %2624 = vmatprep.mubr.f32.mxu0 %v4494_v32  ;;  %v5122_v9 = vld [vmem:[#allocation30_spill] sm:$0xff]  ;;  %v5123_v11 = vld [vmem:[#allocation28_spill] sm:$0xff] }
 0x230   : > { %v4512_v31 = vsel %vm5108_vm4, %v971_v13, %v960_v60  ;;  %v2859_v3 = vpack.c.bf16 %v1135_v51, %v1134_v59  ;;  %v5111_v45 = vrot.slane %v4169_v23, 7  ;;  %v690_v24 = vsub.f32 1.0, %v678_v56  ;;  %v1122_v51 = vld [vmem:[#allocation10 + $0xe0] sm:$0xff]  ;;  %v1123_v59 = vld [vmem:[#allocation10 + $0xe8] sm:$0xff]  ;;  %2856 = vmatprep.subr.bf16.mxu0 %v2855_v38 }
 0x231   : > { %v4520_v5 = vsel %vm5103_vm10, %v5110_v8, %v5109_v7  ;;  %v5112_v29 = vpack.c.bf16 %v4157_v52, %v4155_v43  ;;  %vm5113_vm10 = vmmov %vm5108_vm4  ;;  %v967_v6 = vrot.slane %v4381_v2, 7  ;;  %v5114_v23 = vrot.slane %v4178_v14, 1  ;;  %v5121_v52 = vld [vmem:[#allocation26_spill] sm:$0xff]  ;;  %v1106_v8 = vld [vmem:[#allocation10 + $0x60] sm:$0xff]  ;;  %2858 = vmatpush3.bf16.msra.mxu0 %v2855_v38 }
 0x232   : > { %v4530_v54 = vsel %vm5108_vm4, %v960_v60, %v5111_v45  ;;  %v4538_v55 = vsel %vm5113_vm10, %v965_v53, %v966_v30  ;;  %vm5115_vm4 = vcmp.lt.s32.totalorder %v3911_v0, 7  ;;  %vm5117_vm6 = vcmp.lt.s32.totalorder %v4097_v58, 256  ;;  %v1136_v2 = vld [vmem:[#allocation10 + $0x150] sm:$0xff]  ;;  %v1137_v53 = vld [vmem:[#allocation10 + $0x158] sm:$0xff]  ;;  %2860 = vmatprep.subr.bf16.mxu0 %v2859_v3  ;;  %v5154_v48 = vld [vmem:[#allocation32_spill] sm:$0xff] }
 0x233   : > { %2828 = vmatprep.subr.bf16.mxu1 %v5112_v29  ;;  %v4547_v60 = vsel %vm5115_vm4, %v4962_v44, %v5114_v23  ;;  %vm5118_vm14 = vcmp.ge.s32.totalorder %v4097_v58, 0  ;;  %v5119_v43 = vmov 0  ;;  %2217 = vmatmul.mubr.msk.f32.gmra.mrb[8].mxu1 %vm4498_vm13, %v4538_v55  ;;  %v871_v14 = vand.u32 15, %v5121_v52  ;;  %v1107_v29 = vld [vmem:[#allocation10 + $0x68] sm:$0xff]  ;;  %v1124_v23 = vld [vmem:[#allocation10 + $0xf0] sm:$0xff]  ;;  %v1125_v52 = vld [vmem:[#allocation10 + $0xf8] sm:$0xff] }
 0x234   : > { %5116 = vst [vmem:[#allocation33_spill] sm:$0xff] %v4547_v60  ;;  %vm4553_vm9 = vmand %vm5118_vm14, %vm5117_vm6  ;;  %v4562_v56 = vmul.f32 %v690_v24, %v5122_v9  ;;  %2830 = vmatpush3.bf16.msra.mxu1 %v2829_v34  ;;  %2218 = vmatprep.mubr.msk.f32.mxu1 %vm4324_vm2, %v4300_v15  ;;  %v2833_v58 = vpack.c.bf16 %v1105_v37, %v1104_v39  ;;  %v864_v7 = vand.u32 15, %v5123_v11  ;;  %v968_v39 = vrot.slane %v4443_v26, 7  ;;  %v1645_v60 = vld [vmem:[#allocation10 + $0x408] sm:$0xff]  ;;  %v5153_v40 = vld [vmem:[#allocation27_spill] sm:$0xff] }
 0x235   : > { %v5120_v43 = vsel %vm4553_vm9, 4294967295, %v5119_v43  ;;  %2832 = vmatprep.subr.bf16.mxu1 %v2831_v10  ;;  %v2835_v45 = vpack.c.bf16 %v1123_v59, %v1122_v51  ;;  %vm5124_vm6 = vmmov %vm5113_vm10  ;;  %v2863_v9 = vpack.c.bf16 %v1137_v53, %v1136_v2  ;;  %vm4576_vm14 = vcmp.lt.s32.totalorder %v871_v14, 15  ;;  %v1138_v10 = vld [vmem:[#allocation10 + $0x160] sm:$0xff]  ;;  %v1139_v51 = vld [vmem:[#allocation10 + $0x168] sm:$0xff]  ;;  %2862 = vmatpush3.bf16.msra.mxu0 %v2859_v3 }
 0x236   : > { %v802_v24 = vsel %vm4553_vm9, %v4562_v56, 0.0  ;;  %v4573_v34 = vsel %vm5124_vm6, %v966_v30, %v967_v6  ;;  %v969_v59 = vrot.slane %v4386_v18, 7  ;;  %vm4585_vm10 = vcmp.ge.s32.totalorder %v864_v7, 1  ;;  %vm5130_vm9 = vmmov %vm5124_vm6 }
 0x237   : > { %v970_v37 = vrot.slane %v802_v24, 7  ;;  %v1043_v11 = vrot.slane %v802_v24, 1  ;;  %1281 = vmatmul.mubr.f32.gmra.mrb[10].mxu1 %v4573_v34  ;;  %v2837_v26 = vpack.c.bf16 %v1107_v29, %v1106_v8  ;;  %v2839_v14 = vpack.c.bf16 %v1125_v52, %v1124_v23  ;;  %v1108_v24 = vld [vmem:[#allocation10 + $0x70] sm:$0xff]  ;;  %2864 = vmatprep.subr.bf16.mxu0 %v2863_v9  ;;  %v1628_v8 = vld [vmem:[#allocation10 + $0x380] sm:$0xff]  ;;  %v1141_v52 = vld [vmem:[#allocation10 + $0x178] sm:$0xff] }
 0x238   : > { %2834 = vmatpush3.bf16.msra.mxu1 %v2833_v58  ;;  %2219 = vmatprep.mubr.msk.f32.mxu1 %vm4392_vm15, %v4406_v41  ;;  %v5129_v2 = vrot.slane %v4386_v18, 1  ;;  %v1109_v58 = vld [vmem:[#allocation10 + $0x78] sm:$0xff]  ;;  %v2867_v3 = vpack.c.bf16 %v1139_v51, %v1138_v10  ;;  %v5132_v29 = vrot.slane %v4458_v62, 1  ;;  %v808_v62 = vand.u32 15, %v3911_v0  ;;  %v1613_v10 = vld [vmem:[#allocation10 + $0x308] sm:$0xff] }
 0x239   : > { %2836 = vmatprep.subr.bf16.mxu1 %v2835_v45  ;;  %v4597_v44 = vsel %vm5124_vm6, %v969_v59, %v970_v37  ;;  %v4603_v7 = vsel %vm5130_vm9, %v970_v37, %v971_v13  ;;  %v1629_v45 = vld [vmem:[#allocation10 + $0x388] sm:$0xff]  ;;  %v1140_v13 = vld [vmem:[#allocation10 + $0x170] sm:$0xff]  ;;  %2866 = vmatpush3.bf16.msra.mxu0 %v2863_v9 }
 0x23a   : > { %v4593_v53 = vsel %vm5115_vm4, %v5129_v2, %v1043_v11  ;;  %vm5131_vm4 = vmmov %vm5124_vm6  ;;  %vm5133_vm6 = vcmp.lt.s32.totalorder %v3911_v0, 7  ;;  %v2875_v37 = vpack.c.bf16 %v1629_v45, %v1628_v8  ;;  %2868 = vmatprep.subr.bf16.mxu0 %v2867_v3  ;;  %v2871_v51 = vpack.c.bf16 %v1141_v52, %v1140_v13  ;;  %v1630_v2 = vld [vmem:[#allocation10 + $0x390] sm:$0xff]  ;;  %v1632_v8 = vld [vmem:[#allocation10 + $0x3a0] sm:$0xff] }
 0x23b   : > { %2625 = vmatmul.mubr.msk.f32.gmra.mrb[18].mxu0 %vm4576_vm14, %v4593_v53  ;;  %v4610_v18 = vsel %vm5131_vm4, %v967_v6, %v968_v39  ;;  %v4616_v23 = vsel %vm5133_vm6, %v1043_v11, %v5132_v29  ;;  %v2841_v6 = vpack.c.bf16 %v1109_v58, %v1108_v24  ;;  %v1612_v11 = vld [vmem:[#allocation10 + $0x300] sm:$0xff]  ;;  %vm5134_vm9 = vmmov %vm5131_vm4  ;;  %vm948_vm4 = vcmp.ge.s32.totalorder %v808_v62, 1  ;;  %v1615_v24 = vld [vmem:[#allocation10 + $0x318] sm:$0xff] }
 0x23c   : > { %2659 = vmatprep.mubr.f32.mxu0 %v4475_v61  ;;  %2220 = vmatmul.mubr.msk.f32.gmra.mrb[12].mxu1 %vm4585_vm10, %v4610_v18  ;;  %v4628_v61 = vsel %vm5134_vm9, %v968_v39, %v969_v59  ;;  %v1644_v29 = vld [vmem:[#allocation10 + $0x400] sm:$0xff]  ;;  %v2877_v9 = vpack.c.bf16 %v1613_v10, %v1612_v11  ;;  %v1614_v59 = vld [vmem:[#allocation10 + $0x310] sm:$0xff]  ;;  %v1633_v45 = vld [vmem:[#allocation10 + $0x3a8] sm:$0xff]  ;;  %vm5137_vm6 = vnez %v5031_v63 }
 0x23d   : > { %2838 = vmatpush3.bf16.msra.mxu1 %v2837_v26  ;;  %2221 = vmatprep.mubr.msk.f32.mxu1 %vm4341_vm12, %v4356_v19  ;;  %v1631_v26 = vld [vmem:[#allocation10 + $0x398] sm:$0xff]  ;;  %v4635_v58 = vpack.c.bf16 %v1645_v60, %v1644_v29  ;;  %v2881_v22 = vpack.c.bf16 %v1615_v24, %v1614_v59  ;;  %v1616_v13 = vld [vmem:[#allocation10 + $0x320] sm:$0xff]  ;;  %v1617_v52 = vld [vmem:[#allocation10 + $0x328] sm:$0xff]  ;;  %v2883_v60 = vpack.c.bf16 %v1633_v45, %v1632_v8 }
 0x23e   : > { %2840 = vmatprep.subr.bf16.mxu1 %v2839_v14  ;;  %2870 = vmatpush3.bf16.msra.mxu0 %v2867_v3  ;;  %v5135_v14 = vld [vmem:[#allocation25_spill] sm:$0xff]  ;;  %v2879_v39 = vpack.c.bf16 %v1631_v26, %v1630_v2  ;;  %v1647_v3 = vld [vmem:[#allocation10 + $0x418] sm:$0xff]  ;;  %v2885_v50 = vpack.c.bf16 %v1617_v52, %v1616_v13  ;;  %v1620_v26 = vld [vmem:[#allocation10 + $0x340] sm:$0xff] }
 0x23f   : > { %v815_v0 = vand.u32 15, %v5135_v14  ;;  %2872 = vmatprep.subr.bf16.mxu0 %v2871_v51  ;;  %v1635_v62 = vld [vmem:[#allocation10 + $0x3b8] sm:$0xff]  ;;  %v1618_v11 = vld [vmem:[#allocation10 + $0x330] sm:$0xff]  ;;  %v1621_v29 = vld [vmem:[#allocation10 + $0x348] sm:$0xff] }
 0x240   : > { %1291 = vmatmul.mubr.f32.gmra.mrb[14].mxu1 %v4628_v61  ;;  %v1619_v10 = vld [vmem:[#allocation10 + $0x338] sm:$0xff]  ;;  %v5140_v63 = vld [vmem:[#allocation49_spill] sm:$0xff]  ;;  %v2893_v59 = vpack.c.bf16 %v1621_v29, %v1620_v26  ;;  %v1652_v24 = vld [vmem:[#allocation10 + $0x440] sm:$0xff] }
 0x241   : > { %2842 = vmatpush3.bf16.msra.mxu1 %v2841_v6  ;;  %2226 = vmatprep.mubr.msk.f32.mxu1 %vm4145_vm11, %v4161_v25  ;;  %v1646_v25 = vld [vmem:[#allocation10 + $0x410] sm:$0xff]  ;;  %vm1022_vm11 = vcmp.lt.s32.totalorder %v815_v0, 15  ;;  %v2889_v2 = vpack.c.bf16 %v1619_v10, %v1618_v11  ;;  %v1639_v14 = vld [vmem:[#allocation10 + $0x3d8] sm:$0xff]  ;;  %v1653_v8 = vld [vmem:[#allocation10 + $0x448] sm:$0xff] }
 0x242   : > { %2876 = vmatprep.subr.bf16.mxu1 %v2875_v37  ;;  %2874 = vmatpush3.bf16.msra.mxu0 %v2871_v51  ;;  %v1634_v6 = vld [vmem:[#allocation10 + $0x3b0] sm:$0xff]  ;;  %v1649_v37 = vld [vmem:[#allocation10 + $0x428] sm:$0xff]  ;;  %v1636_v51 = vld [vmem:[#allocation10 + $0x3c0] sm:$0xff] }
 0x243   : > { %2908 = vmatprep.subr.bf16.mxu0 %v4635_v58  ;;  %v5141_v0 = vld [vmem:[#allocation35_spill] sm:$0xff]  ;;  %v1641_v52 = vld [vmem:[#allocation10 + $0x3e8] sm:$0xff] }
 0x244   : > { %2227 = vmatmul.mubr.msk.f32.vlgmr.msra.gmra.mrb[16].mxu1 %vm948_vm4, %v4512_v31  ;;  %v4643_v31 = vpack.c.bf16 %v1647_v3, %v1646_v25  ;;  %v1623_v45 = vld [vmem:[#allocation10 + $0x358] sm:$0xff]  ;;  %v1640_v13 = vld [vmem:[#allocation10 + $0x3e0] sm:$0xff]  ;;  %v1657_v29 = vld [vmem:[#allocation10 + $0x468] sm:$0xff]  ;;  %vm5150_vm4 = vnez %v5052_v42 }
 0x245   : > { %2878 = vmatpush3.bf16.msra.mxu1 %v2877_v9  ;;  %2228 = vmatprep.mubr.msk.f32.mxu1 %vm4130_vm8, %v4139_v46  ;;  %v1648_v46 = vld [vmem:[#allocation10 + $0x420] sm:$0xff]  ;;  %vm5136_vm8 = vnez %v5023_v35  ;;  %v5138_v35 = vld [vmem:[#allocation42_spill] sm:$0xff]  ;;  %v2899_v11 = vpack.c.bf16 %v1641_v52, %v1640_v13 }
 0x246   : > { %2880 = vmatprep.subr.bf16.mxu1 %v2879_v39  ;;  %2660 = vmatmul.mubr.msk.f32.vlgmr.msra.gmra.mrb[12].mxu0 %vm1022_vm11, %v4520_v5  ;;  %v4655_v5 = vpack.c.bf16 %v1649_v37, %v1648_v46  ;;  %v1638_v9 = vld [vmem:[#allocation10 + $0x3d0] sm:$0xff]  ;;  %v1655_v46 = vld [vmem:[#allocation10 + $0x458] sm:$0xff]  ;;  %v1624_v10 = vld [vmem:[#allocation10 + $0x360] sm:$0xff] }
 0x247   : > { %2662 = vmatprep.mubr.f32.mxu0 %v4318_v17  ;;  %2910 = vmatpush3.bf16.msra.mxu0 %v4635_v58  ;;  %v1637_v17 = vld [vmem:[#allocation10 + $0x3c8] sm:$0xff]  ;;  %v2895_v3 = vpack.c.bf16 %v1639_v14, %v1638_v9  ;;  %v1656_v26 = vld [vmem:[#allocation10 + $0x460] sm:$0xff]  ;;  %v1658_v14 = vld [vmem:[#allocation10 + $0x470] sm:$0xff] }
 0x248   : > { %1471 = vmatmul.mubr.f32.gmra.mrb[18].mxu1 %v4530_v54  ;;  %v2887_v54 = vpack.c.bf16 %v1635_v62, %v1634_v6  ;;  %2912 = vmatprep.subr.bf16.mxu0 %v4643_v31  ;;  %v4681_v62 = vpack.c.bf16 %v1653_v8, %v1652_v24  ;;  %v2931_v9 = vpack.c.bf16 %v1657_v29, %v1656_v26 }
 0x249   : > { %2882 = vmatpush3.bf16.msra.mxu1 %v2881_v22  ;;  %2229 = vmatprep.mubr.msk.f32.mxu1 %vm4203_vm3, %v4208_v4  ;;  %v1651_v4 = vld [vmem:[#allocation10 + $0x438] sm:$0xff]  ;;  %vm5139_vm3 = vnez %v5138_v35 }
 0x24a   : > { %2884 = vmatprep.subr.bf16.mxu1 %v2883_v60  ;;  %2663 = vmatmul.mubr.msk.f32.gmra.mrb[14].mxu0 %vm5137_vm6, %v4361_v27  ;;  %v4667_v27 = vpack.c.bf16 %v1651_v4, %v1650_v57  ;;  %v5143_v22 = vld [vmem:[#allocation47_spill] sm:$0xff]  ;;  %v5145_v60 = vld [vmem:[#allocation24_spill] sm:$0xff]  ;;  %v1642_v57 = vld [vmem:[#allocation10 + $0x3f0] sm:$0xff] }
 0x24b   : > { %2665 = vmatprep.mubr.f32.mxu0 %v4402_v1  ;;  %2914 = vmatpush3.bf16.msra.mxu0 %v4643_v31  ;;  %v1643_v4 = vld [vmem:[#allocation10 + $0x3f8] sm:$0xff] }
 0x24c   : > { %2230 = vmatmul.mubr.msk.f32.gmra.mrb[20].mxu1 %vm5136_vm8, %v4264_v16  ;;  %v2891_v16 = vpack.c.bf16 %v1637_v17, %v1636_v51  ;;  %2916 = vmatprep.subr.bf16.mxu0 %v4655_v5  ;;  %v5147_v51 = vld [vmem:[#allocation43_spill] sm:$0xff]  ;;  %v5148_v17 = vld [vmem:[#allocation48_spill] sm:$0xff]  ;;  %v2903_v35 = vpack.c.bf16 %v1643_v4, %v1642_v57 }
 0x24d   : > { %2886 = vmatpush3.bf16.msra.mxu1 %v2885_v50  ;;  %2231 = vmatprep.mubr.msk.f32.mxu1 %vm5139_vm3, %v4195_v49  ;;  %v1622_v49 = vld [vmem:[#allocation10 + $0x350] sm:$0xff]  ;;  %vm5149_vm9 = vnez %v5148_v17 }
 0x24e   : > { %2888 = vmatprep.subr.bf16.mxu1 %v2887_v54  ;;  %2666 = vmatmul.mubr.msk.f32.gmra.mrb[16].mxu0 %vm4268_vm7, %v5141_v0  ;;  %v1654_v50 = vld [vmem:[#allocation10 + $0x450] sm:$0xff]  ;;  %v2897_v37 = vpack.c.bf16 %v1623_v45, %v1622_v49  ;;  %v1625_v54 = vld [vmem:[#allocation10 + $0x368] sm:$0xff] }
 0x24f   : > { %2668 = vmatprep.mubr.f32.mxu0 %v4453_v20  ;;  %2918 = vmatpush3.bf16.msra.mxu0 %v4655_v5 }
 0x250   : > { %1481 = vmatmul.mubr.f32.gmra.mrb[22].mxu1 %v5140_v63  ;;  %2920 = vmatprep.subr.bf16.mxu0 %v4667_v27  ;;  %v1627_v63 = vld [vmem:[#allocation10 + $0x378] sm:$0xff] }
 0x251   : > { %2890 = vmatpush3.bf16.msra.mxu1 %v2889_v2  ;;  %2232 = vmatprep.mubr.msk.f32.mxu1 %vm4254_vm0, %v5143_v22  ;;  %v2927_v2 = vpack.c.bf16 %v1655_v46, %v1654_v50 }
 0x252   : > { %2892 = vmatprep.subr.bf16.mxu1 %v2891_v16  ;;  %2669 = vmatmul.mubr.msk.f32.gmra.mrb[18].mxu0 %vm4330_vm1, %v4488_v36  ;;  %v1626_v16 = vld [vmem:[#allocation10 + $0x370] sm:$0xff] }
 0x253   : > { %2922 = vmatpush3.bf16.msra.mxu0 %v4667_v27  ;;  %2703 = vmatprep.mubr.f32.mxu0 %v4402_v1  ;;  %v2901_v1 = vpack.c.bf16 %v1625_v54, %v1624_v10  ;;  %v2905_v24 = vpack.c.bf16 %v1627_v63, %v1626_v16 }
 0x254   : > { %2233 = vmatmul.mubr.msk.f32.gmra.mrb[24].mxu1 %vm4246_vm5, %v5145_v60  ;;  %2924 = vmatprep.subr.bf16.mxu0 %v4681_v62 }
 0x255   : > { %2894 = vmatpush3.bf16.msra.mxu1 %v2893_v59  ;;  %2234 = vmatprep.mubr.msk.f32.mxu1 %vm5149_vm9, %v5147_v51  ;;  %v1659_v59 = vld [vmem:[#allocation10 + $0x478] sm:$0xff] }
 0x256   : > { %2896 = vmatprep.subr.bf16.mxu1 %v2895_v3  ;;  %v2935_v8 = vpack.c.bf16 %v1659_v59, %v1658_v14 }
 0x257   : > { %2926 = vmatpush3.bf16.msra.mxu0 %v4681_v62 }
 0x258   : > { %1491 = vmatmul.mubr.f32.gmra.mrb[26].mxu1 %v4466_v21  ;;  %2928 = vmatprep.subr.bf16.mxu0 %v2927_v2 }
 0x259   : > { %2898 = vmatpush3.bf16.msra.mxu1 %v2897_v37  ;;  %2235 = vmatprep.mubr.msk.f32.mxu1 %vm5150_vm4, %v4335_v12 }
 0x25a   : > { %2900 = vmatprep.subr.bf16.mxu1 %v2899_v11 }
 0x25b   : > { %2930 = vmatpush3.bf16.msra.mxu0 %v2927_v2 }
 0x25c   : > { %2236 = vmatmul.mubr.msk.f32.gmra.mrb[28].mxu1 %vm4498_vm13, %v4538_v55  ;;  %2932 = vmatprep.subr.bf16.mxu0 %v2931_v9 }
 0x25d   : > { %2902 = vmatpush3.bf16.msra.mxu1 %v2901_v1  ;;  %2237 = vmatprep.mubr.msk.f32.mxu1 %vm4324_vm2, %v4300_v15 }
 0x25e   : > { %2904 = vmatprep.subr.bf16.mxu1 %v2903_v35 }
 0x25f   : > { %2934 = vmatpush3.bf16.msra.mxu0 %v2931_v9 }
 0x260   : > { %1501 = vmatmul.mubr.f32.gmra.mrb[30].mxu1 %v4573_v34  ;;  %2936 = vmatprep.subr.bf16.mxu0 %v2935_v8 }
 0x261   : > { %2906 = vmatpush3.bf16.msra.mxu1 %v2905_v24  ;;  %2242 = vmatprep.mubr.msk.f32.mxu1 %vm4254_vm0, %v5143_v22  ;;  %vm5152_vm0 = vnez %v5120_v43 }
 0x262   : > { %2939 = vmatprep.subr.bf16.mxu1 %v4635_v58 }
 0x263   : > { %2938 = vmatpush3.bf16.msra.mxu0 %v2935_v8 }
 0x264   : > { %2243 = vmatmul.mubr.msk.f32.vlgmr.msra.gmra.mrb[32].mxu1 %vm4246_vm5, %v5145_v60  ;;  %vm5155_vm5 = vnez %v5154_v48 }
 0x265   : > { %2947 = vmatpush3.bf16.msra.mxu1 %v4635_v58  ;;  %2244 = vmatprep.mubr.msk.f32.mxu1 %vm5149_vm9, %v5147_v51 }
 0x266   : > { %2940 = vmatprep.subr.bf16.mxu1 %v4643_v31  ;;  %2704 = vmatmul.mubr.msk.f32.vlgmr.msra.gmra.mrb[12].mxu0 %vm4268_vm7, %v5141_v0 }
 0x267   : > { %2706 = vmatprep.mubr.f32.mxu0 %v4453_v20 }
 0x268   : > { %1730 = vmatmul.mubr.f32.gmra.mrb[34].mxu1 %v4466_v21 }
 0x269   : > { %2948 = vmatpush3.bf16.msra.mxu1 %v4643_v31  ;;  %2245 = vmatprep.mubr.msk.f32.mxu1 %vm5150_vm4, %v4335_v12  ;;  %v5156_v12 = vld [vmem:[#allocation31_spill] sm:$0xff] }
 0x26a   : > { %2941 = vmatprep.subr.bf16.mxu1 %v4655_v5  ;;  %2707 = vmatmul.mubr.msk.f32.gmra.mrb[14].mxu0 %vm4330_vm1, %v4488_v36  ;;  %v885_v28 = vand.u32 15, %v5156_v12 }
 0x26c   : > { %2246 = vmatmul.mubr.msk.f32.gmra.mrb[36].mxu1 %vm4498_vm13, %v4538_v55 }
 0x26d   : > { %2949 = vmatpush3.bf16.msra.mxu1 %v4655_v5  ;;  %2247 = vmatprep.mubr.msk.f32.mxu1 %vm4324_vm2, %v4300_v15  ;;  %v5151_v15 = vld [vmem:[#allocation34_spill] sm:$0xff] }
 0x26e   : > { %2942 = vmatprep.subr.bf16.mxu1 %v4667_v27  ;;  %v878_v42 = vand.u32 15, %v5151_v15 }
 0x270   : > { %1740 = vmatmul.mubr.f32.gmra.mrb[38].mxu1 %v4573_v34  ;;  %vm958_vm2 = vcmp.ge.s32.totalorder %v878_v42, 1 }
 0x271   : > { %2950 = vmatpush3.bf16.msra.mxu1 %v4667_v27  ;;  %2248 = vmatprep.mubr.msk.f32.mxu1 %vm4392_vm15, %v4406_v41 }
 0x272   : > { %2943 = vmatprep.subr.bf16.mxu1 %v4681_v62 }
 0x274   : > { %2249 = vmatmul.mubr.msk.f32.gmra.mrb[40].mxu1 %vm4585_vm10, %v4610_v18 }
 0x275   : > { %2951 = vmatpush3.bf16.msra.mxu1 %v4681_v62  ;;  %2250 = vmatprep.mubr.msk.f32.mxu1 %vm4341_vm12, %v4356_v19  ;;  %vm1032_vm12 = vcmp.lt.s32.totalorder %v885_v28, 15 }
 0x276   : > { %2944 = vmatprep.subr.bf16.mxu1 %v2927_v2 }
 0x278   : > { %1750 = vmatmul.mubr.f32.gmra.mrb[42].mxu1 %v4628_v61 }
 0x279   : > { %2952 = vmatpush3.bf16.msra.mxu1 %v2927_v2  ;;  %2251 = vmatprep.mubr.msk.f32.mxu1 %vm5152_vm0, %v4562_v56 }
 0x27a   : > { %2945 = vmatprep.subr.bf16.mxu1 %v2931_v9 }
 0x27c   : > { %2252 = vmatmul.mubr.msk.f32.gmra.mrb[44].mxu1 %vm958_vm2, %v4597_v44  ;;  %v5157_v44 = vld [vmem:[#allocation33_spill] sm:$0xff] }
 0x27d   : > { %2953 = vmatpush3.bf16.msra.mxu1 %v2931_v9  ;;  %2253 = vmatprep.mubr.msk.f32.mxu1 %vm5155_vm5, %v5153_v40 }
 0x27e   : > { %2946 = vmatprep.subr.bf16.mxu1 %v2935_v8 }
 0x280   : > { %1760 = vmatmul.mubr.f32.gmra.mrb[46].mxu1 %v4603_v7 }
 0x281   : > { %2954 = vmatpush3.bf16.msra.mxu1 %v2935_v8  ;;  %2709 = vmatprep.mubr.f32.mxu1 %v4494_v32 }
 0x284   : > { %2710 = vmatmul.mubr.msk.f32.vlgmr.msra.gmra.mrb[48].mxu1 %vm4576_vm14, %v4593_v53 }
 0x285   : > { %2712 = vmatprep.mubr.f32.mxu1 %v4616_v23 }
 0x288   : > { %2713 = vmatmul.mubr.msk.f32.gmra.mrb[50].mxu1 %vm1032_vm12, %v5157_v44 }
 0x2ec   : > { %v2325_v19 = vpop.f32.mrb[0].mxu1 }
 0x2ed   : > { %v2326_v47 = vpop.f32.mrb[1].mxu1 }
 0x2ee   : > { %v2327_v41 = vadd.f32 %v2326_v47, %v2325_v19 }
 0x2f5   : > { %v2328_v20 = vpop.f32.mrb[2].mxu1 }
 0x2f6   : > { %v2329_v21 = vpop.f32.mrb[3].mxu1 }
 0x2f7   : > { %v2330_v36 = vadd.f32 %v2329_v21, %v2328_v20 }
 0x2fb   : > { %v2331_v33 = vpop.f32.mrb[4].mxu1 }
 0x2fc   : > { %v2332_v55 = vpop.f32.mrb[5].mxu1 }
 0x2fd   : > { %v2333_v32 = vadd.f32 %v2332_v55, %v2331_v33 }
 0x2ff   : > { %v2334_v43 = vpop.f32.mrb[6].mxu1 }
 0x300   : > { %v2335_v56 = vpop.f32.mrb[7].mxu1 }
 0x301   : > { %v2336_v34 = vadd.f32 %v2335_v56, %v2334_v43 }
 0x306   : > { %v2337_v30 = vpop.f32.mrb[8].mxu1 }
 0x307   : > { %v2338_v38 = vpop.f32.mrb[9].mxu1 }
 0x308   : > { %v2339_v53 = vadd.f32 %v2338_v38, %v2337_v30 }
 0x30a   : > { %v2340_v7 = vpop.f32.mrb[10].mxu1 }
 0x30b   : > { %v2341_v18 = vpop.f32.mrb[11].mxu1 }
 0x30c   : > { %v2342_v23 = vadd.f32 %v2341_v18, %v2340_v7 }
 0x30f   : > { %v2343_v61 = vpop.f32.mrb[12].mxu1 }
 0x310   : > { %v2344_v58 = vpop.f32.mrb[13].mxu1 }
 0x311   : > { %v2345_v31 = vadd.f32 %v2344_v58, %v2343_v61 }
 0x313   : > { %v2346_v5 = vpop.f32.mrb[14].mxu1 }
 0x314   : > { %v2347_v27 = vpop.f32.mrb[15].mxu1 }
 0x315   : > { %v2348_v0 = vadd.f32 %v2347_v27, %v2346_v5 }
 0x317   : > { %v2405_v39 = vpop.f32.mrb[16].mxu1 }
 0x318   : > { %v2406_v49 = vpop.f32.mrb[17].mxu1 }
 0x319   : > { %v2407_v45 = vadd.f32 %v2406_v49, %v2405_v39 }
 0x31b   : > { %v2958_v22 = vadd.f32 %v2407_v45, %v2327_v41  ;;  %v2408_v25 = vpop.f32.mrb[18].mxu1 }
 0x31c   : > { %v2409_v3 = vpop.f32.mrb[19].mxu1 }
 0x31d   : > { %v2410_v13 = vadd.f32 %v2409_v3, %v2408_v25 }
 0x31f   : > { %v2955_v52 = vadd.f32 %v2410_v13, %v2330_v36  ;;  %v2411_v60 = vpop.f32.mrb[20].mxu1 }
 0x320   : > { %v2412_v6 = vpop.f32.mrb[21].mxu1 }
 0x321   : > { %v2413_v62 = vadd.f32 %v2412_v6, %v2411_v60  ;;  %v2667_v37 = vpop.f32.mrb[16].mxu0 }
 0x322   : > { %v1592_v10 = vpop.f32.mrb[17].mxu0 }
 0x323   : > { %v2964_v50 = vadd.f32 %v2413_v62, %v2333_v32  ;;  %v2414_v46 = vpop.f32.mrb[22].mxu1  ;;  %v4769_v32 = vld [vmem:[#allocation11] ss:$0 sm:$0xff] }
 0x324   : > { %v2415_v11 = vpop.f32.mrb[23].mxu1 }
 0x325   : > { %v2416_v54 = vadd.f32 %v2415_v11, %v2414_v46  ;;  %v2670_v2 = vpop.f32.mrb[18].mxu0 }
 0x326   : > { %v1602_v4 = vpop.f32.mrb[19].mxu0 }
 0x327   : > { %v2961_v51 = vadd.f32 %v2416_v54, %v2336_v34  ;;  %v2417_v17 = vpop.f32.mrb[24].mxu1 }
 0x328   : > { %v2418_v57 = vpop.f32.mrb[25].mxu1 }
 0x329   : > { %v2419_v26 = vadd.f32 %v2418_v57, %v2417_v17 }
 0x32b   : > { %v2971_v29 = vadd.f32 %v2419_v26, %v2339_v53  ;;  %v2420_v1 = vpop.f32.mrb[26].mxu1 }
 0x32c   : > { %v2421_v35 = vpop.f32.mrb[27].mxu1 }
 0x32d   : > { %v2422_v16 = vadd.f32 %v2421_v35, %v2420_v1  ;;  %v2972_v63 = vadd.f32 %v2971_v29, %v1592_v10 }
 0x32f   : > { %v2967_v9 = vadd.f32 %v2422_v16, %v2342_v23  ;;  %v2423_v14 = vpop.f32.mrb[28].mxu1 }
 0x330   : > { %v2424_v59 = vpop.f32.mrb[29].mxu1 }
 0x331   : > { %v2425_v24 = vadd.f32 %v2424_v59, %v2423_v14  ;;  %v2968_v8 = vadd.f32 %v2967_v9, %v2667_v37 }
 0x333   : > { %v2979_v15 = vadd.f32 %v2425_v24, %v2345_v31  ;;  %v2426_v42 = vpop.f32.mrb[30].mxu1 }
 0x334   : > { %v2427_v40 = vpop.f32.mrb[31].mxu1 }
 0x335   : > { %v2428_v48 = vadd.f32 %v2427_v40, %v2426_v42  ;;  %v2980_v12 = vadd.f32 %v2979_v15, %v1602_v4 }
 0x337   : > { %v2975_v28 = vadd.f32 %v2428_v48, %v2348_v0  ;;  %v2485_v44 = vpop.f32.mrb[32].mxu1 }
 0x338   : > { %v2486_v19 = vpop.f32.mrb[33].mxu1 }
 0x339   : > { %v2487_v47 = vadd.f32 %v2486_v19, %v2485_v44  ;;  %v4767_v41 = vadd.f32 %v2975_v28, %v2670_v2  ;;  %v2705_v36 = vpop.f32.mrb[12].mxu0 }
 0x33a   : > { %v1831_v55 = vpop.f32.mrb[13].mxu0 }
 0x33b   : > { %v2488_v20 = vpop.f32.mrb[34].mxu1  ;;  %v2959_v21 = vadd.f32 %v2958_v22, %v2487_v47 }
 0x33c   : > { %v2489_v33 = vpop.f32.mrb[35].mxu1 }
 0x33d   : > { %v2490_v43 = vadd.f32 %v2489_v33, %v2488_v20  ;;  %v2960_v56 = vadd.f32 %v2959_v21, %v1831_v55  ;;  %v2708_v53 = vpop.f32.mrb[14].mxu0 }
 0x33e   : > { %v1841_v23 = vpop.f32.mrb[15].mxu0 }
 0x33f   : > { %v2956_v34 = vadd.f32 %v2955_v52, %v2490_v43  ;;  %v2491_v30 = vpop.f32.mrb[36].mxu1  ;;  %v4772_v38 = vadd.f32 %v2960_v56, %v4769_v32 }
 0x340   : > { %v2492_v7 = vpop.f32.mrb[37].mxu1 }
 0x341   : > { %v2957_v18 = vadd.f32 %v2956_v34, %v2705_v36  ;;  %v2493_v61 = vadd.f32 %v2492_v7, %v2491_v30  ;;  %v1893_v58 = vmin.f32 %v4772_v38, 20.0 }
 0x343   : > { %v4776_v31 = vadd.f32 %v2957_v18, %v4769_v32  ;;  %v2965_v5 = vadd.f32 %v2964_v50, %v2493_v61  ;;  %v2494_v27 = vpop.f32.mrb[38].mxu1  ;;  %v1901_v0 = vmul.f32 1.442695, %v1893_v58 }
 0x344   : > { %v2495_v39 = vpop.f32.mrb[39].mxu1 }
 0x345   : > { %v1894_v49 = vmin.f32 %v4776_v31, 20.0  ;;  %v2966_v45 = vadd.f32 %v2965_v5, %v1841_v23  ;;  %v2496_v22 = vadd.f32 %v2495_v39, %v2494_v27  ;;  %3171 = vpow2.f32 %v1901_v0 }
 0x347   : > { %v1903_v25 = vmul.f32 1.442695, %v1894_v49  ;;  %v4780_v3 = vadd.f32 %v2966_v45, %v4769_v32  ;;  %v2962_v13 = vadd.f32 %v2961_v51, %v2496_v22  ;;  %v2497_v52 = vpop.f32.mrb[40].mxu1 }
 0x348   : > { %v2498_v60 = vpop.f32.mrb[41].mxu1 }
 0x349   : > { %3173 = vpow2.f32 %v1903_v25  ;;  %v1895_v6 = vmin.f32 %v4780_v3, 20.0  ;;  %v2963_v62 = vadd.f32 %v2962_v13, %v2708_v53  ;;  %v2499_v50 = vadd.f32 %v2498_v60, %v2497_v52 }
 0x34b   : > { %v1905_v46 = vmul.f32 1.442695, %v1895_v6  ;;  %v4784_v37 = vadd.f32 %v2963_v62, %v4769_v32  ;;  %v2500_v11 = vpop.f32.mrb[42].mxu1  ;;  %v2973_v10 = vadd.f32 %v2972_v63, %v2499_v50 }
 0x34c   : > { %v2501_v54 = vpop.f32.mrb[43].mxu1 }
 0x34d   : > { %3175 = vpow2.f32 %v1905_v46  ;;  %v1896_v17 = vmin.f32 %v4784_v37, 20.0  ;;  %v2502_v2 = vadd.f32 %v2501_v54, %v2500_v11 }
 0x34f   : > { %v1907_v57 = vmul.f32 1.442695, %v1896_v17  ;;  %v2503_v51 = vpop.f32.mrb[44].mxu1  ;;  %v2969_v4 = vadd.f32 %v2968_v8, %v2502_v2  ;;  %v3172_v26 = vpop.eup %3171 }
 0x350   : > { %v2504_v29 = vpop.f32.mrb[45].mxu1  ;;  %v1917_v1 = vadd.f32 2.0, %v3172_v26 }
 0x351   : > { %3177 = vpow2.f32 %v1907_v57  ;;  %v2505_v35 = vadd.f32 %v2504_v29, %v2503_v51 }
 0x352   : > { %v1925_v9 = vmul.f32 %v3172_v26, %v1917_v1 }
 0x353   : > { %v3174_v16 = vpop.eup %3173  ;;  %v2506_v14 = vpop.f32.mrb[46].mxu1  ;;  %v2981_v59 = vadd.f32 %v2980_v12, %v2505_v35 }
 0x354   : > { %v1918_v24 = vadd.f32 2.0, %v3174_v16  ;;  %v2507_v15 = vpop.f32.mrb[47].mxu1  ;;  %v1933_v63 = vadd.f32 2.0, %v1925_v9 }
 0x355   : > { %v2508_v42 = vadd.f32 %v2507_v15, %v2506_v14 }
 0x356   : > { %v1926_v40 = vmul.f32 %v3174_v16, %v1918_v24  ;;  %3179 = vrcp.f32 %v1933_v63  ;;  %v3203_v24 = vld [vmem:[%s3853_s30] sm:$0xff] }
 0x357   : > { %v3176_v48 = vpop.eup %3175  ;;  %v2711_v28 = vpop.f32.mrb[48].mxu1  ;;  %v2977_v44 = vadd.f32 %v4767_v41, %v2508_v42 }
 0x358   : > { %v1934_v8 = vadd.f32 2.0, %v1926_v40  ;;  %v1919_v19 = vadd.f32 2.0, %v3176_v48  ;;  %v2970_v47 = vadd.f32 %v2969_v4, %v2711_v28  ;;  %v1851_v20 = vpop.f32.mrb[49].mxu1 }
 0x359   : > { %v2974_v21 = vadd.f32 %v2973_v10, %v1851_v20 }
 0x35a   : > { %3181 = vrcp.f32 %v1934_v8  ;;  %v1927_v36 = vmul.f32 %v3176_v48, %v1919_v19  ;;  %v4789_v33 = vadd.f32 %v2970_v47, %v4769_v32  ;;  %v3204_v47 = vld [vmem:[%s3853_s30 + $0x8] sm:$0xff] }
 0x35b   : > { %v3178_v12 = vpop.eup %3177  ;;  %v4792_v55 = vadd.f32 %v2974_v21, %v4769_v32  ;;  %v2714_v43 = vpop.f32.mrb[50].mxu1 }
 0x35c   : > { %v1935_v56 = vadd.f32 2.0, %v1927_v36  ;;  %v1920_v34 = vadd.f32 2.0, %v3178_v12  ;;  %v1898_v30 = vmin.f32 %v4789_v33, 20.0  ;;  %v2978_v41 = vadd.f32 %v2977_v44, %v2714_v43  ;;  %v1861_v53 = vpop.f32.mrb[51].mxu1 }
 0x35d   : > { %v1897_v7 = vmin.f32 %v4792_v55, 20.0  ;;  %v2982_v18 = vadd.f32 %v2981_v59, %v1861_v53 }
 0x35e   : > { %3183 = vrcp.f32 %v1935_v56  ;;  %v1928_v23 = vmul.f32 %v3178_v12, %v1920_v34  ;;  %v1911_v61 = vmul.f32 1.442695, %v1898_v30  ;;  %v4797_v58 = vadd.f32 %v2978_v41, %v4769_v32  ;;  %v3205_v41 = vld [vmem:[%s3853_s30 + $0x10] sm:$0xff] }
 0x35f   : > { %v1909_v5 = vmul.f32 1.442695, %v1897_v7  ;;  %v4800_v27 = vadd.f32 %v2982_v18, %v4769_v32 }
 0x360   : > { %v1936_v0 = vadd.f32 2.0, %v1928_v23  ;;  %3185 = vpow2.f32 %v1911_v61  ;;  %v1900_v39 = vmin.f32 %v4797_v58, 20.0  ;;  %v3180_v49 = vpop.eup %3179  ;;  %v3206_v23 = vld [vmem:[%s3853_s30 + $0x18] sm:$0xff] }
 0x361   : > { %3187 = vpow2.f32 %v1909_v5  ;;  %v1899_v45 = vmin.f32 %v4800_v27, 20.0  ;;  %v1949_v22 = vmul.f32 %v3180_v49, %v1933_v63 }
 0x362   : > { %3189 = vrcp.f32 %v1936_v0  ;;  %v1915_v25 = vmul.f32 1.442695, %v1900_v39 }
 0x363   : > { %v1913_v13 = vmul.f32 1.442695, %v1899_v45  ;;  %v1957_v60 = vsub.f32 2.0, %v1949_v22 }
 0x364   : > { %v3182_v52 = vpop.eup %3181  ;;  %3191 = vpow2.f32 %v1915_v25 }
 0x365   : > { %v1950_v6 = vmul.f32 %v3182_v52, %v1934_v8  ;;  %3193 = vpow2.f32 %v1913_v13  ;;  %v1965_v62 = vmul.f32 %v3180_v49, %v1957_v60 }
 0x367   : > { %v1958_v32 = vsub.f32 2.0, %v1950_v6  ;;  %v1973_v46 = vmul.f32 2.0, %v1965_v62 }
 0x368   : > { %v3184_v50 = vpop.eup %3183 }
 0x369   : > { %v1966_v11 = vmul.f32 %v3182_v52, %v1958_v32  ;;  %v1951_v10 = vmul.f32 %v3184_v50, %v1935_v56  ;;  %v1981_v17 = vsub.f32 1.0, %v1973_v46 }
 0x36a   : > { %v3186_v54 = vpop.eup %3185 }
 0x36b   : > { %v3188_v2 = vpop.eup %3187  ;;  %v1974_v57 = vmul.f32 2.0, %v1966_v11  ;;  %v1959_v51 = vsub.f32 2.0, %v1951_v10  ;;  %v1922_v4 = vadd.f32 2.0, %v3186_v54  ;;  %v1989_v29 = vmul.f32 %v1981_v17, %v4772_v38 }
 0x36c   : > { %v3190_v26 = vpop.eup %3189  ;;  %v1921_v1 = vadd.f32 2.0, %v3188_v2 }
 0x36d   : > { %v1982_v35 = vsub.f32 1.0, %v1974_v57  ;;  %v1967_v16 = vmul.f32 %v3184_v50, %v1959_v51  ;;  %v1952_v9 = vmul.f32 %v3190_v26, %v1936_v0  ;;  %v1930_v14 = vmul.f32 %v3186_v54, %v1922_v4  ;;  %v3207_v51 = vld [vmem:[%s3853_s30 + $0x28] sm:$0xff] }
 0x36e   : > { %v3192_v59 = vpop.eup %3191  ;;  %v1997_v15 = vadd.f32 %v3203_v24, %v1989_v29  ;;  %v1929_v63 = vmul.f32 %v3188_v2, %v1921_v1  ;;  %v3208_v29 = vld [vmem:[%s3853_s30 + $0x20] sm:$0xff] }
 0x36f   : > { %v3194_v42 = vpop.eup %3193  ;;  %v1990_v40 = vmul.f32 %v1982_v35, %v4776_v31  ;;  %v1975_v48 = vmul.f32 2.0, %v1967_v16  ;;  %v1960_v28 = vsub.f32 2.0, %v1952_v9  ;;  %v1938_v44 = vadd.f32 2.0, %v1930_v14  ;;  %v3209_v9 = vld [vmem:[%s3853_s30 + $0x38] sm:$0xff] }
 0x370   : > { %2005 = vst [vmem:[%s4809_s14] sm:$0xff] %v1997_v15  ;;  %v1937_v38 = vadd.f32 2.0, %v1929_v63  ;;  %v1924_v8 = vadd.f32 2.0, %v3192_v59  ;;  %v1923_v19 = vadd.f32 2.0, %v3194_v42 }
 0x371   : > { %v1998_v20 = vadd.f32 %v3204_v47, %v1990_v40  ;;  %v1983_v21 = vsub.f32 1.0, %v1975_v48  ;;  %v1968_v36 = vmul.f32 %v3190_v26, %v1960_v28  ;;  %3195 = vrcp.f32 %v1938_v44 }
 0x372   : > { %3197 = vrcp.f32 %v1937_v38  ;;  %v1932_v31 = vmul.f32 %v3192_v59, %v1924_v8  ;;  %v1931_v12 = vmul.f32 %v3194_v42, %v1923_v19  ;;  %v3210_v59 = vld [vmem:[%s3853_s30 + $0x30] sm:$0xff] }
 0x373   : > { %2006 = vst [vmem:[%s4809_s14 + $0x8] sm:$0xff] %v1998_v20  ;;  %v1991_v43 = vmul.f32 %v1983_v21, %v4780_v3  ;;  %v1976_v56 = vmul.f32 2.0, %v1968_v36 }
 0x374   : > { %v1940_v34 = vadd.f32 2.0, %v1932_v31  ;;  %v1939_v30 = vadd.f32 2.0, %v1931_v12 }
 0x375   : > { %v1999_v53 = vadd.f32 %v3205_v41, %v1991_v43  ;;  %v1984_v7 = vsub.f32 1.0, %v1976_v56 }
 0x376   : > { %3199 = vrcp.f32 %v1940_v34 }
 0x377   : > { %2007 = vst [vmem:[%s4809_s14 + $0x10] sm:$0xff] %v1999_v53  ;;  %v1992_v18 = vmul.f32 %v1984_v7, %v4784_v37  ;;  %3201 = vrcp.f32 %v1939_v30 }
 0x379   : > { %v2000_v61 = vadd.f32 %v3206_v23, %v1992_v18 }
 0x37b   : > { %v3196_v5 = vpop.eup %3195  ;;  %2008 = vst [vmem:[%s4809_s14 + $0x18] sm:$0xff] %v2000_v61 }
 0x37c   : > { %v3198_v0 = vpop.eup %3197  ;;  %v1954_v39 = vmul.f32 %v3196_v5, %v1938_v44 }
 0x37d   : > { %v1953_v49 = vmul.f32 %v3198_v0, %v1937_v38 }
 0x37e   : > { %v1962_v3 = vsub.f32 2.0, %v1954_v39 }
 0x37f   : > { %v1961_v45 = vsub.f32 2.0, %v1953_v49 }
 0x380   : > { %v3200_v22 = vpop.eup %3199  ;;  %v1970_v25 = vmul.f32 %v3196_v5, %v1962_v3 }
 0x381   : > { %v3202_v13 = vpop.eup %3201  ;;  %v1969_v52 = vmul.f32 %v3198_v0, %v1961_v45  ;;  %v1956_v60 = vmul.f32 %v3200_v22, %v1940_v34 }
 0x382   : > { %v1978_v6 = vmul.f32 2.0, %v1970_v25  ;;  %v1955_v37 = vmul.f32 %v3202_v13, %v1939_v30 }
 0x383   : > { %v1977_v62 = vmul.f32 2.0, %v1969_v52  ;;  %v1964_v32 = vsub.f32 2.0, %v1956_v60 }
 0x384   : > { %v1986_v50 = vsub.f32 1.0, %v1978_v6  ;;  %v1963_v46 = vsub.f32 2.0, %v1955_v37 }
 0x385   : > { %v1985_v11 = vsub.f32 1.0, %v1977_v62  ;;  %v1972_v10 = vmul.f32 %v3200_v22, %v1964_v32 }
 0x386   : > { %v1994_v54 = vmul.f32 %v1986_v50, %v4789_v33  ;;  %v1971_v17 = vmul.f32 %v3202_v13, %v1963_v46 }
 0x387   : > { %v1993_v2 = vmul.f32 %v1985_v11, %v4792_v55  ;;  %v1980_v57 = vmul.f32 2.0, %v1972_v10 }
 0x388   : > { %v2002_v4 = vadd.f32 %v3207_v51, %v1994_v54  ;;  %v1979_v26 = vmul.f32 2.0, %v1971_v17 }
 0x389   : > { %v2001_v1 = vadd.f32 %v3208_v29, %v1993_v2  ;;  %v1988_v35 = vsub.f32 1.0, %v1980_v57 }
 0x38a   : > { %2010 = vst [vmem:[%s4809_s14 + $0x28] sm:$0xff] %v2002_v4  ;;  %v1987_v16 = vsub.f32 1.0, %v1979_v26 }
 0x38b   : > { %2009 = vst [vmem:[%s4809_s14 + $0x20] sm:$0xff] %v2001_v1  ;;  %v1996_v33 = vmul.f32 %v1988_v35, %v4797_v58 }
 0x38c   : > { %v1995_v55 = vmul.f32 %v1987_v16, %v4800_v27 }
 0x38d   : > { %v2004_v14 = vadd.f32 %v3209_v9, %v1996_v33 }
 0x38e   : > { %v2003_v24 = vadd.f32 %v3210_v59, %v1995_v55 }
 0x38f   : > { %2012 = vst [vmem:[%s4809_s14 + $0x38] sm:$0xff] %v2004_v14 }
 0x390   : > { %2011 = vst [vmem:[%s4809_s14 + $0x30] sm:$0xff] %v2003_v24 }
 0x391   : > { %3396 = shalt.err (!%p3393_p10)
}
 0x392   : > { %s3397_s30 = scalar_lea.hbm %s4838_s16, 1024  ;;  %s3401_s29 = scalar_lea.hbm %s5159_s13, 8192 }
 0x393   : > { %p3398_p9 = scmp.ne.s32.totalorder %s4838_s16, %s3397_s30  ;;  %p3402_p12 = scmp.lt.u32.totalorder %s4838_s16, %s5159_s13 }
 0x394   : > { %p3403_p4 = scmp.lt.u32.totalorder %s3401_s29, %s3397_s30  ;;  %p3405_p2 = scmp.lt.u32.totalorder %s3397_s30, %s4838_s16 }
 0x395   : > { %p3399_p11 = pnand %p3398_p9, %p3736_p3 }
 0x396   : > { %p3404_p8 = por %p3403_p4, %p3402_p12 }
 0x397   : > { %p3400_p1 = pneg %p3399_p11 }
 0x398   : > { %p3406_p6 = por %p3405_p2, %p3404_p8 }
 0x39a   : > { %p3407_p0 = pnand %p3406_p6, %p3400_p1 }
 0x39c   : > { %3410 = shalt.err (!%p3407_p0)
}
 0x39d   : > { %s3508_s5 = smov 128   ;;  %s3509_s15 = smov 8  }
 0x39e   : > { %3015 = dma.vmem_to_hbm [thread:$0]  (%p3736_p3), %s4832_s24, 1024, %s4838_s16, %s2014_s6, %s3508_s5, %s3508_s5, %s3509_s15  }
 0x39f PF: > { %s5160_s17 = sld [smem:[#allocation20_spill]]  ;;  %s5161_s11 = sld [smem:[#allocation22_spill]] }
 0x3a0   : > { %p3050_p5 = scmp.ge.s32.totalorder %s3497_s28, 2 }
 0x3a5   : > { %s2044_s12 = sand.u32 1, %s5160_s17   ;;  %p5162_p7 = scmp.ne.s32.totalorder %s5161_s11, 0 }
 0x3a6   : > { %s2045_s4 = scalar_lea.sflag [#allocation4], %s2044_s12 }
 0x3a7   : > { %p3038_p13 = pnand %p3050_p5, %p5162_p7 }
 0x3a9   : > { %3464 = dma.done.wait (!%p3038_p13), %s2045_s4, 1024  }
 0x3aa   : > { %3466 = vsyncadd (!%p3038_p13), %s2045_s4, 4294966272  ;;  %s27_s28 = sadd.s32 1, %s3497_s28   ;;  %s5163_s8 = sld [smem:[#allocation23_spill]] }
 0x3ab   : > { %p24_p10 = scmp.ge.s32.totalorder %s27_s28, 10   ;;  %s5164_s21 = smov %s3473_s22 }
 0x3ac   : > { %s5165_s22 = smov %s3477_s23  ;;  %s5166_s23 = smov %s3752_s19 }
 0x3ad   : > { %s5167_s24 = smov %s3489_s26  ;;  %s5168_s25 = smov %s3493_s27 }
 0x3ae   : > { %s5169_s26 = smov %s5172_s10  ;;  %26 = sbr.rel (!%p24_p10) target bundleno = 18 (0x12), region = 120 }
 0x3b0   : > { %s5170_s27 = smov %s5163_s8 }
 0x3b5   :  { %2050 = vsyncpa [#allocation3], 1 }
 0x3b6   :  { %2052 = vsyncpa [#allocation3 + $0x1], 1 }
 0x3b7   :  { %2053 = vsyncpa [#allocation6], 1 }
 0x3b8   :  { %2055 = vsyncpa [#allocation6 + $0x1], 1 }
 0x3b9   :  { %2056 = vsyncpa [#allocation9], 1 }
 0x3ba   :  { %2057 = vsyncpa [#allocation12], 1 }
 0x3bb   :  { %2058 = vsyncpa [#allocation4], 1 }
 0x3bc   :  { %2060 = vsyncpa [#allocation4 + $0x1], 1 }

// kernel: tpu_custom_call.1
= control target key start
LH: loop header
LB: loop body
LE: loop exit
PB: predicated region body
PF: predicated region fallthrough
CT: control target
= control target key end

     0   :  { %s4894_s0 = inlined_call_operand.hbm [shape: f32[2,256,128], index: 0, kind: input, shape index: {}]   ;;  %s4895_s1 = inlined_call_operand.hbm [shape: f32[2,4,32,128], index: 1, kind: input, shape index: {}]   ;;  %s4896_s2 = inlined_call_operand.hbm [shape: f32[128,128], index: 2, kind: input, shape index: {}]   ;;  %s4897_s3 = inlined_call_operand.hbm [shape: f32[1,128], index: 3, kind: input, shape index: {}]   ;;  %s4898_s4 = inlined_call_operand.hbm [shape: f32[3,384,128], index: 4, kind: input, shape index: {}]   ;;  %s4899_s5 = inlined_call_operand.hbm [shape: f32[1,128], index: 5, kind: input, shape index: {}]   ;;  %s4900_s6 = inlined_call_operand.hbm [shape: f32[2,256,128], index: 6, kind: output, shape index: {}]  }
   0x1   :  { %4964 = sst [smem:[#allocation50_spill]] %s4894_s0 }
   0x2   :  { %4965 = sst [smem:[#allocation51_spill]] %s4896_s2 }
   0x3   :  { %4966 = sst [smem:[#allocation52_spill]] %s4897_s3 }
   0x4   :  { %4967 = sst [smem:[#allocation53_spill]] %s4898_s4 }
   0x5   :  { %4968 = sst [smem:[#allocation54_spill]] %s4899_s5 }
   0x6   :  { %4969 = sst [smem:[#allocation55_spill]] %s4900_s6 }
   0x7   :  { %11 = vsyncpa [#allocation3], 0 }
   0x8   :  { %13 = vsyncpa [#allocation3 + $0x1], 0 }
   0x9   :  { %14 = vsyncpa [#allocation6], 0 }
   0xa   :  { %16 = vsyncpa [#allocation6 + $0x1], 0 }
   0xb   :  { %17 = vsyncpa [#allocation9], 0 }
   0xc   :  { %18 = vsyncpa [#allocation12], 0 }
   0xd   :  { %19 = vsyncpa [#allocation4], 0 }
   0xe   :  { %21 = vsyncpa [#allocation4 + $0x1], 0  ;;  %s3545_s21 = smov 0   ;;  %s3547_s22 = smov 0  }
   0xf   :  { %s3549_s23 = smov 0   ;;  %s3551_s24 = smov 0  }
  0x10   :  { %s3553_s25 = smov 0   ;;  %s3555_s26 = smov 0  }
  0x11   :  { %s3557_s27 = smov 0   ;;  %s3559_s28 = smov 0  }
  0x12 LB: > { %4970 = sst [smem:[#allocation20_spill]] %s3469_s21  ;;  %s3586_s29 = sadd.s32 4294967295, %s3497_s28   ;;  %s3497_s28 = sphi %s3559_s28, %s27_s28   ;;  %s3493_s27 = sphi %s3557_s27, %s5170_s27   ;;  %s3489_s26 = sphi %s3555_s26, %s5169_s26   ;;  %s3485_s25 = sphi %s3553_s25, %s5168_s25   ;;  %s3481_s24 = sphi %s3551_s24, %s5167_s24   ;;  %s3477_s23 = sphi %s3549_s23, %s5166_s23   ;;  %s3473_s22 = sphi %s3547_s22, %s5165_s22   ;;  %s3469_s21 = sphi %s3545_s21, %s5164_s21  }
  0x13   : > { %4971 = sst [smem:[#allocation21_spill]] %s3485_s25  ;;  %s2184_s30 = sadd.s32 4294967294, %s3497_s28  }
  0x14   : > { %p61_p0 = scmp.ne.s32.totalorder %s3473_s22, %s3469_s21  ;;  %p4901_p1 = scmp.eq.s32.totalorder %s3586_s29, 0 }
  0x15   : > { %p205_p3 = scmp.eq.s32.totalorder %s2184_s30, 7  ;;  %p2185_p5 = scmp.ge.s32.totalorder %s3497_s28, 1 }
  0x16   : > { %p3595_p4 = por %p4901_p1, %p61_p0  ;;  %p212_p7 = scmp.lt.s32.totalorder %s3497_s28, 9 }
  0x17   : > { %p3600_p6 = por %p205_p3, %p61_p0  ;;  %s3499_s10 = smov [#allocation7]  }
  0x18   : > { %s4972_s7 = scalar_select %p3595_p4, 1, 0 }
  0x19   : > { %s4973_s8 = scalar_select %p3600_p6, 1, 0 }
  0x1a   : > { %p3605_p8 = pnand %p2185_p5, %p212_p7  ;;  %s224_s11 = sshll.u32 %s3499_s10, 4  ;;  %s3609_s11 = int_to_ptr.vmem [resolvable:$true] %s224_s11 }
  0x1b   : > { %4974 = sst [smem:[#allocation22_spill]] %s4973_s8  ;;  %s3500_s13 = smov [#allocation8]  }
  0x1c   : > { %s4975_s9 = scalar_select %p3605_p8, 1, 0 }
  0x1d   : > { %p3017_p9 = pneg %p3605_p8  ;;  %s238_s14 = sshll.u32 %s3500_s13, 4  ;;  %s3619_s14 = int_to_ptr.vmem [resolvable:$true] %s238_s14 }
  0x1e   : > { %s3501_s15 = smov [#allocation10]   ;;  %s4977_s2 = sld [smem:[#allocation51_spill]] }
  0x1f   : > { %p3615_p10 = pnand %p3017_p9, %p4901_p1  ;;  %s3621_s16 = sshll.u32 %s3501_s15, 4  ;;  %s249_s16 = int_to_ptr.vmem [resolvable:$true] %s3621_s16 }
  0x21   : > { %p3631_p12 = pneg %p3615_p10 }
  0x24   : > { %s3211_s19 = scalar_lea.hbm %s4977_s2, 2048 }
  0x25   : > { %p3212_p11 = scmp.ne.s32.totalorder %s4977_s2, %s3211_s19  ;;  %p3218_p3 = scmp.lt.u32.totalorder %s3211_s19, %s4977_s2 }
  0x27   : > { %p3214_p13 = pnand %p3631_p12, %p3212_p11 }
  0x29   : > { %p3215_p0 = pneg %p3214_p13 }
  0x2b   : > { %p3220_p5 = pnand %p3218_p3, %p3215_p0 }
  0x2d   : > { %3223 = shalt.err (!%p3220_p5)
}
  0x2e   : > { %s3224_s17 = scalar_lea.vmem %s3609_s11, 2048  ;;  %p3232_p2 = scmp.lt.s32.totalorder %s3609_s11, %s3609_s11 }
  0x2f   : > { %p3225_p7 = scmp.ne.s32.totalorder %s3609_s11, %s3224_s17  ;;  %p3233_p6 = scmp.lt.s32.totalorder %s3224_s17, %s3224_s17 }
  0x31   : > { %p3227_p9 = pnand %p3225_p7, %p3631_p12  ;;  %p3234_p11 = por %p3233_p6, %p3232_p2 }
  0x33   : > { %p3228_p1 = pneg %p3227_p9 }
  0x35   : > { %p3235_p13 = pnand %p3234_p11, %p3228_p1 }
  0x37   : > { %3238 = shalt.err (!%p3235_p13)
}
  0x38   : > { %s4907_s18 = smov 128   ;;  %s4909_s19 = smov 8  }
  0x39   : > { %3020 = dma.hbm_to_vmem [thread:$0]  (!%p3615_p10), %s4977_s2, 2048, %s3609_s11, [#allocation6], %s4907_s18, %s4907_s18, %s4909_s19  }
  0x3a   : > { %s4979_s3 = sld [smem:[#allocation52_spill]] }
  0x40   : > { %s3239_s17 = scalar_lea.hbm %s4979_s3, 16 }
  0x41   : > { %p3240_p1 = scmp.ne.s32.totalorder %s4979_s3, %s3239_s17  ;;  %p3246_p0 = scmp.lt.u32.totalorder %s3239_s17, %s4979_s3 }
  0x43   : > { %p3242_p2 = pnand %p3240_p1, %p3631_p12 }
  0x45   : > { %p3243_p6 = pneg %p3242_p2 }
  0x47   : > { %p3248_p3 = pnand %p3246_p0, %p3243_p6 }
  0x49   : > { %3251 = shalt.err (!%p3248_p3)
}
  0x4a   : > { %s3252_s11 = scalar_lea.vmem %s3619_s14, 16  ;;  %s3259_s21 = scalar_lea.vmem %s3619_s14, 32 }
  0x4b   : > { %p3253_p5 = scmp.ne.s32.totalorder %s3619_s14, %s3252_s11  ;;  %p3260_p11 = scmp.lt.s32.totalorder %s3619_s14, %s3619_s14 }
  0x4c   : > { %p3261_p13 = scmp.lt.s32.totalorder %s3259_s21, %s3252_s11 }
  0x4d   : > { %p3255_p7 = pnand %p3253_p5, %p3631_p12 }
  0x4e   : > { %p3262_p1 = por %p3261_p13, %p3260_p11 }
  0x4f   : > { %p3256_p9 = pneg %p3255_p7 }
  0x51   : > { %p3263_p2 = pnand %p3262_p1, %p3256_p9 }
  0x53   : > { %3266 = shalt.err (!%p3263_p2)
}
  0x54   : > { %3023 = dma.hbm_to_vmem [thread:$0]  (!%p3615_p10), %s4979_s3, 16, %s3619_s14, [#allocation9]  }
  0x55   : > { %s4980_s4 = sld [smem:[#allocation53_spill]] }
  0x5b   : > { %s3267_s30 = scalar_lea.hbm %s4980_s4, 18432 }
  0x5c   : > { %p3268_p6 = scmp.ne.s32.totalorder %s4980_s4, %s3267_s30  ;;  %p3274_p5 = scmp.lt.u32.totalorder %s3267_s30, %s4980_s4 }
  0x5e   : > { %p3270_p0 = pnand %p3268_p6, %p3631_p12 }
  0x60   : > { %p3271_p3 = pneg %p3270_p0 }
  0x62   : > { %p3276_p7 = pnand %p3274_p5, %p3271_p3 }
  0x64   : > { %3279 = shalt.err (!%p3276_p7)
}
  0x65   : > { %s3280_s21 = scalar_lea.vmem %s249_s16, 18432  ;;  %p3288_p1 = scmp.lt.s32.totalorder %s249_s16, %s249_s16 }
  0x66   : > { %p3281_p9 = scmp.ne.s32.totalorder %s249_s16, %s3280_s21  ;;  %p3289_p2 = scmp.lt.s32.totalorder %s3280_s21, %s3280_s21 }
  0x68   : > { %p3283_p11 = pnand %p3281_p9, %p3631_p12  ;;  %p3290_p4 = por %p3289_p2, %p3288_p1 }
  0x6a   : > { %p3284_p13 = pneg %p3283_p11 }
  0x6c   : > { %p3291_p8 = pnand %p3290_p4, %p3284_p13 }
  0x6e   : > { %3294 = shalt.err (!%p3291_p8)
}
  0x6f   : > { %3026 = dma.hbm_to_vmem [thread:$0]  (!%p3615_p10), %s4980_s4, 18432, %s249_s16, [#allocation9], %s4907_s18, %s4907_s18, %s4909_s19  }
  0x70   : > { %s3504_s25 = smov [#allocation11]   ;;  %s4981_s5 = sld [smem:[#allocation54_spill]] }
  0x71   : > { %s262_s8 = sshll.u32 %s3504_s25, 4  ;;  %s263_s8 = int_to_ptr.vmem [resolvable:$true] %s262_s8 }
  0x76   : > { %s3295_s13 = scalar_lea.hbm %s4981_s5, 16 }
  0x77   : > { %p3296_p4 = scmp.ne.s32.totalorder %s4981_s5, %s3295_s13  ;;  %p3302_p0 = scmp.lt.u32.totalorder %s3295_s13, %s4981_s5 }
  0x79   : > { %p3298_p8 = pnand %p3296_p4, %p3631_p12 }
  0x7b   : > { %p3299_p6 = pneg %p3298_p8 }
  0x7d   : > { %p3304_p3 = pnand %p3302_p0, %p3299_p6 }
  0x7f   : > { %3307 = shalt.err (!%p3304_p3)
}
  0x80   : > { %s3308_s16 = scalar_lea.vmem %s263_s8, 16  ;;  %s3315_s14 = scalar_lea.vmem %s263_s8, 32 }
  0x81   : > { %p3309_p5 = scmp.ne.s32.totalorder %s263_s8, %s3308_s16  ;;  %p3316_p11 = scmp.lt.s32.totalorder %s263_s8, %s263_s8 }
  0x82   : > { %p3317_p13 = scmp.lt.s32.totalorder %s3315_s14, %s3308_s16 }
  0x83   : > { %p3311_p7 = pnand %p3309_p5, %p3631_p12 }
  0x84   : > { %p3318_p1 = por %p3317_p13, %p3316_p11 }
  0x85   : > { %p3312_p9 = pneg %p3311_p7 }
  0x87   : > { %p3319_p2 = pnand %p3318_p1, %p3312_p9 }
  0x89   : > { %3322 = shalt.err (!%p3319_p2)
}
  0x8a   : > { %3029 = dma.hbm_to_vmem [thread:$0]  (!%p3615_p10), %s4981_s5, 16, %s263_s8, [#allocation12]  }
  0x8b   : > { %s36_s10 = sadd.s32 1, %s3489_s26  ;;  %s39_s20 = sadd.s32 1, %s3493_s27 }
  0x8c   : > { %p37_p12 = scmp.ge.s32.totalorder %s36_s10, 4  ;;  %s48_s12 = sadd.s32 1, %s3477_s23 }
  0x8d   : > { %p55_p4 = scmp.ne.s32.totalorder %s3477_s23, %s3473_s22  ;;  %p56_p8 = scmp.eq.s32.totalorder %s3497_s28, 0 }
  0x8e   : > { %s5172_s10 = smov (%p37_p12, %s36_s10), 0  ;;  %s5174_s20 = smov (!%p37_p12, %s39_s20), %s3493_s27 }
  0x8f   : > { %s44_s30 = ssub.s32 %s3489_s26, %s5172_s10  ;;  %p3730_p6 = por %p56_p8, %p55_p4 }
  0x90   : > { %p41_p10 = scmp.ge.s32.totalorder %s5174_s20, 2  ;;  %p4983_p0 = scmp.eq.s32.totalorder %s3586_s29, 7 }
  0x91   : > { %p3045_p5 = scmp.lt.s32.totalorder %s3497_s28, 8  ;;  %s3742_s15 = sand.u32 1, %s3477_s23  }
  0x92   : > { %p3736_p3 = por %p4983_p0, %p55_p4  ;;  %s5176_s20 = smov (%p41_p10, %s5174_s20), 0 }
  0x93   : > { %4985 = sst [smem:[#allocation23_spill]] %s5176_s20  ;;  %s2191_s17 = sshll.u32 %s3742_s15, 6 }
  0x94   : > { %s43_s11 = ssub.s32 %s3493_s27, %s5176_s20  ;;  %s2192_s16 = sshll.u32 %s3489_s26, 3 }
  0x95   : > { %s45_s21 = sor.u32 %s44_s30, %s43_s11  ;;  %s2193_s14 = sshll.u32 %s3493_s27, 5 }
  0x96   : > { %p46_p7 = scmp.eq.s32.totalorder %s45_s21, 0  ;;  %s283_s6 = sadd.s32 %s2193_s14, %s2192_s16 }
  0x97   : > { %s277_s25 = scalar_lea.vmem [#allocation2], %s2191_s17  ;;  %s2194_s2 = sshll.u32 %s283_s6, 7 }
  0x98   : > { %s286_s18 = sshll.u32 %s277_s25, 4  ;;  %s4986_s0 = sld [smem:[#allocation50_spill]]  ;;  %s3754_s18 = int_to_ptr.vmem [resolvable:$true] %s286_s18 }
  0x99   : > { %s3752_s19 = scalar_select %p46_p7, %s3477_s23, %s48_s12  }
  0x9a   : > { %p3765_p9 = pnand %p3045_p5, %p3730_p6  ;;  %s2195_s17 = sshll.u32 %s3742_s15, 5 }
  0x9b   : > { %s274_s11 = scalar_lea.sflag [#allocation3], %s3742_s15 }
  0x9c   : > { %p3325_p13 = pneg %p3765_p9 }
  0x9e   : > { %s3759_s5 = scalar_lea.hbm %s4986_s0, %s2194_s2  ;;  %s3328_s4 = scalar_lea.hbm %s4986_s0, 8192 }
  0x9f   : > { %s3323_s21 = scalar_lea.hbm %s3759_s5, 1024  ;;  %p3329_p12 = scmp.lt.u32.totalorder %s3759_s5, %s4986_s0 }
  0xa0   : > { %p3324_p11 = scmp.ne.s32.totalorder %s3759_s5, %s3323_s21  ;;  %p3330_p4 = scmp.lt.u32.totalorder %s3328_s4, %s3323_s21 }
  0xa1   : > { %p3332_p6 = scmp.lt.u32.totalorder %s3323_s21, %s3759_s5 }
  0xa2   : > { %p3326_p1 = pnand %p3325_p13, %p3324_p11  ;;  %p3331_p8 = por %p3330_p4, %p3329_p12 }
  0xa4   : > { %p3327_p2 = pneg %p3326_p1  ;;  %p3333_p10 = por %p3332_p6, %p3331_p8 }
  0xa6   : > { %p3334_p0 = pnand %p3333_p10, %p3327_p2 }
  0xa8   : > { %3337 = shalt.err (!%p3334_p0)
}
  0xa9   : > { %s3338_s14 = scalar_lea.vmem %s3754_s18, 1024  ;;  %s3505_s6 = smov [#allocation2]  }
  0xaa   : > { %p3339_p5 = scmp.ne.s32.totalorder %s3754_s18, %s3338_s14  ;;  %s3343_s25 = sshll.u32 %s3505_s6, 4  ;;  %s3344_s25 = int_to_ptr.vmem [resolvable:$false] %s3343_s25 }
  0xab   : > { %s3345_s2 = scalar_lea.vmem %s3344_s25, 2048  ;;  %p3346_p1 = scmp.lt.s32.totalorder %s3754_s18, %s3344_s25 }
  0xac   : > { %p3341_p7 = pnand %p3339_p5, %p3325_p13  ;;  %p3347_p12 = scmp.lt.s32.totalorder %s3345_s2, %s3338_s14 }
  0xae   : > { %p3342_p11 = pneg %p3341_p7  ;;  %p3348_p4 = por %p3347_p12, %p3346_p1 }
  0xb0   : > { %p3349_p8 = pnand %p3348_p4, %p3342_p11 }
  0xb2   : > { %3352 = shalt.err (!%p3349_p8)
}
  0xb3   : > { %s4988_s21 = smov 8   ;;  %s4989_s3 = smov 128  }
  0xb4   : > { %3033 = dma.hbm_to_vmem [thread:$0]  (!%p3765_p9), %s3759_s5, 1024, %s3754_s18, %s274_s11, %s4989_s3, %s4989_s3, %s4988_s21  }
  0xb5   : > { %s2196_s4 = sshll.u32 %s3489_s26, 2  ;;  %s2197_s13 = sshll.u32 %s3493_s27, 4 }
  0xb6   : > { %s300_s16 = scalar_lea.vmem [#allocation5], %s2195_s17  ;;  %s306_s6 = sadd.s32 %s2197_s13, %s2196_s4 }
  0xb7   : > { %s309_s14 = sshll.u32 %s300_s16, 4  ;;  %s2198_s25 = sshll.u32 %s306_s6, 7  ;;  %s3806_s14 = int_to_ptr.vmem [resolvable:$true] %s309_s14 }
  0xb8   : > { %s3811_s0 = scalar_lea.hbm %s4895_s1, %s2198_s25  ;;  %s4990_s20 = sand.u32 1, %s3497_s28  }
  0xb9   : > { %s3815_s5 = scalar_lea.sflag [#allocation6], %s4990_s20  ;;  %s3353_s18 = scalar_lea.hbm %s3811_s0, 512 }
  0xba   : > { %p3354_p2 = scmp.ne.s32.totalorder %s3811_s0, %s3353_s18  ;;  %s3358_s11 = scalar_lea.hbm %s4895_s1, 4096 }
  0xbb   : > { %p3359_p0 = scmp.lt.u32.totalorder %s3811_s0, %s4895_s1  ;;  %p3360_p5 = scmp.lt.u32.totalorder %s3358_s11, %s3353_s18 }
  0xbc   : > { %p3356_p6 = pnand %p3354_p2, %p3325_p13  ;;  %p3362_p11 = scmp.lt.u32.totalorder %s3353_s18, %s3811_s0 }
  0xbd   : > { %p3361_p7 = por %p3360_p5, %p3359_p0 }
  0xbe   : > { %p3357_p10 = pneg %p3356_p6 }
  0xbf   : > { %p3363_p1 = por %p3362_p11, %p3361_p7 }
  0xc1   : > { %p3364_p12 = pnand %p3363_p1, %p3357_p10 }
  0xc3   : > { %3367 = shalt.err (!%p3364_p12)
}
  0xc4   : > { %s3368_s20 = scalar_lea.vmem %s3806_s14, 512  ;;  %s3506_s13 = smov [#allocation5]  }
  0xc5   : > { %p3369_p4 = scmp.ne.s32.totalorder %s3806_s14, %s3368_s20  ;;  %s3373_s16 = sshll.u32 %s3506_s13, 4  ;;  %s3374_s16 = int_to_ptr.vmem [resolvable:$false] %s3373_s16 }
  0xc6   : > { %s3375_s6 = scalar_lea.vmem %s3374_s16, 1024  ;;  %p3376_p6 = scmp.lt.s32.totalorder %s3806_s14, %s3374_s16 }
  0xc7   : > { %p3371_p8 = pnand %p3369_p4, %p3325_p13  ;;  %p3377_p0 = scmp.lt.s32.totalorder %s3375_s6, %s3368_s20 }
  0xc9   : > { %p3372_p2 = pneg %p3371_p8  ;;  %p3378_p5 = por %p3377_p0, %p3376_p6 }
  0xcb   : > { %p3379_p7 = pnand %p3378_p5, %p3372_p2 }
  0xcd   : > { %3382 = shalt.err (!%p3379_p7)
}
  0xce   : > { %3036 = dma.hbm_to_vmem [thread:$0]  (!%p3765_p9), %s3811_s0, 512, %s3806_s14, %s3815_s5, %s4989_s3, %s4989_s3, %s4988_s21  }
  0xcf   : > { %p4991_p13 = scmp.ne.s32.totalorder %s4975_s9, 0 }
  0xd1   : > { %321 = sbr.rel (%p4991_p13) target bundleno = 927 (0x39f), region = 44 }
  0xd8   : > { %s3847_s25 = sand.u32 1, %s3473_s22   ;;  %p4992_p10 = scmp.ne.s32.totalorder %s4972_s7, 0 }
  0xd9   : > { %s2200_s2 = sshll.u32 %s3847_s25, 6  ;;  %s324_s18 = scalar_lea.sflag [#allocation3], %s3847_s25 }
  0xda   : > { %s3853_s30 = scalar_lea.vmem [#allocation2], %s2200_s2 }
  0xdb   : > { %3444 = dma.done.wait (%p4992_p10), %s324_s18, 1024  }
  0xdc   : > { %3446 = vsyncadd (%p4992_p10), %s324_s18, 4294966272  ;;  %s332_s0 = sand.u32 1, %s3586_s29   ;;  %s2201_s9 = sshll.u32 %s3847_s25, 5 }
  0xdd   : > { %s333_s21 = scalar_lea.sflag [#allocation6], %s332_s0  ;;  %s3861_s3 = scalar_lea.vmem [#allocation5], %s2201_s9 }
  0xde   : > { %3448 = dma.done.wait (%p4992_p10), %s333_s21, 512  }
  0xdf   : > { %3450 = vsyncadd (%p4992_p10), %s333_s21, 4294966784  ;;  %p4993_p9 = scmp.eq.s32.totalorder %s3586_s29, 0 }
  0xe1   : > { %3452 = dma.done.wait (%p4993_p9), [#allocation6], 2048   ;;  %p4994_p11 = pmov %p4993_p9 }
  0xe2   : > { %p4995_p1 = pmov %p4993_p9 }
  0xe3   : > { %3454 = vsyncadd (%p4994_p11), [#allocation6], 4294965248 }
  0xe4   : > { %3456 = dma.done.wait (%p4995_p1), [#allocation9], 18448   ;;  %p4996_p12 = pmov %p4995_p1 }
  0xe5   : > { %p4997_p4 = pmov %p4995_p1 }
  0xe6   : > { %3458 = vsyncadd (%p4996_p12), [#allocation9], 4294948848 }
  0xe7   : > { %3460 = dma.done.wait (%p4997_p4), [#allocation12], 16   ;;  %p4998_p8 = pmov %p4995_p1 }
  0xe8   : > { %v400_v0 = vld [vmem:[#allocation7] sm:$0xff]  ;;  %v401_v1 = vld [vmem:[#allocation7 + $0x8] sm:$0xff]  ;;  %v402_v2 = vld [vmem:[#allocation7 + $0x10] sm:$0xff]  ;;  %s2208_s29 = sshll.u32 %s3481_s24, 6  ;;  %s4809_s14 = scalar_lea.vmem [#allocation13], %s2200_s2 }
  0xe9   : > { %3462 = vsyncadd (%p4998_p8), [#allocation12], 4294967280  ;;  %v2715_v3 = vpack.c.bf16 %v401_v1, %v400_v0  ;;  %v403_v4 = vld [vmem:[#allocation7 + $0x18] sm:$0xff]  ;;  %v404_v6 = vld [vmem:[#allocation7 + $0x20] sm:$0xff]  ;;  %s2209_s7 = sadd.s32 4294967280, %s2208_s29  ;;  %s5158_s5 = sld [smem:[#allocation21_spill]] }
  0xea   : > { %v2719_v5 = vpack.c.bf16 %v403_v4, %v402_v2  ;;  %v405_v7 = vld [vmem:[#allocation7 + $0x28] sm:$0xff]  ;;  %v388_v9 = vld [vmem:[%s3861_s3] sm:$0xff]  ;;  %v406_v10 = vld [vmem:[#allocation7 + $0x30] sm:$0xff]  ;;  %s2260_s15 = sshll.u32 %s3481_s24, 3  ;;  %s2029_s24 = sshll.u32 %s4809_s14, 4  ;;  %s4832_s24 = int_to_ptr.vmem [resolvable:$true] %s2029_s24 }
  0xeb   : > { %2716 = vmatprep.subr.bf16.mxu0 %v2715_v3  ;;  %v2723_v8 = vpack.c.bf16 %v405_v7, %v404_v6  ;;  %v407_v11 = vld [vmem:[#allocation7 + $0x38] sm:$0xff]  ;;  %2565 = vmatprep.mubr.f32.mxu0 %v388_v9  ;;  %v408_v13 = vld [vmem:[#allocation7 + $0x40] sm:$0xff]  ;;  %v409_v14 = vld [vmem:[#allocation7 + $0x48] sm:$0xff]  ;;  %s5159_s13 = sld [smem:[#allocation55_spill]]  ;;  %s2014_s6 = scalar_lea.sflag [#allocation4], %s3847_s25 }
  0xec   : > { %2718 = vmatpush3.bf16.msra.mxu0 %v2715_v3  ;;  %v2727_v12 = vpack.c.bf16 %v407_v11, %v406_v10  ;;  %v2731_v15 = vpack.c.bf16 %v409_v14, %v408_v13  ;;  %v410_v16 = vld [vmem:[#allocation7 + $0x50] sm:$0xff]  ;;  %v411_v17 = vld [vmem:[#allocation7 + $0x58] sm:$0xff]  ;;  %v412_v19 = vld [vmem:[#allocation7 + $0x60] sm:$0xff]  ;;  %s3383_s2 = scalar_lea.vmem %s4832_s24, 1024  ;;  %s3507_s18 = smov [#allocation13]  }
  0xed   : > { %2720 = vmatprep.subr.bf16.mxu0 %v2719_v5  ;;  %v2735_v18 = vpack.c.bf16 %v411_v17, %v410_v16  ;;  %v413_v20 = vld [vmem:[#allocation7 + $0x68] sm:$0xff]  ;;  %v414_v22 = vld [vmem:[#allocation7 + $0x70] sm:$0xff]  ;;  %v415_v23 = vld [vmem:[#allocation7 + $0x78] sm:$0xff]  ;;  %p3384_p2 = scmp.ne.s32.totalorder %s4832_s24, %s3383_s2  ;;  %s3387_s0 = sshll.u32 %s3507_s18, 4  ;;  %s3388_s0 = int_to_ptr.vmem [resolvable:$false] %s3387_s0 }
  0xee   : > { %v2739_v21 = vpack.c.bf16 %v413_v20, %v412_v19  ;;  %v2743_v24 = vpack.c.bf16 %v415_v23, %v414_v22  ;;  %v389_v25 = vld [vmem:[%s3861_s3 + $0x8] sm:$0xff]  ;;  %v392_v26 = vld [vmem:[%s3853_s30] sm:$0xff]  ;;  %v394_v28 = vld [vmem:[%s3853_s30 + $0x10] sm:$0xff]  ;;  %s3389_s9 = scalar_lea.vmem %s3388_s0, 2048  ;;  %p3390_p5 = scmp.lt.s32.totalorder %s4832_s24, %s3388_s0 }
  0xef   : > { %v393_v27 = vld [vmem:[%s3853_s30 + $0x8] sm:$0xff]  ;;  %v395_v29 = vld [vmem:[%s3853_s30 + $0x18] sm:$0xff]  ;;  %v396_v30 = vld [vmem:[%s3853_s30 + $0x20] sm:$0xff]  ;;  %s2261_s17 = sshll.u32 %s5158_s5, 5  ;;  %p3385_p6 = pnand %p3384_p2, %p3736_p3 }
  0xf0   : > { %2722 = vmatpush3.bf16.msra.mxu0 %v2719_v5  ;;  %v397_v31 = vld [vmem:[%s3853_s30 + $0x28] sm:$0xff]  ;;  %v398_v32 = vld [vmem:[%s3853_s30 + $0x30] sm:$0xff]  ;;  %v399_v33 = vld [vmem:[%s3853_s30 + $0x38] sm:$0xff]  ;;  %s2026_s11 = sadd.s32 %s2261_s17, %s2260_s15  ;;  %p3391_p7 = scmp.lt.s32.totalorder %s3389_s9, %s3383_s2 }
  0xf1   : > { %2724 = vmatprep.subr.bf16.mxu0 %v2723_v8  ;;  %v390_v34 = vld [vmem:[%s3861_s3 + $0x10] sm:$0xff]  ;;  %v391_v35 = vld [vmem:[%s3861_s3 + $0x18] sm:$0xff]  ;;  %v1159_v36 = vld [vmem:[#allocation10 + $0x200] sm:$0xff]  ;;  %s2262_s12 = sshll.u32 %s2026_s11, 7  ;;  %p3386_p0 = pneg %p3385_p6 }
  0xf2   : > { %v1160_v37 = vld [vmem:[#allocation10 + $0x208] sm:$0xff]  ;;  %v1143_v39 = vld [vmem:[#allocation10 + $0x180] sm:$0xff]  ;;  %v1161_v44 = vld [vmem:[#allocation10 + $0x210] sm:$0xff]  ;;  %s4838_s16 = scalar_lea.hbm %s5159_s13, %s2262_s12  ;;  %p3392_p13 = por %p3391_p7, %p3390_p5 }
  0xf3   : > { %v2747_v38 = vpack.c.bf16 %v1160_v37, %v1159_v36  ;;  %v1144_v40 = vld [vmem:[#allocation10 + $0x188] sm:$0xff]  ;;  %v1175_v42 = vld [vmem:[#allocation10 + $0x280] sm:$0xff]  ;;  %v1162_v45 = vld [vmem:[#allocation10 + $0x218] sm:$0xff] }
  0xf4   : > { %2726 = vmatpush3.bf16.msra.mxu0 %v2723_v8  ;;  %v2749_v41 = vpack.c.bf16 %v1144_v40, %v1143_v39  ;;  %v1176_v43 = vld [vmem:[#allocation10 + $0x288] sm:$0xff]  ;;  %v2751_v47 = vpack.c.bf16 %v1162_v45, %v1161_v44  ;;  %v1145_v48 = vld [vmem:[#allocation10 + $0x190] sm:$0xff]  ;;  %v1146_v49 = vld [vmem:[#allocation10 + $0x198] sm:$0xff]  ;;  %p3393_p10 = pnand %p3392_p13, %p3386_p0 }
  0xf5   : > { %2728 = vmatprep.subr.bf16.mxu0 %v2727_v12  ;;  %2748 = vmatprep.subr.bf16.mxu1 %v2747_v38  ;;  %v2779_v46 = vpack.c.bf16 %v1176_v43, %v1175_v42  ;;  %v2753_v50 = vpack.c.bf16 %v1146_v49, %v1145_v48  ;;  %v1177_v51 = vld [vmem:[#allocation10 + $0x290] sm:$0xff]  ;;  %v1178_v52 = vld [vmem:[#allocation10 + $0x298] sm:$0xff]  ;;  %v1163_v53 = vld [vmem:[#allocation10 + $0x220] sm:$0xff] }
  0xf6   : > { %2750 = vmatpush3.bf16.msra.mxu1 %v2749_v41  ;;  %v1164_v54 = vld [vmem:[#allocation10 + $0x228] sm:$0xff]  ;;  %v2783_v55 = vpack.c.bf16 %v1178_v52, %v1177_v51  ;;  %v1147_v57 = vld [vmem:[#allocation10 + $0x1a0] sm:$0xff]  ;;  %v1165_v62 = vld [vmem:[#allocation10 + $0x230] sm:$0xff] }
  0xf7   : > { %2752 = vmatprep.subr.bf16.mxu1 %v2751_v47  ;;  %v2755_v56 = vpack.c.bf16 %v1164_v54, %v1163_v53  ;;  %v1148_v58 = vld [vmem:[#allocation10 + $0x1a8] sm:$0xff]  ;;  %v1179_v60 = vld [vmem:[#allocation10 + $0x2a0] sm:$0xff]  ;;  %v1166_v63 = vld [vmem:[#allocation10 + $0x238] sm:$0xff] }
  0xf8   : > { %2730 = vmatpush3.bf16.msra.mxu0 %v2727_v12  ;;  %v2757_v59 = vpack.c.bf16 %v1148_v58, %v1147_v57  ;;  %v1180_v61 = vld [vmem:[#allocation10 + $0x2a8] sm:$0xff]  ;;  %v2759_v1 = vpack.c.bf16 %v1166_v63, %v1165_v62  ;;  %v1149_v2 = vld [vmem:[#allocation10 + $0x1b0] sm:$0xff]  ;;  %v1150_v3 = vld [vmem:[#allocation10 + $0x1b8] sm:$0xff] }
  0xf9   : > { %2732 = vmatprep.subr.bf16.mxu0 %v2731_v15  ;;  %v2787_v0 = vpack.c.bf16 %v1180_v61, %v1179_v60  ;;  %v2761_v4 = vpack.c.bf16 %v1150_v3, %v1149_v2  ;;  %v1181_v5 = vld [vmem:[#allocation10 + $0x2b0] sm:$0xff]  ;;  %v1182_v6 = vld [vmem:[#allocation10 + $0x2b8] sm:$0xff]  ;;  %v1167_v7 = vld [vmem:[#allocation10 + $0x240] sm:$0xff] }
  0xfa   : > { %2754 = vmatpush3.bf16.msra.mxu1 %v2753_v50  ;;  %v1168_v8 = vld [vmem:[#allocation10 + $0x248] sm:$0xff]  ;;  %v2791_v9 = vpack.c.bf16 %v1182_v6, %v1181_v5  ;;  %v1151_v11 = vld [vmem:[#allocation10 + $0x1c0] sm:$0xff]  ;;  %v1169_v16 = vld [vmem:[#allocation10 + $0x250] sm:$0xff] }
  0xfb   : > { %2756 = vmatprep.subr.bf16.mxu1 %v2755_v56  ;;  %v2763_v10 = vpack.c.bf16 %v1168_v8, %v1167_v7  ;;  %v1152_v12 = vld [vmem:[#allocation10 + $0x1c8] sm:$0xff]  ;;  %v1183_v14 = vld [vmem:[#allocation10 + $0x2c0] sm:$0xff]  ;;  %v1170_v17 = vld [vmem:[#allocation10 + $0x258] sm:$0xff]  ;;  %v704_v56 = vlaneseq }
  0xfc   : > { %2734 = vmatpush3.bf16.msra.mxu0 %v2731_v15  ;;  %v2765_v13 = vpack.c.bf16 %v1152_v12, %v1151_v11  ;;  %v1184_v15 = vld [vmem:[#allocation10 + $0x2c8] sm:$0xff]  ;;  %v2767_v19 = vpack.c.bf16 %v1170_v17, %v1169_v16  ;;  %v1153_v20 = vld [vmem:[#allocation10 + $0x1d0] sm:$0xff]  ;;  %v1158_v39 = vld [vmem:[#allocation10 + $0x1f8] sm:$0xff]  ;;  %v3925_v11 = vstv %s2209_s7 }
  0xfd   : > { %2736 = vmatprep.subr.bf16.mxu0 %v2735_v18  ;;  %v1185_v23 = vld [vmem:[#allocation10 + $0x2d0] sm:$0xff]  ;;  %v1190_v42 = vld [vmem:[#allocation10 + $0x2f8] sm:$0xff]  ;;  %v1110_v44 = vld [vmem:[#allocation10 + $0x80] sm:$0xff] }
  0xfe   : > { %2758 = vmatpush3.bf16.msra.mxu1 %v2757_v59  ;;  %v1157_v38 = vld [vmem:[#allocation10 + $0x1f0] sm:$0xff]  ;;  %v1111_v45 = vld [vmem:[#allocation10 + $0x88] sm:$0xff]  ;;  %v1126_v47 = vld [vmem:[#allocation10 + $0x100] sm:$0xff] }
  0xff   : > { %2760 = vmatprep.subr.bf16.mxu1 %v2759_v1  ;;  %v2777_v40 = vpack.c.bf16 %v1158_v39, %v1157_v38  ;;  %v1189_v41 = vld [vmem:[#allocation10 + $0x2f0] sm:$0xff]  ;;  %v1127_v48 = vld [vmem:[#allocation10 + $0x108] sm:$0xff]  ;;  %v3894_v50 = vld [vmem:[#allocation8] ss:$0 sm:$0xff] }
 0x100   : > { %2738 = vmatpush3.bf16.msra.mxu0 %v2735_v18  ;;  %v2795_v18 = vpack.c.bf16 %v1184_v15, %v1183_v14  ;;  %v2807_v43 = vpack.c.bf16 %v1190_v42, %v1189_v41  ;;  %v3891_v49 = vpack.c.bf16 %v1127_v48, %v1126_v47 }
 0x101   : > { %2740 = vmatprep.subr.bf16.mxu0 %v2739_v21 }
 0x102   : > { %2762 = vmatpush3.bf16.msra.mxu1 %v2761_v4  ;;  %4999 = vst [vmem:[#allocation24_spill] sm:$0xff] %v3891_v49 }
 0x103   : > { %2764 = vmatprep.subr.bf16.mxu1 %v2763_v10 }
 0x104   : > { %2742 = vmatpush3.bf16.msra.mxu0 %v2739_v21  ;;  %v1154_v21 = vld [vmem:[#allocation10 + $0x1d8] sm:$0xff] }
 0x105   : > { %2744 = vmatprep.subr.bf16.mxu0 %v2743_v24  ;;  %v2769_v22 = vpack.c.bf16 %v1154_v21, %v1153_v20 }
 0x106   : > { %2766 = vmatpush3.bf16.msra.mxu1 %v2765_v13 }
 0x107   : > { %2768 = vmatprep.subr.bf16.mxu1 %v2767_v19 }
 0x108   : > { %2746 = vmatpush3.bf16.msra.mxu0 %v2743_v24  ;;  %v1186_v24 = vld [vmem:[#allocation10 + $0x2d8] sm:$0xff] }
 0x109   : > { %2780 = vmatprep.subr.bf16.mxu0 %v2779_v46 }
 0x10a   : > { %2770 = vmatpush3.bf16.msra.mxu1 %v2769_v22 }
 0x10b   : > { %2566 = vmatmul.mubr.f32.vlgmr.msra.gmra.mrb[0].mxu0 %v389_v25  ;;  %v1171_v25 = vld [vmem:[#allocation10 + $0x260] sm:$0xff] }
 0x10c   : > { %2568 = vmatprep.mubr.f32.mxu0 %v392_v26  ;;  %2782 = vmatpush3.bf16.msra.mxu0 %v2779_v46  ;;  %v1172_v26 = vld [vmem:[#allocation10 + $0x268] sm:$0xff]  ;;  %v2811_v46 = vpack.c.bf16 %v1111_v45, %v1110_v44 }
 0x10d   : > { %2784 = vmatprep.subr.bf16.mxu0 %v2783_v55 }
 0x10f   : > { %2569 = vmatmul.mubr.f32.gmra.mrb[2].mxu0 %v393_v27  ;;  %v2799_v27 = vpack.c.bf16 %v1186_v24, %v1185_v23 }
 0x110   : > { %2571 = vmatprep.mubr.f32.mxu0 %v394_v28  ;;  %2786 = vmatpush3.bf16.msra.mxu0 %v2783_v55  ;;  %v2771_v28 = vpack.c.bf16 %v1172_v26, %v1171_v25 }
 0x111   : > { %2788 = vmatprep.subr.bf16.mxu0 %v2787_v0 }
 0x112   : > { %2772 = vmatprep.subr.bf16.mxu1 %v2771_v28 }
 0x113   : > { %2572 = vmatmul.mubr.f32.gmra.mrb[4].mxu0 %v395_v29  ;;  %v1155_v29 = vld [vmem:[#allocation10 + $0x1e0] sm:$0xff] }
 0x114   : > { %2574 = vmatprep.mubr.f32.mxu0 %v396_v30  ;;  %2790 = vmatpush3.bf16.msra.mxu0 %v2787_v0  ;;  %v1156_v30 = vld [vmem:[#allocation10 + $0x1e8] sm:$0xff]  ;;  %v3911_v0 = vshrl.u32 %v704_v56, 7 }
 0x115   : > { %2792 = vmatprep.subr.bf16.mxu0 %v2791_v9 }
 0x116   : > { %v3928_v12 = vadd.s32 24, %v3911_v0  ;;  %v3932_v16 = vadd.s32 32, %v3911_v0  ;;  %v3941_v21 = vadd.s32 16, %v3911_v0  ;;  %v3949_v24 = vadd.s32 40, %v3911_v0 }
 0x117   : > { %2575 = vmatmul.mubr.f32.gmra.mrb[6].mxu0 %v397_v31  ;;  %v2773_v31 = vpack.c.bf16 %v1156_v30, %v1155_v29  ;;  %v3953_v25 = vadd.s32 %v3925_v11, %v3911_v0  ;;  %v3984_v45 = vadd.s32 64, %v3911_v0  ;;  %vm4931_vm13 = vcmp.lt.s32.totalorder %v3911_v0, 1 }
 0x118   : > { %2577 = vmatprep.mubr.f32.mxu0 %v398_v32  ;;  %2794 = vmatpush3.bf16.msra.mxu0 %v2791_v9  ;;  %v1187_v32 = vld [vmem:[#allocation10 + $0x2e0] sm:$0xff]  ;;  %v3922_v9 = vadd.s32 8, %v3911_v0  ;;  %v3957_v26 = vadd.s32 %v3925_v11, %v3928_v12  ;;  %v3962_v30 = vadd.s32 %v3925_v11, %v3932_v16  ;;  %v3975_v39 = vadd.s32 %v3925_v11, %v3941_v21 }
 0x119   : > { %2796 = vmatprep.subr.bf16.mxu0 %v2795_v18  ;;  %2774 = vmatpush3.bf16.msra.mxu1 %v2773_v31  ;;  %v3980_v42 = vadd.s32 %v3925_v11, %v3949_v24  ;;  %5003 = vst [vmem:[#allocation28_spill] sm:$0xff] %v3984_v45  ;;  %vm732_vm2 = vcmp.ge.s32.totalorder %v3953_v25, 0  ;;  %vm744_vm3 = vcmp.lt.s32.totalorder %v3953_v25, 256 }
 0x11a   : > { %5000 = vst [vmem:[#allocation25_spill] sm:$0xff] %v3922_v9  ;;  %v3945_v22 = vadd.s32 %v3925_v11, %v3922_v9  ;;  %vm735_vm4 = vcmp.ge.s32.totalorder %v3957_v26, 0  ;;  %vm747_vm5 = vcmp.lt.s32.totalorder %v3957_v26, 256  ;;  %vm734_vm6 = vcmp.ge.s32.totalorder %v3975_v39, 0  ;;  %vm4145_vm11 = vmand %vm732_vm2, %vm744_vm3 }
 0x11b   : > { %2578 = vmatmul.mubr.f32.gmra.mrb[8].mxu0 %v399_v33  ;;  %v1188_v33 = vld [vmem:[#allocation10 + $0x2e8] sm:$0xff]  ;;  %vm746_vm7 = vcmp.lt.s32.totalorder %v3975_v39, 256  ;;  %vm736_vm9 = vcmp.ge.s32.totalorder %v3962_v30, 0  ;;  %vm748_vm10 = vcmp.lt.s32.totalorder %v3962_v30, 256  ;;  %vm737_vm14 = vcmp.ge.s32.totalorder %v3980_v42, 0  ;;  %vm4184_vm2 = vmand %vm735_vm4, %vm747_vm5 }
 0x11c   : > { %2580 = vmatprep.mubr.f32.mxu0 %v390_v34  ;;  %2798 = vmatpush3.bf16.msra.mxu0 %v2795_v18  ;;  %v1173_v34 = vld [vmem:[#allocation10 + $0x270] sm:$0xff]  ;;  %v2803_v36 = vpack.c.bf16 %v1188_v33, %v1187_v32  ;;  %v3968_v33 = vadd.s32 72, %v3911_v0  ;;  %vm733_vm0 = vcmp.ge.s32.totalorder %v3945_v22, 0  ;;  %vm745_vm1 = vcmp.lt.s32.totalorder %v3945_v22, 256  ;;  %vm4203_vm3 = vmand %vm734_vm6, %vm746_vm7 }
 0x11d   : > { %2800 = vmatprep.subr.bf16.mxu0 %v2799_v27  ;;  %vm4130_vm8 = vmand %vm733_vm0, %vm745_vm1  ;;  %vm749_vm15 = vcmp.lt.s32.totalorder %v3980_v42, 256  ;;  %vm4933_vm4 = vcmp.lt.s32.totalorder %v3911_v0, 7  ;;  %v5051_v42 = vmov 0 }
 0x11e   : > { %5001 = vst [vmem:[#allocation26_spill] sm:$0xff] %v3968_v33  ;;  %vm4254_vm0 = vmand %vm736_vm9, %vm748_vm10 }
 0x11f   : > { %2581 = vmatmul.mubr.f32.gmra.mrb[10].mxu0 %v391_v35  ;;  %v1174_v35 = vld [vmem:[#allocation10 + $0x278] sm:$0xff]  ;;  %vm4290_vm9 = vmand %vm737_vm14, %vm749_vm15 }
 0x120   : > { %2802 = vmatpush3.bf16.msra.mxu0 %v2799_v27  ;;  %v2775_v37 = vpack.c.bf16 %v1174_v35, %v1173_v34 }
 0x121   : > { %2804 = vmatprep.subr.bf16.mxu0 %v2803_v36 }
 0x122   : > { %2776 = vmatprep.subr.bf16.mxu1 %v2775_v37 }
 0x123   : > { %2778 = vmatpush3.bf16.msra.mxu1 %v2777_v40 }
 0x124   : > { %2806 = vmatpush3.bf16.msra.mxu0 %v2803_v36  ;;  %2812 = vmatprep.subr.bf16.mxu1 %v2811_v46 }
 0x125   : > { %2808 = vmatprep.subr.bf16.mxu0 %v2807_v43 }
 0x128   : > { %2810 = vmatpush3.bf16.msra.mxu0 %v2807_v43 }
 0x129   : > { %2844 = vmatprep.subr.bf16.mxu0 %v3891_v49 }
 0x1de   : > { %v2567_v51 = vpop.f32.mrb[0].mxu0 }
 0x1df   : > { %v3897_v52 = vadd.f32 %v2567_v51, %v3894_v50  ;;  %v489_v53 = vpop.f32.mrb[1].mxu0 }
 0x1e0   : > { %v3900_v54 = vadd.f32 %v3894_v50, %v489_v53  ;;  %v3988_v53 = vadd.s32 %v3925_v11, %v3968_v33 }
 0x1e1   : > { %v549_v55 = vmin.f32 %v3897_v52, 20.0 }
 0x1e2   : > { %v548_v57 = vmin.f32 %v3900_v54, 20.0  ;;  %v2570_v58 = vpop.f32.mrb[2].mxu0 }
 0x1e3   : > { %v562_v59 = vmul.f32 1.442695, %v549_v55  ;;  %v3905_v60 = vadd.f32 %v2570_v58, %v3894_v50  ;;  %v499_v61 = vpop.f32.mrb[3].mxu0 }
 0x1e4   : > { %v560_v62 = vmul.f32 1.442695, %v548_v57  ;;  %v3909_v63 = vadd.f32 %v3894_v50, %v499_v61 }
 0x1e5   : > { %3123 = vpow2.f32 %v562_v59  ;;  %v551_v1 = vmin.f32 %v3905_v60, 20.0 }
 0x1e6   : > { %3125 = vpow2.f32 %v560_v62  ;;  %v550_v2 = vmin.f32 %v3909_v63, 20.0  ;;  %v2573_v3 = vpop.f32.mrb[4].mxu0 }
 0x1e7   : > { %v566_v4 = vmul.f32 1.442695, %v551_v1  ;;  %v3916_v5 = vadd.f32 %v2573_v3, %v3894_v50  ;;  %v509_v6 = vpop.f32.mrb[5].mxu0 }
 0x1e8   : > { %v564_v7 = vmul.f32 1.442695, %v550_v2  ;;  %v3919_v8 = vadd.f32 %v3894_v50, %v509_v6 }
 0x1e9   : > { %3127 = vpow2.f32 %v566_v4  ;;  %v553_v10 = vmin.f32 %v3916_v5, 20.0 }
 0x1ea   : > { %3129 = vpow2.f32 %v564_v7  ;;  %v552_v13 = vmin.f32 %v3919_v8, 20.0  ;;  %v2576_v14 = vpop.f32.mrb[6].mxu0  ;;  %v4004_v7 = vadd.s32 48, %v3911_v0 }
 0x1eb   : > { %v570_v15 = vmul.f32 1.442695, %v553_v10  ;;  %v3935_v17 = vadd.f32 %v2576_v14, %v3894_v50  ;;  %v519_v18 = vpop.f32.mrb[7].mxu0  ;;  %v4008_v14 = vadd.s32 88, %v3911_v0 }
 0x1ec   : > { %v568_v19 = vmul.f32 1.442695, %v552_v13  ;;  %v3938_v20 = vadd.f32 %v3894_v50, %v519_v18  ;;  %v4012_v18 = vld [vmem:[#allocation10 + $0x8] sm:$0xff] }
 0x1ed   : > { %3131 = vpow2.f32 %v570_v15  ;;  %v555_v23 = vmin.f32 %v3935_v17, 20.0  ;;  %5006 = vst [vmem:[#allocation31_spill] sm:$0xff] %v4008_v14  ;;  %v4010_v15 = vld [vmem:[#allocation10] sm:$0xff] }
 0x1ee   : > { %3133 = vpow2.f32 %v568_v19  ;;  %v554_v27 = vmin.f32 %v3938_v20, 20.0  ;;  %v2579_v28 = vpop.f32.mrb[8].mxu0 }
 0x1ef   : > { %v3124_v29 = vpop.eup %3123  ;;  %v574_v31 = vmul.f32 1.442695, %v555_v23  ;;  %v3965_v32 = vadd.f32 %v2579_v28, %v3894_v50  ;;  %v529_v34 = vpop.f32.mrb[9].mxu0 }
 0x1f0   : > { %v3126_v35 = vpop.eup %3125  ;;  %v585_v36 = vadd.f32 2.0, %v3124_v29  ;;  %v572_v37 = vmul.f32 1.442695, %v554_v27  ;;  %v3971_v38 = vadd.f32 %v3894_v50, %v529_v34 }
 0x1f1   : > { %v584_v40 = vadd.f32 2.0, %v3126_v35  ;;  %3135 = vpow2.f32 %v574_v31  ;;  %v557_v41 = vmin.f32 %v3965_v32, 20.0 }
 0x1f2   : > { %5002 = vst [vmem:[#allocation27_spill] sm:$0xff] %v3971_v38  ;;  %v597_v43 = vmul.f32 %v3124_v29, %v585_v36  ;;  %3137 = vpow2.f32 %v572_v37  ;;  %v556_v44 = vmin.f32 %v3971_v38, 20.0  ;;  %v2582_v46 = vpop.f32.mrb[10].mxu0  ;;  %v4022_v36 = vadd.s32 %v3925_v11, %v3984_v45  ;;  %v1130_v45 = vld [vmem:[#allocation10 + $0x120] sm:$0xff] }
 0x1f3   : > { %v3128_v47 = vpop.eup %3127  ;;  %v596_v48 = vmul.f32 %v3126_v35, %v584_v40  ;;  %v578_v51 = vmul.f32 1.442695, %v557_v41  ;;  %v3991_v55 = vadd.f32 %v2582_v46, %v3894_v50  ;;  %v539_v56 = vpop.f32.mrb[11].mxu0  ;;  %v4026_v40 = vld [vmem:[#allocation10 + $0x90] sm:$0xff]  ;;  %v4028_v41 = vld [vmem:[#allocation10 + $0x98] sm:$0xff] }
 0x1f4   : > { %v3130_v57 = vpop.eup %3129  ;;  %v3993_v58 = vadd.f32 2.0, %v597_v43  ;;  %v587_v59 = vadd.f32 2.0, %v3128_v47  ;;  %v576_v61 = vmul.f32 1.442695, %v556_v44  ;;  %v3996_v62 = vadd.f32 %v3894_v50, %v539_v56  ;;  %v4031_v46 = vld [vmem:[#allocation10 + $0x10] sm:$0xff] }
 0x1f5   : > { %5004 = vst [vmem:[#allocation29_spill] sm:$0xff] %v3991_v55  ;;  %v3998_v1 = vadd.f32 2.0, %v596_v48  ;;  %v586_v2 = vadd.f32 2.0, %v3130_v57  ;;  %3139 = vpow2.f32 %v578_v51  ;;  %v559_v3 = vmin.f32 %v3991_v55, 20.0  ;;  %5007 = vst [vmem:[#allocation32_spill] sm:$0xff] %v4031_v46 }
 0x1f6   : > { %5005 = vst [vmem:[#allocation30_spill] sm:$0xff] %v3996_v62  ;;  %3141 = vrcp.f32 %v3993_v58  ;;  %v599_v4 = vmul.f32 %v3128_v47, %v587_v59  ;;  %v558_v6 = vmin.f32 %v3996_v62, 20.0  ;;  %v4033_v47 = vld [vmem:[#allocation10 + $0x18] sm:$0xff]  ;;  %v4037_v48 = vadd.s32 %v3925_v11, %v4004_v7 }
 0x1f7   : > { %v3132_v10 = vpop.eup %3131  ;;  %3143 = vrcp.f32 %v3998_v1  ;;  %v598_v13 = vmul.f32 %v3130_v57, %v586_v2  ;;  %v582_v50 = vmul.f32 1.442695, %v559_v3  ;;  %v4040_v51 = vadd.s32 56, %v3911_v0  ;;  %v1128_v2 = vld [vmem:[#allocation10 + $0x110] sm:$0xff]  ;;  %v1129_v3 = vld [vmem:[#allocation10 + $0x118] sm:$0xff] }
 0x1f8   : > { %v3134_v19 = vpop.eup %3133  ;;  %v4014_v23 = vadd.f32 2.0, %v599_v4  ;;  %v589_v27 = vadd.f32 2.0, %v3132_v10  ;;  %3145 = vpow2.f32 %v576_v61  ;;  %v580_v28 = vmul.f32 1.442695, %v558_v6 }
 0x1f9   : > { %v4016_v29 = vadd.f32 2.0, %v598_v13  ;;  %v588_v31 = vadd.f32 2.0, %v3134_v19  ;;  %3147 = vpow2.f32 %v582_v50  ;;  %v4046_v61 = vadd.s32 %v3925_v11, %v4008_v14  ;;  %v4053_v50 = vld [vmem:[#allocation10 + $0xa0] sm:$0xff] }
 0x1fa   : > { %3149 = vrcp.f32 %v4014_v23  ;;  %v601_v35 = vmul.f32 %v3132_v10, %v589_v27  ;;  %5008 = vst [vmem:[#allocation33_spill] sm:$0xff] %v4053_v50  ;;  %v4057_v27 = vadd.s32 80, %v3911_v0  ;;  %v4074_v37 = vadd.s32 %v3925_v11, %v4040_v51 }
 0x1fb   : > { %v3136_v43 = vpop.eup %3135  ;;  %3151 = vrcp.f32 %v4016_v29  ;;  %v600_v44 = vmul.f32 %v3134_v19, %v588_v31  ;;  %v4061_v31 = vld [vmem:[#allocation10 + $0xa8] sm:$0xff]  ;;  %vm750_vm1 = vcmp.lt.s32.totalorder %v4037_v48, 256  ;;  %vm5050_vm10 = vcmp.ge.s32.totalorder %v4037_v48, 0 }
 0x1fc   : > { %v3138_v56 = vpop.eup %3137  ;;  %v4042_v57 = vadd.f32 2.0, %v601_v35  ;;  %v591_v59 = vadd.f32 2.0, %v3136_v43  ;;  %3153 = vpow2.f32 %v580_v28  ;;  %5009 = vst [vmem:[#allocation34_spill] sm:$0xff] %v4057_v27  ;;  %5010 = vst [vmem:[#allocation35_spill] sm:$0xff] %v4061_v31  ;;  %v4063_v35 = vld [vmem:[#allocation10 + $0x20] sm:$0xff]  ;;  %vm5053_vm15 = vcmp.lt.s32.totalorder %v4074_v37, 256 }
 0x1fd   : > { %v4048_v4 = vadd.f32 2.0, %v600_v44  ;;  %v590_v6 = vadd.f32 2.0, %v3138_v56  ;;  %5011 = vst [vmem:[#allocation36_spill] sm:$0xff] %v4063_v35  ;;  %v4065_v44 = vld [vmem:[#allocation10 + $0x28] sm:$0xff]  ;;  %vm4309_vm14 = vmand %vm5050_vm10, %vm750_vm1  ;;  %vm5060_vm10 = vcmp.lt.s32.totalorder %v3988_v53, 256 }
 0x1fe   : > { %3155 = vrcp.f32 %v4042_v57  ;;  %v603_v19 = vmul.f32 %v3136_v43, %v591_v59  ;;  %5012 = vst [vmem:[#allocation37_spill] sm:$0xff] %v4065_v44  ;;  %v4070_v59 = vpack.c.bf16 %v1129_v3, %v1128_v2  ;;  %v5052_v42 = vsel %vm4309_vm14, 4294967295, %v5051_v42 }
 0x1ff   : > { %v3140_v10 = vpop.eup %3139  ;;  %3157 = vrcp.f32 %v4048_v4  ;;  %v602_v43 = vmul.f32 %v3138_v56, %v590_v6  ;;  %v1131_v56 = vld [vmem:[#allocation10 + $0x128] sm:$0xff] }
 0x200   : > { %5013 = vst [vmem:[#allocation38_spill] sm:$0xff] %v4070_v59  ;;  %v3142_v28 = vpop.eup %3141  ;;  %v4078_v13 = vadd.f32 2.0, %v603_v19  ;;  %v593_v34 = vadd.f32 2.0, %v3140_v10  ;;  %v4089_v19 = vld [vmem:[#allocation10 + $0xb0] sm:$0xff]  ;;  %v4091_v59 = vld [vmem:[#allocation10 + $0xb8] sm:$0xff]  ;;  %v4102_v62 = vpack.c.bf16 %v1131_v56, %v1130_v45 }
 0x201   : > { %v3144_v2 = vpop.eup %3143  ;;  %v633_v3 = vmul.f32 %v3142_v28, %v3993_v58  ;;  %v4083_v6 = vadd.f32 2.0, %v602_v43  ;;  %5014 = vst [vmem:[#allocation39_spill] sm:$0xff] %v4089_v19  ;;  %5015 = vst [vmem:[#allocation40_spill] sm:$0xff] %v4091_v59  ;;  %v4097_v58 = vadd.s32 %v3925_v11, %v4057_v27 }
 0x202   : > { %v3146_v14 = vpop.eup %3145  ;;  %v632_v9 = vmul.f32 %v3144_v2, %v3998_v1  ;;  %3159 = vrcp.f32 %v4078_v13  ;;  %v605_v55 = vmul.f32 %v3140_v10, %v593_v34  ;;  %5016 = vst [vmem:[#allocation41_spill] sm:$0xff] %v4102_v62  ;;  %v4110_v10 = vld [vmem:[#allocation10 + $0x30] sm:$0xff] }
 0x203   : > { %v3148_v43 = vpop.eup %3147  ;;  %v645_v38 = vsub.f32 2.0, %v633_v3  ;;  %3161 = vrcp.f32 %v4083_v6  ;;  %v592_v33 = vadd.f32 2.0, %v3146_v14  ;;  %v4112_v3 = vld [vmem:[#allocation10 + $0x38] sm:$0xff] }
 0x204   : > { %v3150_v35 = vpop.eup %3149  ;;  %v644_v1 = vsub.f32 2.0, %v632_v9  ;;  %v4104_v44 = vadd.f32 2.0, %v605_v55  ;;  %v595_v34 = vadd.f32 2.0, %v3148_v43 }
 0x205   : > { %v3152_v27 = vpop.eup %3151  ;;  %v657_v50 = vmul.f32 %v3142_v28, %v645_v38  ;;  %v635_v45 = vmul.f32 %v3150_v35, %v4014_v23  ;;  %v604_v56 = vmul.f32 %v3146_v14, %v592_v33 }
 0x206   : > { %v3154_v55 = vpop.eup %3153  ;;  %v656_v62 = vmul.f32 %v3144_v2, %v644_v1  ;;  %v634_v31 = vmul.f32 %v3152_v27, %v4016_v29  ;;  %3163 = vrcp.f32 %v4104_v44  ;;  %v607_v49 = vmul.f32 %v3148_v43, %v595_v34  ;;  %v4155_v43 = vld [vmem:[#allocation10 + $0xc0] sm:$0xff] }
 0x207   : > { %v669_v46 = vmul.f32 2.0, %v657_v50  ;;  %v647_v11 = vsub.f32 2.0, %v635_v45  ;;  %v4118_v19 = vadd.f32 2.0, %v604_v56  ;;  %v594_v14 = vadd.f32 2.0, %v3154_v55 }
 0x208   : > { %v3156_v38 = vpop.eup %3155  ;;  %v668_v28 = vmul.f32 2.0, %v656_v62  ;;  %v646_v23 = vsub.f32 2.0, %v634_v31  ;;  %v4122_v33 = vadd.f32 2.0, %v607_v49  ;;  %v5029_v34 = vand.u32 15, %v3928_v12 }
 0x209   : > { %v3158_v9 = vpop.eup %3157  ;;  %v681_v2 = vsub.f32 1.0, %v669_v46  ;;  %v659_v1 = vmul.f32 %v3150_v35, %v647_v11  ;;  %v637_v29 = vmul.f32 %v3156_v38, %v4042_v57  ;;  %3165 = vrcp.f32 %v4118_v19 }
 0x20a   : > { %v680_v62 = vsub.f32 1.0, %v668_v28  ;;  %v658_v31 = vmul.f32 %v3152_v27, %v646_v23  ;;  %v636_v49 = vmul.f32 %v3158_v9, %v4048_v4  ;;  %3167 = vrcp.f32 %v4122_v33 }
 0x20b   : > { %v4139_v46 = vmul.f32 %v681_v2, %v3897_v52  ;;  %v671_v57 = vmul.f32 2.0, %v659_v1  ;;  %v649_v27 = vsub.f32 2.0, %v637_v29  ;;  %v5021_v4 = vand.u32 15, %v3941_v21  ;;  %v4157_v52 = vld [vmem:[#allocation10 + $0xc8] sm:$0xff] }
 0x20c   : > { %v5022_v35 = vmov 0  ;;  %v3160_v11 = vpop.eup %3159  ;;  %v4161_v25 = vmul.f32 %v680_v62, %v3900_v54  ;;  %v670_v45 = vmul.f32 2.0, %v658_v31  ;;  %v648_v56 = vsub.f32 2.0, %v636_v49  ;;  %v1133_v31 = vld [vmem:[#allocation10 + $0x138] sm:$0xff] }
 0x20d   : > { %vm4151_vm12 = vcmp.ge.s32.totalorder %v5021_v4, 1  ;;  %v606_v28 = vmul.f32 %v3154_v55, %v594_v14  ;;  %v3162_v21 = vpop.eup %3161  ;;  %v4169_v23 = vsel %vm4130_vm8, %v4139_v46, 0.0  ;;  %v683_v2 = vsub.f32 1.0, %v671_v57  ;;  %v1650_v57 = vld [vmem:[#allocation10 + $0x430] sm:$0xff] }
 0x20e   : > { %v5023_v35 = vsel %vm4151_vm12, 4294967295, %v5022_v35  ;;  %v661_v1 = vmul.f32 %v3156_v38, %v649_v27  ;;  %v639_v54 = vmul.f32 %v3160_v11, %v4078_v13  ;;  %v4930_v55 = vrot.slane %v4169_v23, 7 }
 0x20f   : > { %v4178_v14 = vsel %vm4145_vm11, %v4161_v25, 0.0  ;;  %v5024_v29 = vmov 0  ;;  %v682_v13 = vsub.f32 1.0, %v670_v45  ;;  %v4195_v49 = vmul.f32 %v683_v2, %v3905_v60 }
 0x210   : > { %v5025_v29 = vsel %vm4184_vm2, 4294967295, %v5024_v29  ;;  %v673_v26 = vmul.f32 2.0, %v661_v1  ;;  %v3164_v27 = vpop.eup %3163  ;;  %v660_v45 = vmul.f32 %v3158_v9, %v648_v56  ;;  %v651_v60 = vsub.f32 2.0, %v639_v54 }
 0x211   : > { %5026 = vst [vmem:[#allocation42_spill] sm:$0xff] %v5025_v29  ;;  %v4208_v4 = vmul.f32 %v682_v13, %v3909_v63  ;;  %v638_v2 = vmul.f32 %v3162_v21, %v4083_v6  ;;  %v4215_v1 = vsel %vm4184_vm2, %v4195_v49, 0.0  ;;  %v641_v38 = vmul.f32 %v3164_v27, %v4104_v44  ;;  %v5101_v29 = vld [vmem:[#allocation41_spill] sm:$0xff] }
 0x212   : > { %v685_v39 = vsub.f32 1.0, %v673_v26  ;;  %v4218_v59 = vadd.f32 2.0, %v606_v28  ;;  %vm4222_vm6 = vcmp.lt.s32.totalorder %v5029_v34, 15  ;;  %v5030_v63 = vmov 0 }
 0x213   : > { %v5031_v63 = vsel %vm4222_vm6, 4294967295, %v5030_v63  ;;  %v672_v9 = vmul.f32 2.0, %v660_v45  ;;  %v663_v6 = vmul.f32 %v3160_v11, %v651_v60  ;;  %v650_v56 = vsub.f32 2.0, %v638_v2  ;;  %2210 = vmatprep.mubr.msk.f32.mxu1 %vm4203_vm3, %v4208_v4  ;;  %v3166_v12 = vpop.eup %3165 }
 0x214   : > { %v4231_v54 = vsel %vm4203_vm3, %v4208_v4, 0.0  ;;  %v4237_v44 = vmul.f32 %v685_v39, %v3916_v5  ;;  %v653_v34 = vsub.f32 2.0, %v641_v38  ;;  %3169 = vrcp.f32 %v4218_v59  ;;  %v3168_v28 = vpop.eup %3167 }
 0x215   : > { %v962_v11 = vrot.slane %v4231_v54, 7  ;;  %v684_v13 = vsub.f32 1.0, %v672_v9  ;;  %v675_v26 = vmul.f32 2.0, %v663_v6  ;;  %v662_v45 = vmul.f32 %v3162_v21, %v650_v56 }
 0x216   : > { %5032 = vst [vmem:[#allocation43_spill] sm:$0xff] %v4237_v44  ;;  %v640_v60 = vmul.f32 %v3166_v12, %v4118_v19  ;;  %v5033_v2 = vand.u32 15, %v3932_v16  ;;  %v5034_v5 = vmov 0  ;;  %v5037_v38 = vmov 0 }
 0x217   : > { %v5038_v38 = vsel %vm4254_vm0, 4294967295, %v5037_v38  ;;  %v665_v39 = vmul.f32 %v3164_v27, %v653_v34  ;;  %v643_v9 = vmul.f32 %v3168_v28, %v4122_v33  ;;  %v4936_v21 = vrot.slane %v4231_v54, 1 }
 0x218   : > { %vm4246_vm5 = vcmp.ge.s32.totalorder %v5033_v2, 1  ;;  %5039 = vst [vmem:[#allocation45_spill] sm:$0xff] %v5038_v38  ;;  %v4264_v16 = vsel %vm4931_vm13, %v4930_v55, %v962_v11  ;;  %v5040_v19 = vand.u32 15, %v3949_v24  ;;  %v5041_v6 = vmov 0 }
 0x219   : > { %v5035_v5 = vsel %vm4246_vm5, 4294967295, %v5034_v5  ;;  %v4273_v30 = vmul.f32 %v684_v13, %v3919_v8  ;;  %v687_v27 = vsub.f32 1.0, %v675_v26  ;;  %v674_v56 = vmul.f32 2.0, %v662_v45  ;;  %2211 = vmatmul.mubr.msk.f32.vlgmr.msra.gmra.mrb[0].mxu1 %vm4151_vm12, %v4264_v16 }
 0x21a   : > { %5036 = vst [vmem:[#allocation44_spill] sm:$0xff] %v5035_v5  ;;  %vm4268_vm7 = vcmp.lt.s32.totalorder %v5040_v19, 15  ;;  %v652_v33 = vsub.f32 2.0, %v640_v60  ;;  %v677_v34 = vmul.f32 2.0, %v665_v39  ;;  %v655_v2 = vsub.f32 2.0, %v643_v9  ;;  %2212 = vmatprep.mubr.msk.f32.mxu1 %vm4184_vm2, %v4195_v49 }
 0x21b   : > { %v5042_v6 = vsel %vm4268_vm7, 4294967295, %v5041_v6  ;;  %5044 = vst [vmem:[#allocation47_spill] sm:$0xff] %v4273_v30  ;;  %v1036_v55 = vrot.slane %v4215_v1, 1  ;;  %v5045_v24 = vpack.c.bf16 %v4012_v18, %v4010_v15  ;;  %v963_v8 = vrot.slane %v4215_v1, 7 }
 0x21c   : > { %5043 = vst [vmem:[#allocation46_spill] sm:$0xff] %v5042_v6  ;;  %v5046_v13 = vmov 0  ;;  %v4297_v26 = vsel %vm4254_vm0, %v4273_v30, 0.0  ;;  %v4300_v15 = vmul.f32 %v687_v27, %v3935_v17  ;;  %v686_v18 = vsub.f32 1.0, %v674_v56  ;;  %v1121_v6 = vld [vmem:[#allocation10 + $0xd8] sm:$0xff] }
 0x21d   : > { %2814 = vmatpush3.bf16.msra.mxu1 %v5045_v24  ;;  %v5047_v13 = vsel %vm4290_vm9, 4294967295, %v5046_v13  ;;  %v664_v45 = vmul.f32 %v3166_v12, %v652_v33  ;;  %v5049_v1 = vpack.c.bf16 %v4028_v41, %v4026_v40  ;;  %v1037_v60 = vrot.slane %v4297_v26, 1 }
 0x21e   : > { %5048 = vst [vmem:[#allocation48_spill] sm:$0xff] %v5047_v13  ;;  %v689_v39 = vsub.f32 1.0, %v677_v34  ;;  %v667_v9 = vmul.f32 %v3168_v28, %v655_v2  ;;  %v4318_v17 = vsel %vm4933_vm4, %v4936_v21, %v1036_v55  ;;  %vm5054_vm13 = vcmp.ge.s32.totalorder %v4074_v37, 0  ;;  %v3170_v24 = vpop.eup %3169  ;;  %v5092_v21 = vld [vmem:[#allocation36_spill] sm:$0xff] }
 0x21f   : > { %2816 = vmatprep.subr.bf16.mxu1 %v5049_v1  ;;  %vm4324_vm2 = vmand %vm5054_vm13, %vm5053_vm15  ;;  %v5057_v41 = vand.u32 15, %v4040_v51  ;;  %v4335_v12 = vmul.f32 %v686_v18, %v3938_v20  ;;  %vm5061_vm4 = vcmp.ge.s32.totalorder %v3988_v53, 0  ;;  %v676_v37 = vmul.f32 2.0, %v664_v45  ;;  %2615 = vmatprep.mubr.f32.mxu0 %v4318_v17  ;;  %v5073_v45 = vld [vmem:[#allocation24_spill] sm:$0xff] }
 0x220   : > { %vm4341_vm12 = vmand %vm5061_vm4, %vm5060_vm10  ;;  %vm5064_vm13 = vcmp.lt.s32.totalorder %v3911_v0, 1  ;;  %v4353_v20 = vsel %vm4290_vm9, %v4237_v44, 0.0  ;;  %v4356_v19 = vmul.f32 %v689_v39, %v3965_v32  ;;  %v679_v53 = vmul.f32 2.0, %v667_v9  ;;  %v5067_v32 = vld [vmem:[#allocation32_spill] sm:$0xff]  ;;  %v5075_v9 = vld [vmem:[#allocation27_spill] sm:$0xff] }
 0x221   : > { %vm4330_vm1 = vcmp.lt.s32.totalorder %v5057_v41, 15  ;;  %v4348_v51 = vsel %vm5064_vm13, %v962_v11, %v963_v8  ;;  %vm5066_vm4 = vcmp.lt.s32.totalorder %v3911_v0, 7  ;;  %v1038_v56 = vrot.slane %v4353_v20, 1 }
 0x222   : > { %5065 = vst [vmem:[#allocation49_spill] sm:$0xff] %v4348_v51  ;;  %1261 = vmatmul.mubr.f32.gmra.mrb[2].mxu1 %v4348_v51  ;;  %v4361_v27 = vsel %vm5066_vm4, %v1036_v55, %v1037_v60  ;;  %v688_v33 = vsub.f32 1.0, %v676_v37  ;;  %v5068_v11 = vpack.c.bf16 %v4033_v47, %v5067_v32  ;;  %v964_v34 = vrot.slane %v4297_v26, 7  ;;  %v1135_v51 = vld [vmem:[#allocation10 + $0x148] sm:$0xff] }
 0x223   : > { %2616 = vmatmul.mubr.msk.f32.vlgmr.msra.gmra.mrb[12].mxu0 %vm4222_vm6, %v4361_v27  ;;  %v4376_v55 = vsel %vm4309_vm14, %v4335_v12, 0.0  ;;  %v4381_v2 = vsel %vm4324_vm2, %v4300_v15, 0.0  ;;  %v4386_v18 = vsel %vm4341_vm12, %v4356_v19, 0.0  ;;  %vm5069_vm13 = vcmp.lt.s32.totalorder %v4022_v36, 256  ;;  %2213 = vmatprep.mubr.msk.f32.mxu1 %vm4254_vm0, %v4273_v30 }
 0x224   : > { %2818 = vmatpush3.bf16.msra.mxu1 %v5068_v11  ;;  %vm5070_vm4 = vcmp.ge.s32.totalorder %v4022_v36, 0  ;;  %v691_v26 = vsub.f32 1.0, %v679_v53  ;;  %2846 = vmatpush3.bf16.msra.mxu0 %v5073_v45  ;;  %vm5074_vm10 = vcmp.lt.s32.totalorder %v3911_v0, 7  ;;  %v1039_v39 = vrot.slane %v4376_v55, 1  ;;  %v5081_v53 = vld [vmem:[#allocation35_spill] sm:$0xff]  ;;  %v5086_v45 = vld [vmem:[#allocation29_spill] sm:$0xff] }
 0x225   : > { %vm4392_vm15 = vmand %vm5070_vm4, %vm5069_vm13  ;;  %v4402_v1 = vsel %vm5074_vm10, %v1037_v60, %v1038_v56  ;;  %v4406_v41 = vmul.f32 %v688_v33, %v5075_v9  ;;  %vm5076_vm13 = vcmp.lt.s32.totalorder %v4046_v61, 256  ;;  %vm5077_vm4 = vcmp.ge.s32.totalorder %v4046_v61, 0  ;;  %v5082_v60 = vld [vmem:[#allocation33_spill] sm:$0xff]  ;;  %v5088_v9 = vld [vmem:[#allocation38_spill] sm:$0xff] }
 0x226   : > { %vm4412_vm6 = vmand %vm5077_vm4, %vm5076_vm13  ;;  %v5078_v36 = vmov 0  ;;  %v642_v37 = vmul.f32 %v3170_v24, %v4218_v59  ;;  %2618 = vmatprep.mubr.f32.mxu0 %v4402_v1  ;;  %v5083_v32 = vpack.c.bf16 %v5081_v53, %v5082_v60  ;;  %vm5084_vm10 = vcmp.lt.s32.totalorder %v3911_v0, 1  ;;  %2848 = vmatprep.subr.bf16.mxu0 %v5088_v9 }
 0x227   : > { %v5079_v36 = vsel %vm4412_vm6, 4294967295, %v5078_v36  ;;  %v4423_v33 = vsel %vm5084_vm10, %v963_v8, %v964_v34  ;;  %v1040_v11 = vrot.slane %v4381_v2, 1  ;;  %v4427_v61 = vmul.f32 %v691_v26, %v5086_v45  ;;  %v5091_v45 = vld [vmem:[#allocation37_spill] sm:$0xff] }
 0x228   : > { %5080 = vst [vmem:[#allocation32_spill] sm:$0xff] %v5079_v36  ;;  %2820 = vmatprep.subr.bf16.mxu1 %v5083_v32  ;;  %5085 = vst [vmem:[#allocation24_spill] sm:$0xff] %v4423_v33  ;;  %2214 = vmatmul.mubr.msk.f32.gmra.mrb[4].mxu1 %vm4246_vm5, %v4423_v33  ;;  %vm5089_vm13 = vcmp.lt.s32.totalorder %v3911_v0, 7  ;;  %v965_v53 = vrot.slane %v4353_v20, 7  ;;  %v960_v60 = vrot.slane %v4178_v14, 7  ;;  %v4443_v26 = vsel %vm4392_vm15, %v4406_v41, 0.0 }
 0x229   : > { %5087 = vst [vmem:[#allocation27_spill] sm:$0xff] %v4427_v61  ;;  %v4435_v59 = vsel %vm5089_vm13, %v1038_v56, %v1039_v39  ;;  %v654_v32 = vsub.f32 2.0, %v642_v37  ;;  %v5093_v56 = vpack.c.bf16 %v5091_v45, %v5092_v21  ;;  %vm5094_vm4 = vmmov %vm5089_vm13  ;;  %v1132_v8 = vld [vmem:[#allocation10 + $0x130] sm:$0xff]  ;;  %v4458_v62 = vsel %vm4412_vm6, %v4427_v61, 0.0  ;;  %2850 = vmatpush3.bf16.msra.mxu0 %v5088_v9  ;;  %2215 = vmatprep.mubr.msk.f32.mxu1 %vm4290_vm9, %v4237_v44  ;;  %v1102_v37 = vld [vmem:[#allocation10 + $0x40] sm:$0xff] }
 0x22a   : > { %5090 = vst [vmem:[#allocation35_spill] sm:$0xff] %v4435_v59  ;;  %2619 = vmatmul.mubr.msk.f32.gmra.mrb[14].mxu0 %vm4268_vm7, %v4435_v59  ;;  %v4453_v20 = vsel %vm5094_vm4, %v1039_v39, %v1040_v11  ;;  %v4466_v21 = vsel %vm5084_vm10, %v964_v34, %v965_v53  ;;  %v1041_v39 = vrot.slane %v4443_v26, 1  ;;  %v1103_v45 = vld [vmem:[#allocation10 + $0x48] sm:$0xff]  ;;  %v5096_v36 = vrot.slane %v4178_v14, 1  ;;  %vm5097_vm13 = vmmov %vm5094_vm4  ;;  %v1120_v9 = vld [vmem:[#allocation10 + $0xd0] sm:$0xff]  ;;  %2852 = vmatprep.subr.bf16.mxu0 %v5101_v29 }
 0x22b   : > { %2822 = vmatpush3.bf16.msra.mxu1 %v5093_v56  ;;  %v5095_v56 = vrot.slane %v4169_v23, 1  ;;  %v971_v13 = vrot.slane %v4458_v62, 7  ;;  %v4962_v44 = vrot.slane %v4458_v62, 1  ;;  %v666_v5 = vmul.f32 %v3170_v24, %v654_v32  ;;  %2621 = vmatprep.mubr.f32.mxu0 %v4453_v20  ;;  %v5098_v34 = vld [vmem:[#allocation40_spill] sm:$0xff]  ;;  %v5099_v33 = vld [vmem:[#allocation39_spill] sm:$0xff]  ;;  %vm5103_vm10 = vmmov %vm5094_vm4 }
 0x22c   : > { %v5100_v38 = vpack.c.bf16 %v5098_v34, %v5099_v33  ;;  %v966_v30 = vrot.slane %v4376_v55, 7  ;;  %v1134_v59 = vld [vmem:[#allocation10 + $0x140] sm:$0xff]  ;;  %1271 = vmatmul.mubr.f32.gmra.mrb[6].mxu1 %v4466_v21  ;;  %v5102_v24 = vrot.slane %v4386_v18, 1  ;;  %v5104_v55 = vand.u32 15, %v4004_v7 }
 0x22d   : > { %v4475_v61 = vsel %vm5097_vm13, %v5096_v36, %v5095_v56  ;;  %v4488_v36 = vsel %vm5094_vm4, %v1040_v11, %v1041_v39  ;;  %v678_v56 = vmul.f32 2.0, %v666_v5  ;;  %v5107_v11 = vpack.c.bf16 %v4112_v3, %v4110_v10  ;;  %2854 = vmatpush3.bf16.msra.mxu0 %v5101_v29  ;;  %2216 = vmatprep.mubr.msk.f32.mxu1 %vm4309_vm14, %v4335_v12 }
 0x22e   : > { %2824 = vmatprep.subr.bf16.mxu1 %v5100_v38  ;;  %v4494_v32 = vsel %vm5103_vm10, %v1041_v39, %v5102_v24  ;;  %v2855_v38 = vpack.c.bf16 %v1133_v31, %v1132_v8  ;;  %vm4498_vm13 = vcmp.ge.s32.totalorder %v5104_v55, 1  ;;  %2622 = vmatmul.mubr.msk.f32.gmra.mrb[16].mxu0 %vm4330_vm1, %v4488_v36  ;;  %v2829_v34 = vpack.c.bf16 %v1103_v45, %v1102_v37  ;;  %v1104_v39 = vld [vmem:[#allocation10 + $0x50] sm:$0xff]  ;;  %v1105_v37 = vld [vmem:[#allocation10 + $0x58] sm:$0xff] }
 0x22f   : > { %2826 = vmatpush3.bf16.msra.mxu1 %v5107_v11  ;;  %vm5108_vm4 = vcmp.lt.s32.totalorder %v3911_v0, 1  ;;  %v5109_v7 = vrot.slane %v4231_v54, 1  ;;  %v5110_v8 = vrot.slane %v4169_v23, 1  ;;  %v2831_v10 = vpack.c.bf16 %v1121_v6, %v1120_v9  ;;  %2624 = vmatprep.mubr.f32.mxu0 %v4494_v32  ;;  %v5122_v9 = vld [vmem:[#allocation30_spill] sm:$0xff]  ;;  %v5123_v11 = vld [vmem:[#allocation28_spill] sm:$0xff] }
 0x230   : > { %v4512_v31 = vsel %vm5108_vm4, %v971_v13, %v960_v60  ;;  %v2859_v3 = vpack.c.bf16 %v1135_v51, %v1134_v59  ;;  %v5111_v45 = vrot.slane %v4169_v23, 7  ;;  %v690_v24 = vsub.f32 1.0, %v678_v56  ;;  %v1122_v51 = vld [vmem:[#allocation10 + $0xe0] sm:$0xff]  ;;  %v1123_v59 = vld [vmem:[#allocation10 + $0xe8] sm:$0xff]  ;;  %2856 = vmatprep.subr.bf16.mxu0 %v2855_v38 }
 0x231   : > { %v4520_v5 = vsel %vm5103_vm10, %v5110_v8, %v5109_v7  ;;  %v5112_v29 = vpack.c.bf16 %v4157_v52, %v4155_v43  ;;  %vm5113_vm10 = vmmov %vm5108_vm4  ;;  %v967_v6 = vrot.slane %v4381_v2, 7  ;;  %v5114_v23 = vrot.slane %v4178_v14, 1  ;;  %v5121_v52 = vld [vmem:[#allocation26_spill] sm:$0xff]  ;;  %v1106_v8 = vld [vmem:[#allocation10 + $0x60] sm:$0xff]  ;;  %2858 = vmatpush3.bf16.msra.mxu0 %v2855_v38 }
 0x232   : > { %v4530_v54 = vsel %vm5108_vm4, %v960_v60, %v5111_v45  ;;  %v4538_v55 = vsel %vm5113_vm10, %v965_v53, %v966_v30  ;;  %vm5115_vm4 = vcmp.lt.s32.totalorder %v3911_v0, 7  ;;  %vm5117_vm6 = vcmp.lt.s32.totalorder %v4097_v58, 256  ;;  %v1136_v2 = vld [vmem:[#allocation10 + $0x150] sm:$0xff]  ;;  %v1137_v53 = vld [vmem:[#allocation10 + $0x158] sm:$0xff]  ;;  %2860 = vmatprep.subr.bf16.mxu0 %v2859_v3  ;;  %v5154_v48 = vld [vmem:[#allocation32_spill] sm:$0xff] }
 0x233   : > { %2828 = vmatprep.subr.bf16.mxu1 %v5112_v29  ;;  %v4547_v60 = vsel %vm5115_vm4, %v4962_v44, %v5114_v23  ;;  %vm5118_vm14 = vcmp.ge.s32.totalorder %v4097_v58, 0  ;;  %v5119_v43 = vmov 0  ;;  %2217 = vmatmul.mubr.msk.f32.gmra.mrb[8].mxu1 %vm4498_vm13, %v4538_v55  ;;  %v871_v14 = vand.u32 15, %v5121_v52  ;;  %v1107_v29 = vld [vmem:[#allocation10 + $0x68] sm:$0xff]  ;;  %v1124_v23 = vld [vmem:[#allocation10 + $0xf0] sm:$0xff]  ;;  %v1125_v52 = vld [vmem:[#allocation10 + $0xf8] sm:$0xff] }
 0x234   : > { %5116 = vst [vmem:[#allocation33_spill] sm:$0xff] %v4547_v60  ;;  %vm4553_vm9 = vmand %vm5118_vm14, %vm5117_vm6  ;;  %v4562_v56 = vmul.f32 %v690_v24, %v5122_v9  ;;  %2830 = vmatpush3.bf16.msra.mxu1 %v2829_v34  ;;  %2218 = vmatprep.mubr.msk.f32.mxu1 %vm4324_vm2, %v4300_v15  ;;  %v2833_v58 = vpack.c.bf16 %v1105_v37, %v1104_v39  ;;  %v864_v7 = vand.u32 15, %v5123_v11  ;;  %v968_v39 = vrot.slane %v4443_v26, 7  ;;  %v1645_v60 = vld [vmem:[#allocation10 + $0x408] sm:$0xff]  ;;  %v5153_v40 = vld [vmem:[#allocation27_spill] sm:$0xff] }
 0x235   : > { %v5120_v43 = vsel %vm4553_vm9, 4294967295, %v5119_v43  ;;  %2832 = vmatprep.subr.bf16.mxu1 %v2831_v10  ;;  %v2835_v45 = vpack.c.bf16 %v1123_v59, %v1122_v51  ;;  %vm5124_vm6 = vmmov %vm5113_vm10  ;;  %v2863_v9 = vpack.c.bf16 %v1137_v53, %v1136_v2  ;;  %vm4576_vm14 = vcmp.lt.s32.totalorder %v871_v14, 15  ;;  %v1138_v10 = vld [vmem:[#allocation10 + $0x160] sm:$0xff]  ;;  %v1139_v51 = vld [vmem:[#allocation10 + $0x168] sm:$0xff]  ;;  %2862 = vmatpush3.bf16.msra.mxu0 %v2859_v3 }
 0x236   : > { %v802_v24 = vsel %vm4553_vm9, %v4562_v56, 0.0  ;;  %v4573_v34 = vsel %vm5124_vm6, %v966_v30, %v967_v6  ;;  %v969_v59 = vrot.slane %v4386_v18, 7  ;;  %vm4585_vm10 = vcmp.ge.s32.totalorder %v864_v7, 1  ;;  %vm5130_vm9 = vmmov %vm5124_vm6 }
 0x237   : > { %v970_v37 = vrot.slane %v802_v24, 7  ;;  %v1043_v11 = vrot.slane %v802_v24, 1  ;;  %1281 = vmatmul.mubr.f32.gmra.mrb[10].mxu1 %v4573_v34  ;;  %v2837_v26 = vpack.c.bf16 %v1107_v29, %v1106_v8  ;;  %v2839_v14 = vpack.c.bf16 %v1125_v52, %v1124_v23  ;;  %v1108_v24 = vld [vmem:[#allocation10 + $0x70] sm:$0xff]  ;;  %2864 = vmatprep.subr.bf16.mxu0 %v2863_v9  ;;  %v1628_v8 = vld [vmem:[#allocation10 + $0x380] sm:$0xff]  ;;  %v1141_v52 = vld [vmem:[#allocation10 + $0x178] sm:$0xff] }
 0x238   : > { %2834 = vmatpush3.bf16.msra.mxu1 %v2833_v58  ;;  %2219 = vmatprep.mubr.msk.f32.mxu1 %vm4392_vm15, %v4406_v41  ;;  %v5129_v2 = vrot.slane %v4386_v18, 1  ;;  %v1109_v58 = vld [vmem:[#allocation10 + $0x78] sm:$0xff]  ;;  %v2867_v3 = vpack.c.bf16 %v1139_v51, %v1138_v10  ;;  %v5132_v29 = vrot.slane %v4458_v62, 1  ;;  %v808_v62 = vand.u32 15, %v3911_v0  ;;  %v1613_v10 = vld [vmem:[#allocation10 + $0x308] sm:$0xff] }
 0x239   : > { %2836 = vmatprep.subr.bf16.mxu1 %v2835_v45  ;;  %v4597_v44 = vsel %vm5124_vm6, %v969_v59, %v970_v37  ;;  %v4603_v7 = vsel %vm5130_vm9, %v970_v37, %v971_v13  ;;  %v1629_v45 = vld [vmem:[#allocation10 + $0x388] sm:$0xff]  ;;  %v1140_v13 = vld [vmem:[#allocation10 + $0x170] sm:$0xff]  ;;  %2866 = vmatpush3.bf16.msra.mxu0 %v2863_v9 }
 0x23a   : > { %v4593_v53 = vsel %vm5115_vm4, %v5129_v2, %v1043_v11  ;;  %vm5131_vm4 = vmmov %vm5124_vm6  ;;  %vm5133_vm6 = vcmp.lt.s32.totalorder %v3911_v0, 7  ;;  %v2875_v37 = vpack.c.bf16 %v1629_v45, %v1628_v8  ;;  %2868 = vmatprep.subr.bf16.mxu0 %v2867_v3  ;;  %v2871_v51 = vpack.c.bf16 %v1141_v52, %v1140_v13  ;;  %v1630_v2 = vld [vmem:[#allocation10 + $0x390] sm:$0xff]  ;;  %v1632_v8 = vld [vmem:[#allocation10 + $0x3a0] sm:$0xff] }
 0x23b   : > { %2625 = vmatmul.mubr.msk.f32.gmra.mrb[18].mxu0 %vm4576_vm14, %v4593_v53  ;;  %v4610_v18 = vsel %vm5131_vm4, %v967_v6, %v968_v39  ;;  %v4616_v23 = vsel %vm5133_vm6, %v1043_v11, %v5132_v29  ;;  %v2841_v6 = vpack.c.bf16 %v1109_v58, %v1108_v24  ;;  %v1612_v11 = vld [vmem:[#allocation10 + $0x300] sm:$0xff]  ;;  %vm5134_vm9 = vmmov %vm5131_vm4  ;;  %vm948_vm4 = vcmp.ge.s32.totalorder %v808_v62, 1  ;;  %v1615_v24 = vld [vmem:[#allocation10 + $0x318] sm:$0xff] }
 0x23c   : > { %2659 = vmatprep.mubr.f32.mxu0 %v4475_v61  ;;  %2220 = vmatmul.mubr.msk.f32.gmra.mrb[12].mxu1 %vm4585_vm10, %v4610_v18  ;;  %v4628_v61 = vsel %vm5134_vm9, %v968_v39, %v969_v59  ;;  %v1644_v29 = vld [vmem:[#allocation10 + $0x400] sm:$0xff]  ;;  %v2877_v9 = vpack.c.bf16 %v1613_v10, %v1612_v11  ;;  %v1614_v59 = vld [vmem:[#allocation10 + $0x310] sm:$0xff]  ;;  %v1633_v45 = vld [vmem:[#allocation10 + $0x3a8] sm:$0xff]  ;;  %vm5137_vm6 = vnez %v5031_v63 }
 0x23d   : > { %2838 = vmatpush3.bf16.msra.mxu1 %v2837_v26  ;;  %2221 = vmatprep.mubr.msk.f32.mxu1 %vm4341_vm12, %v4356_v19  ;;  %v1631_v26 = vld [vmem:[#allocation10 + $0x398] sm:$0xff]  ;;  %v4635_v58 = vpack.c.bf16 %v1645_v60, %v1644_v29  ;;  %v2881_v22 = vpack.c.bf16 %v1615_v24, %v1614_v59  ;;  %v1616_v13 = vld [vmem:[#allocation10 + $0x320] sm:$0xff]  ;;  %v1617_v52 = vld [vmem:[#allocation10 + $0x328] sm:$0xff]  ;;  %v2883_v60 = vpack.c.bf16 %v1633_v45, %v1632_v8 }
 0x23e   : > { %2840 = vmatprep.subr.bf16.mxu1 %v2839_v14  ;;  %2870 = vmatpush3.bf16.msra.mxu0 %v2867_v3  ;;  %v5135_v14 = vld [vmem:[#allocation25_spill] sm:$0xff]  ;;  %v2879_v39 = vpack.c.bf16 %v1631_v26, %v1630_v2  ;;  %v1647_v3 = vld [vmem:[#allocation10 + $0x418] sm:$0xff]  ;;  %v2885_v50 = vpack.c.bf16 %v1617_v52, %v1616_v13  ;;  %v1620_v26 = vld [vmem:[#allocation10 + $0x340] sm:$0xff] }
 0x23f   : > { %v815_v0 = vand.u32 15, %v5135_v14  ;;  %2872 = vmatprep.subr.bf16.mxu0 %v2871_v51  ;;  %v1635_v62 = vld [vmem:[#allocation10 + $0x3b8] sm:$0xff]  ;;  %v1618_v11 = vld [vmem:[#allocation10 + $0x330] sm:$0xff]  ;;  %v1621_v29 = vld [vmem:[#allocation10 + $0x348] sm:$0xff] }
 0x240   : > { %1291 = vmatmul.mubr.f32.gmra.mrb[14].mxu1 %v4628_v61  ;;  %v1619_v10 = vld [vmem:[#allocation10 + $0x338] sm:$0xff]  ;;  %v5140_v63 = vld [vmem:[#allocation49_spill] sm:$0xff]  ;;  %v2893_v59 = vpack.c.bf16 %v1621_v29, %v1620_v26  ;;  %v1652_v24 = vld [vmem:[#allocation10 + $0x440] sm:$0xff] }
 0x241   : > { %2842 = vmatpush3.bf16.msra.mxu1 %v2841_v6  ;;  %2226 = vmatprep.mubr.msk.f32.mxu1 %vm4145_vm11, %v4161_v25  ;;  %v1646_v25 = vld [vmem:[#allocation10 + $0x410] sm:$0xff]  ;;  %vm1022_vm11 = vcmp.lt.s32.totalorder %v815_v0, 15  ;;  %v2889_v2 = vpack.c.bf16 %v1619_v10, %v1618_v11  ;;  %v1639_v14 = vld [vmem:[#allocation10 + $0x3d8] sm:$0xff]  ;;  %v1653_v8 = vld [vmem:[#allocation10 + $0x448] sm:$0xff] }
 0x242   : > { %2876 = vmatprep.subr.bf16.mxu1 %v2875_v37  ;;  %2874 = vmatpush3.bf16.msra.mxu0 %v2871_v51  ;;  %v1634_v6 = vld [vmem:[#allocation10 + $0x3b0] sm:$0xff]  ;;  %v1649_v37 = vld [vmem:[#allocation10 + $0x428] sm:$0xff]  ;;  %v1636_v51 = vld [vmem:[#allocation10 + $0x3c0] sm:$0xff] }
 0x243   : > { %2908 = vmatprep.subr.bf16.mxu0 %v4635_v58  ;;  %v5141_v0 = vld [vmem:[#allocation35_spill] sm:$0xff]  ;;  %v1641_v52 = vld [vmem:[#allocation10 + $0x3e8] sm:$0xff] }
 0x244   : > { %2227 = vmatmul.mubr.msk.f32.vlgmr.msra.gmra.mrb[16].mxu1 %vm948_vm4, %v4512_v31  ;;  %v4643_v31 = vpack.c.bf16 %v1647_v3, %v1646_v25  ;;  %v1623_v45 = vld [vmem:[#allocation10 + $0x358] sm:$0xff]  ;;  %v1640_v13 = vld [vmem:[#allocation10 + $0x3e0] sm:$0xff]  ;;  %v1657_v29 = vld [vmem:[#allocation10 + $0x468] sm:$0xff]  ;;  %vm5150_vm4 = vnez %v5052_v42 }
 0x245   : > { %2878 = vmatpush3.bf16.msra.mxu1 %v2877_v9  ;;  %2228 = vmatprep.mubr.msk.f32.mxu1 %vm4130_vm8, %v4139_v46  ;;  %v1648_v46 = vld [vmem:[#allocation10 + $0x420] sm:$0xff]  ;;  %vm5136_vm8 = vnez %v5023_v35  ;;  %v5138_v35 = vld [vmem:[#allocation42_spill] sm:$0xff]  ;;  %v2899_v11 = vpack.c.bf16 %v1641_v52, %v1640_v13 }
 0x246   : > { %2880 = vmatprep.subr.bf16.mxu1 %v2879_v39  ;;  %2660 = vmatmul.mubr.msk.f32.vlgmr.msra.gmra.mrb[12].mxu0 %vm1022_vm11, %v4520_v5  ;;  %v4655_v5 = vpack.c.bf16 %v1649_v37, %v1648_v46  ;;  %v1638_v9 = vld [vmem:[#allocation10 + $0x3d0] sm:$0xff]  ;;  %v1655_v46 = vld [vmem:[#allocation10 + $0x458] sm:$0xff]  ;;  %v1624_v10 = vld [vmem:[#allocation10 + $0x360] sm:$0xff] }
 0x247   : > { %2662 = vmatprep.mubr.f32.mxu0 %v4318_v17  ;;  %2910 = vmatpush3.bf16.msra.mxu0 %v4635_v58  ;;  %v1637_v17 = vld [vmem:[#allocation10 + $0x3c8] sm:$0xff]  ;;  %v2895_v3 = vpack.c.bf16 %v1639_v14, %v1638_v9  ;;  %v1656_v26 = vld [vmem:[#allocation10 + $0x460] sm:$0xff]  ;;  %v1658_v14 = vld [vmem:[#allocation10 + $0x470] sm:$0xff] }
 0x248   : > { %1471 = vmatmul.mubr.f32.gmra.mrb[18].mxu1 %v4530_v54  ;;  %v2887_v54 = vpack.c.bf16 %v1635_v62, %v1634_v6  ;;  %2912 = vmatprep.subr.bf16.mxu0 %v4643_v31  ;;  %v4681_v62 = vpack.c.bf16 %v1653_v8, %v1652_v24  ;;  %v2931_v9 = vpack.c.bf16 %v1657_v29, %v1656_v26 }
 0x249   : > { %2882 = vmatpush3.bf16.msra.mxu1 %v2881_v22  ;;  %2229 = vmatprep.mubr.msk.f32.mxu1 %vm4203_vm3, %v4208_v4  ;;  %v1651_v4 = vld [vmem:[#allocation10 + $0x438] sm:$0xff]  ;;  %vm5139_vm3 = vnez %v5138_v35 }
 0x24a   : > { %2884 = vmatprep.subr.bf16.mxu1 %v2883_v60  ;;  %2663 = vmatmul.mubr.msk.f32.gmra.mrb[14].mxu0 %vm5137_vm6, %v4361_v27  ;;  %v4667_v27 = vpack.c.bf16 %v1651_v4, %v1650_v57  ;;  %v5143_v22 = vld [vmem:[#allocation47_spill] sm:$0xff]  ;;  %v5145_v60 = vld [vmem:[#allocation24_spill] sm:$0xff]  ;;  %v1642_v57 = vld [vmem:[#allocation10 + $0x3f0] sm:$0xff] }
 0x24b   : > { %2665 = vmatprep.mubr.f32.mxu0 %v4402_v1  ;;  %2914 = vmatpush3.bf16.msra.mxu0 %v4643_v31  ;;  %v1643_v4 = vld [vmem:[#allocation10 + $0x3f8] sm:$0xff] }
 0x24c   : > { %2230 = vmatmul.mubr.msk.f32.gmra.mrb[20].mxu1 %vm5136_vm8, %v4264_v16  ;;  %v2891_v16 = vpack.c.bf16 %v1637_v17, %v1636_v51  ;;  %2916 = vmatprep.subr.bf16.mxu0 %v4655_v5  ;;  %v5147_v51 = vld [vmem:[#allocation43_spill] sm:$0xff]  ;;  %v5148_v17 = vld [vmem:[#allocation48_spill] sm:$0xff]  ;;  %v2903_v35 = vpack.c.bf16 %v1643_v4, %v1642_v57 }
 0x24d   : > { %2886 = vmatpush3.bf16.msra.mxu1 %v2885_v50  ;;  %2231 = vmatprep.mubr.msk.f32.mxu1 %vm5139_vm3, %v4195_v49  ;;  %v1622_v49 = vld [vmem:[#allocation10 + $0x350] sm:$0xff]  ;;  %vm5149_vm9 = vnez %v5148_v17 }
 0x24e   : > { %2888 = vmatprep.subr.bf16.mxu1 %v2887_v54  ;;  %2666 = vmatmul.mubr.msk.f32.gmra.mrb[16].mxu0 %vm4268_vm7, %v5141_v0  ;;  %v1654_v50 = vld [vmem:[#allocation10 + $0x450] sm:$0xff]  ;;  %v2897_v37 = vpack.c.bf16 %v1623_v45, %v1622_v49  ;;  %v1625_v54 = vld [vmem:[#allocation10 + $0x368] sm:$0xff] }
 0x24f   : > { %2668 = vmatprep.mubr.f32.mxu0 %v4453_v20  ;;  %2918 = vmatpush3.bf16.msra.mxu0 %v4655_v5 }
 0x250   : > { %1481 = vmatmul.mubr.f32.gmra.mrb[22].mxu1 %v5140_v63  ;;  %2920 = vmatprep.subr.bf16.mxu0 %v4667_v27  ;;  %v1627_v63 = vld [vmem:[#allocation10 + $0x378] sm:$0xff] }
 0x251   : > { %2890 = vmatpush3.bf16.msra.mxu1 %v2889_v2  ;;  %2232 = vmatprep.mubr.msk.f32.mxu1 %vm4254_vm0, %v5143_v22  ;;  %v2927_v2 = vpack.c.bf16 %v1655_v46, %v1654_v50 }
 0x252   : > { %2892 = vmatprep.subr.bf16.mxu1 %v2891_v16  ;;  %2669 = vmatmul.mubr.msk.f32.gmra.mrb[18].mxu0 %vm4330_vm1, %v4488_v36  ;;  %v1626_v16 = vld [vmem:[#allocation10 + $0x370] sm:$0xff] }
 0x253   : > { %2922 = vmatpush3.bf16.msra.mxu0 %v4667_v27  ;;  %2703 = vmatprep.mubr.f32.mxu0 %v4402_v1  ;;  %v2901_v1 = vpack.c.bf16 %v1625_v54, %v1624_v10  ;;  %v2905_v24 = vpack.c.bf16 %v1627_v63, %v1626_v16 }
 0x254   : > { %2233 = vmatmul.mubr.msk.f32.gmra.mrb[24].mxu1 %vm4246_vm5, %v5145_v60  ;;  %2924 = vmatprep.subr.bf16.mxu0 %v4681_v62 }
 0x255   : > { %2894 = vmatpush3.bf16.msra.mxu1 %v2893_v59  ;;  %2234 = vmatprep.mubr.msk.f32.mxu1 %vm5149_vm9, %v5147_v51  ;;  %v1659_v59 = vld [vmem:[#allocation10 + $0x478] sm:$0xff] }
 0x256   : > { %2896 = vmatprep.subr.bf16.mxu1 %v2895_v3  ;;  %v2935_v8 = vpack.c.bf16 %v1659_v59, %v1658_v14 }
 0x257   : > { %2926 = vmatpush3.bf16.msra.mxu0 %v4681_v62 }
 0x258   : > { %1491 = vmatmul.mubr.f32.gmra.mrb[26].mxu1 %v4466_v21  ;;  %2928 = vmatprep.subr.bf16.mxu0 %v2927_v2 }
 0x259   : > { %2898 = vmatpush3.bf16.msra.mxu1 %v2897_v37  ;;  %2235 = vmatprep.mubr.msk.f32.mxu1 %vm5150_vm4, %v4335_v12 }
 0x25a   : > { %2900 = vmatprep.subr.bf16.mxu1 %v2899_v11 }
 0x25b   : > { %2930 = vmatpush3.bf16.msra.mxu0 %v2927_v2 }
 0x25c   : > { %2236 = vmatmul.mubr.msk.f32.gmra.mrb[28].mxu1 %vm4498_vm13, %v4538_v55  ;;  %2932 = vmatprep.subr.bf16.mxu0 %v2931_v9 }
 0x25d   : > { %2902 = vmatpush3.bf16.msra.mxu1 %v2901_v1  ;;  %2237 = vmatprep.mubr.msk.f32.mxu1 %vm4324_vm2, %v4300_v15 }
 0x25e   : > { %2904 = vmatprep.subr.bf16.mxu1 %v2903_v35 }
 0x25f   : > { %2934 = vmatpush3.bf16.msra.mxu0 %v2931_v9 }
 0x260   : > { %1501 = vmatmul.mubr.f32.gmra.mrb[30].mxu1 %v4573_v34  ;;  %2936 = vmatprep.subr.bf16.mxu0 %v2935_v8 }
 0x261   : > { %2906 = vmatpush3.bf16.msra.mxu1 %v2905_v24  ;;  %2242 = vmatprep.mubr.msk.f32.mxu1 %vm4254_vm0, %v5143_v22  ;;  %vm5152_vm0 = vnez %v5120_v43 }
 0x262   : > { %2939 = vmatprep.subr.bf16.mxu1 %v4635_v58 }
 0x263   : > { %2938 = vmatpush3.bf16.msra.mxu0 %v2935_v8 }
 0x264   : > { %2243 = vmatmul.mubr.msk.f32.vlgmr.msra.gmra.mrb[32].mxu1 %vm4246_vm5, %v5145_v60  ;;  %vm5155_vm5 = vnez %v5154_v48 }
 0x265   : > { %2947 = vmatpush3.bf16.msra.mxu1 %v4635_v58  ;;  %2244 = vmatprep.mubr.msk.f32.mxu1 %vm5149_vm9, %v5147_v51 }
 0x266   : > { %2940 = vmatprep.subr.bf16.mxu1 %v4643_v31  ;;  %2704 = vmatmul.mubr.msk.f32.vlgmr.msra.gmra.mrb[12].mxu0 %vm4268_vm7, %v5141_v0 }
 0x267   : > { %2706 = vmatprep.mubr.f32.mxu0 %v4453_v20 }
 0x268   : > { %1730 = vmatmul.mubr.f32.gmra.mrb[34].mxu1 %v4466_v21 }
 0x269   : > { %2948 = vmatpush3.bf16.msra.mxu1 %v4643_v31  ;;  %2245 = vmatprep.mubr.msk.f32.mxu1 %vm5150_vm4, %v4335_v12  ;;  %v5156_v12 = vld [vmem:[#allocation31_spill] sm:$0xff] }
 0x26a   : > { %2941 = vmatprep.subr.bf16.mxu1 %v4655_v5  ;;  %2707 = vmatmul.mubr.msk.f32.gmra.mrb[14].mxu0 %vm4330_vm1, %v4488_v36  ;;  %v885_v28 = vand.u32 15, %v5156_v12 }
 0x26c   : > { %2246 = vmatmul.mubr.msk.f32.gmra.mrb[36].mxu1 %vm4498_vm13, %v4538_v55 }
 0x26d   : > { %2949 = vmatpush3.bf16.msra.mxu1 %v4655_v5  ;;  %2247 = vmatprep.mubr.msk.f32.mxu1 %vm4324_vm2, %v4300_v15  ;;  %v5151_v15 = vld [vmem:[#allocation34_spill] sm:$0xff] }
 0x26e   : > { %2942 = vmatprep.subr.bf16.mxu1 %v4667_v27  ;;  %v878_v42 = vand.u32 15, %v5151_v15 }
 0x270   : > { %1740 = vmatmul.mubr.f32.gmra.mrb[38].mxu1 %v4573_v34  ;;  %vm958_vm2 = vcmp.ge.s32.totalorder %v878_v42, 1 }
 0x271   : > { %2950 = vmatpush3.bf16.msra.mxu1 %v4667_v27  ;;  %2248 = vmatprep.mubr.msk.f32.mxu1 %vm4392_vm15, %v4406_v41 }
 0x272   : > { %2943 = vmatprep.subr.bf16.mxu1 %v4681_v62 }
 0x274   : > { %2249 = vmatmul.mubr.msk.f32.gmra.mrb[40].mxu1 %vm4585_vm10, %v4610_v18 }
 0x275   : > { %2951 = vmatpush3.bf16.msra.mxu1 %v4681_v62  ;;  %2250 = vmatprep.mubr.msk.f32.mxu1 %vm4341_vm12, %v4356_v19  ;;  %vm1032_vm12 = vcmp.lt.s32.totalorder %v885_v28, 15 }
 0x276   : > { %2944 = vmatprep.subr.bf16.mxu1 %v2927_v2 }
 0x278   : > { %1750 = vmatmul.mubr.f32.gmra.mrb[42].mxu1 %v4628_v61 }
 0x279   : > { %2952 = vmatpush3.bf16.msra.mxu1 %v2927_v2  ;;  %2251 = vmatprep.mubr.msk.f32.mxu1 %vm5152_vm0, %v4562_v56 }
 0x27a   : > { %2945 = vmatprep.subr.bf16.mxu1 %v2931_v9 }
 0x27c   : > { %2252 = vmatmul.mubr.msk.f32.gmra.mrb[44].mxu1 %vm958_vm2, %v4597_v44  ;;  %v5157_v44 = vld [vmem:[#allocation33_spill] sm:$0xff] }
 0x27d   : > { %2953 = vmatpush3.bf16.msra.mxu1 %v2931_v9  ;;  %2253 = vmatprep.mubr.msk.f32.mxu1 %vm5155_vm5, %v5153_v40 }
 0x27e   : > { %2946 = vmatprep.subr.bf16.mxu1 %v2935_v8 }
 0x280   : > { %1760 = vmatmul.mubr.f32.gmra.mrb[46].mxu1 %v4603_v7 }
 0x281   : > { %2954 = vmatpush3.bf16.msra.mxu1 %v2935_v8  ;;  %2709 = vmatprep.mubr.f32.mxu1 %v4494_v32 }
 0x284   : > { %2710 = vmatmul.mubr.msk.f32.vlgmr.msra.gmra.mrb[48].mxu1 %vm4576_vm14, %v4593_v53 }
 0x285   : > { %2712 = vmatprep.mubr.f32.mxu1 %v4616_v23 }
 0x288   : > { %2713 = vmatmul.mubr.msk.f32.gmra.mrb[50].mxu1 %vm1032_vm12, %v5157_v44 }
 0x2ec   : > { %v2325_v19 = vpop.f32.mrb[0].mxu1 }
 0x2ed   : > { %v2326_v47 = vpop.f32.mrb[1].mxu1 }
 0x2ee   : > { %v2327_v41 = vadd.f32 %v2326_v47, %v2325_v19 }
 0x2f5   : > { %v2328_v20 = vpop.f32.mrb[2].mxu1 }
 0x2f6   : > { %v2329_v21 = vpop.f32.mrb[3].mxu1 }
 0x2f7   : > { %v2330_v36 = vadd.f32 %v2329_v21, %v2328_v20 }
 0x2fb   : > { %v2331_v33 = vpop.f32.mrb[4].mxu1 }
 0x2fc   : > { %v2332_v55 = vpop.f32.mrb[5].mxu1 }
 0x2fd   : > { %v2333_v32 = vadd.f32 %v2332_v55, %v2331_v33 }
 0x2ff   : > { %v2334_v43 = vpop.f32.mrb[6].mxu1 }
 0x300   : > { %v2335_v56 = vpop.f32.mrb[7].mxu1 }
 0x301   : > { %v2336_v34 = vadd.f32 %v2335_v56, %v2334_v43 }
 0x306   : > { %v2337_v30 = vpop.f32.mrb[8].mxu1 }
 0x307   : > { %v2338_v38 = vpop.f32.mrb[9].mxu1 }
 0x308   : > { %v2339_v53 = vadd.f32 %v2338_v38, %v2337_v30 }
 0x30a   : > { %v2340_v7 = vpop.f32.mrb[10].mxu1 }
 0x30b   : > { %v2341_v18 = vpop.f32.mrb[11].mxu1 }
 0x30c   : > { %v2342_v23 = vadd.f32 %v2341_v18, %v2340_v7 }
 0x30f   : > { %v2343_v61 = vpop.f32.mrb[12].mxu1 }
 0x310   : > { %v2344_v58 = vpop.f32.mrb[13].mxu1 }
 0x311   : > { %v2345_v31 = vadd.f32 %v2344_v58, %v2343_v61 }
 0x313   : > { %v2346_v5 = vpop.f32.mrb[14].mxu1 }
 0x314   : > { %v2347_v27 = vpop.f32.mrb[15].mxu1 }
 0x315   : > { %v2348_v0 = vadd.f32 %v2347_v27, %v2346_v5 }
 0x317   : > { %v2405_v39 = vpop.f32.mrb[16].mxu1 }
 0x318   : > { %v2406_v49 = vpop.f32.mrb[17].mxu1 }
 0x319   : > { %v2407_v45 = vadd.f32 %v2406_v49, %v2405_v39 }
 0x31b   : > { %v2958_v22 = vadd.f32 %v2407_v45, %v2327_v41  ;;  %v2408_v25 = vpop.f32.mrb[18].mxu1 }
 0x31c   : > { %v2409_v3 = vpop.f32.mrb[19].mxu1 }
 0x31d   : > { %v2410_v13 = vadd.f32 %v2409_v3, %v2408_v25 }
 0x31f   : > { %v2955_v52 = vadd.f32 %v2410_v13, %v2330_v36  ;;  %v2411_v60 = vpop.f32.mrb[20].mxu1 }
 0x320   : > { %v2412_v6 = vpop.f32.mrb[21].mxu1 }
 0x321   : > { %v2413_v62 = vadd.f32 %v2412_v6, %v2411_v60  ;;  %v2667_v37 = vpop.f32.mrb[16].mxu0 }
 0x322   : > { %v1592_v10 = vpop.f32.mrb[17].mxu0 }
 0x323   : > { %v2964_v50 = vadd.f32 %v2413_v62, %v2333_v32  ;;  %v2414_v46 = vpop.f32.mrb[22].mxu1  ;;  %v4769_v32 = vld [vmem:[#allocation11] ss:$0 sm:$0xff] }
 0x324   : > { %v2415_v11 = vpop.f32.mrb[23].mxu1 }
 0x325   : > { %v2416_v54 = vadd.f32 %v2415_v11, %v2414_v46  ;;  %v2670_v2 = vpop.f32.mrb[18].mxu0 }
 0x326   : > { %v1602_v4 = vpop.f32.mrb[19].mxu0 }
 0x327   : > { %v2961_v51 = vadd.f32 %v2416_v54, %v2336_v34  ;;  %v2417_v17 = vpop.f32.mrb[24].mxu1 }
 0x328   : > { %v2418_v57 = vpop.f32.mrb[25].mxu1 }
 0x329   : > { %v2419_v26 = vadd.f32 %v2418_v57, %v2417_v17 }
 0x32b   : > { %v2971_v29 = vadd.f32 %v2419_v26, %v2339_v53  ;;  %v2420_v1 = vpop.f32.mrb[26].mxu1 }
 0x32c   : > { %v2421_v35 = vpop.f32.mrb[27].mxu1 }
 0x32d   : > { %v2422_v16 = vadd.f32 %v2421_v35, %v2420_v1  ;;  %v2972_v63 = vadd.f32 %v2971_v29, %v1592_v10 }
 0x32f   : > { %v2967_v9 = vadd.f32 %v2422_v16, %v2342_v23  ;;  %v2423_v14 = vpop.f32.mrb[28].mxu1 }
 0x330   : > { %v2424_v59 = vpop.f32.mrb[29].mxu1 }
 0x331   : > { %v2425_v24 = vadd.f32 %v2424_v59, %v2423_v14  ;;  %v2968_v8 = vadd.f32 %v2967_v9, %v2667_v37 }
 0x333   : > { %v2979_v15 = vadd.f32 %v2425_v24, %v2345_v31  ;;  %v2426_v42 = vpop.f32.mrb[30].mxu1 }
 0x334   : > { %v2427_v40 = vpop.f32.mrb[31].mxu1 }
 0x335   : > { %v2428_v48 = vadd.f32 %v2427_v40, %v2426_v42  ;;  %v2980_v12 = vadd.f32 %v2979_v15, %v1602_v4 }
 0x337   : > { %v2975_v28 = vadd.f32 %v2428_v48, %v2348_v0  ;;  %v2485_v44 = vpop.f32.mrb[32].mxu1 }
 0x338   : > { %v2486_v19 = vpop.f32.mrb[33].mxu1 }
 0x339   : > { %v2487_v47 = vadd.f32 %v2486_v19, %v2485_v44  ;;  %v4767_v41 = vadd.f32 %v2975_v28, %v2670_v2  ;;  %v2705_v36 = vpop.f32.mrb[12].mxu0 }
 0x33a   : > { %v1831_v55 = vpop.f32.mrb[13].mxu0 }
 0x33b   : > { %v2488_v20 = vpop.f32.mrb[34].mxu1  ;;  %v2959_v21 = vadd.f32 %v2958_v22, %v2487_v47 }
 0x33c   : > { %v2489_v33 = vpop.f32.mrb[35].mxu1 }
 0x33d   : > { %v2490_v43 = vadd.f32 %v2489_v33, %v2488_v20  ;;  %v2960_v56 = vadd.f32 %v2959_v21, %v1831_v55  ;;  %v2708_v53 = vpop.f32.mrb[14].mxu0 }
 0x33e   : > { %v1841_v23 = vpop.f32.mrb[15].mxu0 }
 0x33f   : > { %v2956_v34 = vadd.f32 %v2955_v52, %v2490_v43  ;;  %v2491_v30 = vpop.f32.mrb[36].mxu1  ;;  %v4772_v38 = vadd.f32 %v2960_v56, %v4769_v32 }
 0x340   : > { %v2492_v7 = vpop.f32.mrb[37].mxu1 }
 0x341   : > { %v2957_v18 = vadd.f32 %v2956_v34, %v2705_v36  ;;  %v2493_v61 = vadd.f32 %v2492_v7, %v2491_v30  ;;  %v1893_v58 = vmin.f32 %v4772_v38, 20.0 }
 0x343   : > { %v4776_v31 = vadd.f32 %v2957_v18, %v4769_v32  ;;  %v2965_v5 = vadd.f32 %v2964_v50, %v2493_v61  ;;  %v2494_v27 = vpop.f32.mrb[38].mxu1  ;;  %v1901_v0 = vmul.f32 1.442695, %v1893_v58 }
 0x344   : > { %v2495_v39 = vpop.f32.mrb[39].mxu1 }
 0x345   : > { %v1894_v49 = vmin.f32 %v4776_v31, 20.0  ;;  %v2966_v45 = vadd.f32 %v2965_v5, %v1841_v23  ;;  %v2496_v22 = vadd.f32 %v2495_v39, %v2494_v27  ;;  %3171 = vpow2.f32 %v1901_v0 }
 0x347   : > { %v1903_v25 = vmul.f32 1.442695, %v1894_v49  ;;  %v4780_v3 = vadd.f32 %v2966_v45, %v4769_v32  ;;  %v2962_v13 = vadd.f32 %v2961_v51, %v2496_v22  ;;  %v2497_v52 = vpop.f32.mrb[40].mxu1 }
 0x348   : > { %v2498_v60 = vpop.f32.mrb[41].mxu1 }
 0x349   : > { %3173 = vpow2.f32 %v1903_v25  ;;  %v1895_v6 = vmin.f32 %v4780_v3, 20.0  ;;  %v2963_v62 = vadd.f32 %v2962_v13, %v2708_v53  ;;  %v2499_v50 = vadd.f32 %v2498_v60, %v2497_v52 }
 0x34b   : > { %v1905_v46 = vmul.f32 1.442695, %v1895_v6  ;;  %v4784_v37 = vadd.f32 %v2963_v62, %v4769_v32  ;;  %v2500_v11 = vpop.f32.mrb[42].mxu1  ;;  %v2973_v10 = vadd.f32 %v2972_v63, %v2499_v50 }
 0x34c   : > { %v2501_v54 = vpop.f32.mrb[43].mxu1 }
 0x34d   : > { %3175 = vpow2.f32 %v1905_v46  ;;  %v1896_v17 = vmin.f32 %v4784_v37, 20.0  ;;  %v2502_v2 = vadd.f32 %v2501_v54, %v2500_v11 }
 0x34f   : > { %v1907_v57 = vmul.f32 1.442695, %v1896_v17  ;;  %v2503_v51 = vpop.f32.mrb[44].mxu1  ;;  %v2969_v4 = vadd.f32 %v2968_v8, %v2502_v2  ;;  %v3172_v26 = vpop.eup %3171 }
 0x350   : > { %v2504_v29 = vpop.f32.mrb[45].mxu1  ;;  %v1917_v1 = vadd.f32 2.0, %v3172_v26 }
 0x351   : > { %3177 = vpow2.f32 %v1907_v57  ;;  %v2505_v35 = vadd.f32 %v2504_v29, %v2503_v51 }
 0x352   : > { %v1925_v9 = vmul.f32 %v3172_v26, %v1917_v1 }
 0x353   : > { %v3174_v16 = vpop.eup %3173  ;;  %v2506_v14 = vpop.f32.mrb[46].mxu1  ;;  %v2981_v59 = vadd.f32 %v2980_v12, %v2505_v35 }
 0x354   : > { %v1918_v24 = vadd.f32 2.0, %v3174_v16  ;;  %v2507_v15 = vpop.f32.mrb[47].mxu1  ;;  %v1933_v63 = vadd.f32 2.0, %v1925_v9 }
 0x355   : > { %v2508_v42 = vadd.f32 %v2507_v15, %v2506_v14 }
 0x356   : > { %v1926_v40 = vmul.f32 %v3174_v16, %v1918_v24  ;;  %3179 = vrcp.f32 %v1933_v63  ;;  %v3203_v24 = vld [vmem:[%s3853_s30] sm:$0xff] }
 0x357   : > { %v3176_v48 = vpop.eup %3175  ;;  %v2711_v28 = vpop.f32.mrb[48].mxu1  ;;  %v2977_v44 = vadd.f32 %v4767_v41, %v2508_v42 }
 0x358   : > { %v1934_v8 = vadd.f32 2.0, %v1926_v40  ;;  %v1919_v19 = vadd.f32 2.0, %v3176_v48  ;;  %v2970_v47 = vadd.f32 %v2969_v4, %v2711_v28  ;;  %v1851_v20 = vpop.f32.mrb[49].mxu1 }
 0x359   : > { %v2974_v21 = vadd.f32 %v2973_v10, %v1851_v20 }
 0x35a   : > { %3181 = vrcp.f32 %v1934_v8  ;;  %v1927_v36 = vmul.f32 %v3176_v48, %v1919_v19  ;;  %v4789_v33 = vadd.f32 %v2970_v47, %v4769_v32  ;;  %v3204_v47 = vld [vmem:[%s3853_s30 + $0x8] sm:$0xff] }
 0x35b   : > { %v3178_v12 = vpop.eup %3177  ;;  %v4792_v55 = vadd.f32 %v2974_v21, %v4769_v32  ;;  %v2714_v43 = vpop.f32.mrb[50].mxu1 }
 0x35c   : > { %v1935_v56 = vadd.f32 2.0, %v1927_v36  ;;  %v1920_v34 = vadd.f32 2.0, %v3178_v12  ;;  %v1898_v30 = vmin.f32 %v4789_v33, 20.0  ;;  %v2978_v41 = vadd.f32 %v2977_v44, %v2714_v43  ;;  %v1861_v53 = vpop.f32.mrb[51].mxu1 }
 0x35d   : > { %v1897_v7 = vmin.f32 %v4792_v55, 20.0  ;;  %v2982_v18 = vadd.f32 %v2981_v59, %v1861_v53 }
 0x35e   : > { %3183 = vrcp.f32 %v1935_v56  ;;  %v1928_v23 = vmul.f32 %v3178_v12, %v1920_v34  ;;  %v1911_v61 = vmul.f32 1.442695, %v1898_v30  ;;  %v4797_v58 = vadd.f32 %v2978_v41, %v4769_v32  ;;  %v3205_v41 = vld [vmem:[%s3853_s30 + $0x10] sm:$0xff] }
 0x35f   : > { %v1909_v5 = vmul.f32 1.442695, %v1897_v7  ;;  %v4800_v27 = vadd.f32 %v2982_v18, %v4769_v32 }
 0x360   : > { %v1936_v0 = vadd.f32 2.0, %v1928_v23  ;;  %3185 = vpow2.f32 %v1911_v61  ;;  %v1900_v39 = vmin.f32 %v4797_v58, 20.0  ;;  %v3180_v49 = vpop.eup %3179  ;;  %v3206_v23 = vld [vmem:[%s3853_s30 + $0x18] sm:$0xff] }
 0x361   : > { %3187 = vpow2.f32 %v1909_v5  ;;  %v1899_v45 = vmin.f32 %v4800_v27, 20.0  ;;  %v1949_v22 = vmul.f32 %v3180_v49, %v1933_v63 }
 0x362   : > { %3189 = vrcp.f32 %v1936_v0  ;;  %v1915_v25 = vmul.f32 1.442695, %v1900_v39 }
 0x363   : > { %v1913_v13 = vmul.f32 1.442695, %v1899_v45  ;;  %v1957_v60 = vsub.f32 2.0, %v1949_v22 }
 0x364   : > { %v3182_v52 = vpop.eup %3181  ;;  %3191 = vpow2.f32 %v1915_v25 }
 0x365   : > { %v1950_v6 = vmul.f32 %v3182_v52, %v1934_v8  ;;  %3193 = vpow2.f32 %v1913_v13  ;;  %v1965_v62 = vmul.f32 %v3180_v49, %v1957_v60 }
 0x367   : > { %v1958_v32 = vsub.f32 2.0, %v1950_v6  ;;  %v1973_v46 = vmul.f32 2.0, %v1965_v62 }
 0x368   : > { %v3184_v50 = vpop.eup %3183 }
 0x369   : > { %v1966_v11 = vmul.f32 %v3182_v52, %v1958_v32  ;;  %v1951_v10 = vmul.f32 %v3184_v50, %v1935_v56  ;;  %v1981_v17 = vsub.f32 1.0, %v1973_v46 }
 0x36a   : > { %v3186_v54 = vpop.eup %3185 }
 0x36b   : > { %v3188_v2 = vpop.eup %3187  ;;  %v1974_v57 = vmul.f32 2.0, %v1966_v11  ;;  %v1959_v51 = vsub.f32 2.0, %v1951_v10  ;;  %v1922_v4 = vadd.f32 2.0, %v3186_v54  ;;  %v1989_v29 = vmul.f32 %v1981_v17, %v4772_v38 }
 0x36c   : > { %v3190_v26 = vpop.eup %3189  ;;  %v1921_v1 = vadd.f32 2.0, %v3188_v2 }
 0x36d   : > { %v1982_v35 = vsub.f32 1.0, %v1974_v57  ;;  %v1967_v16 = vmul.f32 %v3184_v50, %v1959_v51  ;;  %v1952_v9 = vmul.f32 %v3190_v26, %v1936_v0  ;;  %v1930_v14 = vmul.f32 %v3186_v54, %v1922_v4  ;;  %v3207_v51 = vld [vmem:[%s3853_s30 + $0x28] sm:$0xff] }
 0x36e   : > { %v3192_v59 = vpop.eup %3191  ;;  %v1997_v15 = vadd.f32 %v3203_v24, %v1989_v29  ;;  %v1929_v63 = vmul.f32 %v3188_v2, %v1921_v1  ;;  %v3208_v29 = vld [vmem:[%s3853_s30 + $0x20] sm:$0xff] }
 0x36f   : > { %v3194_v42 = vpop.eup %3193  ;;  %v1990_v40 = vmul.f32 %v1982_v35, %v4776_v31  ;;  %v1975_v48 = vmul.f32 2.0, %v1967_v16  ;;  %v1960_v28 = vsub.f32 2.0, %v1952_v9  ;;  %v1938_v44 = vadd.f32 2.0, %v1930_v14  ;;  %v3209_v9 = vld [vmem:[%s3853_s30 + $0x38] sm:$0xff] }
 0x370   : > { %2005 = vst [vmem:[%s4809_s14] sm:$0xff] %v1997_v15  ;;  %v1937_v38 = vadd.f32 2.0, %v1929_v63  ;;  %v1924_v8 = vadd.f32 2.0, %v3192_v59  ;;  %v1923_v19 = vadd.f32 2.0, %v3194_v42 }
 0x371   : > { %v1998_v20 = vadd.f32 %v3204_v47, %v1990_v40  ;;  %v1983_v21 = vsub.f32 1.0, %v1975_v48  ;;  %v1968_v36 = vmul.f32 %v3190_v26, %v1960_v28  ;;  %3195 = vrcp.f32 %v1938_v44 }
 0x372   : > { %3197 = vrcp.f32 %v1937_v38  ;;  %v1932_v31 = vmul.f32 %v3192_v59, %v1924_v8  ;;  %v1931_v12 = vmul.f32 %v3194_v42, %v1923_v19  ;;  %v3210_v59 = vld [vmem:[%s3853_s30 + $0x30] sm:$0xff] }
 0x373   : > { %2006 = vst [vmem:[%s4809_s14 + $0x8] sm:$0xff] %v1998_v20  ;;  %v1991_v43 = vmul.f32 %v1983_v21, %v4780_v3  ;;  %v1976_v56 = vmul.f32 2.0, %v1968_v36 }
 0x374   : > { %v1940_v34 = vadd.f32 2.0, %v1932_v31  ;;  %v1939_v30 = vadd.f32 2.0, %v1931_v12 }
 0x375   : > { %v1999_v53 = vadd.f32 %v3205_v41, %v1991_v43  ;;  %v1984_v7 = vsub.f32 1.0, %v1976_v56 }
 0x376   : > { %3199 = vrcp.f32 %v1940_v34 }
 0x377   : > { %2007 = vst [vmem:[%s4809_s14 + $0x10] sm:$0xff] %v1999_v53  ;;  %v1992_v18 = vmul.f32 %v1984_v7, %v4784_v37  ;;  %3201 = vrcp.f32 %v1939_v30 }
 0x379   : > { %v2000_v61 = vadd.f32 %v3206_v23, %v1992_v18 }
 0x37b   : > { %v3196_v5 = vpop.eup %3195  ;;  %2008 = vst [vmem:[%s4809_s14 + $0x18] sm:$0xff] %v2000_v61 }
 0x37c   : > { %v3198_v0 = vpop.eup %3197  ;;  %v1954_v39 = vmul.f32 %v3196_v5, %v1938_v44 }
 0x37d   : > { %v1953_v49 = vmul.f32 %v3198_v0, %v1937_v38 }
 0x37e   : > { %v1962_v3 = vsub.f32 2.0, %v1954_v39 }
 0x37f   : > { %v1961_v45 = vsub.f32 2.0, %v1953_v49 }
 0x380   : > { %v3200_v22 = vpop.eup %3199  ;;  %v1970_v25 = vmul.f32 %v3196_v5, %v1962_v3 }
 0x381   : > { %v3202_v13 = vpop.eup %3201  ;;  %v1969_v52 = vmul.f32 %v3198_v0, %v1961_v45  ;;  %v1956_v60 = vmul.f32 %v3200_v22, %v1940_v34 }
 0x382   : > { %v1978_v6 = vmul.f32 2.0, %v1970_v25  ;;  %v1955_v37 = vmul.f32 %v3202_v13, %v1939_v30 }
 0x383   : > { %v1977_v62 = vmul.f32 2.0, %v1969_v52  ;;  %v1964_v32 = vsub.f32 2.0, %v1956_v60 }
 0x384   : > { %v1986_v50 = vsub.f32 1.0, %v1978_v6  ;;  %v1963_v46 = vsub.f32 2.0, %v1955_v37 }
 0x385   : > { %v1985_v11 = vsub.f32 1.0, %v1977_v62  ;;  %v1972_v10 = vmul.f32 %v3200_v22, %v1964_v32 }
 0x386   : > { %v1994_v54 = vmul.f32 %v1986_v50, %v4789_v33  ;;  %v1971_v17 = vmul.f32 %v3202_v13, %v1963_v46 }
 0x387   : > { %v1993_v2 = vmul.f32 %v1985_v11, %v4792_v55  ;;  %v1980_v57 = vmul.f32 2.0, %v1972_v10 }
 0x388   : > { %v2002_v4 = vadd.f32 %v3207_v51, %v1994_v54  ;;  %v1979_v26 = vmul.f32 2.0, %v1971_v17 }
 0x389   : > { %v2001_v1 = vadd.f32 %v3208_v29, %v1993_v2  ;;  %v1988_v35 = vsub.f32 1.0, %v1980_v57 }
 0x38a   : > { %2010 = vst [vmem:[%s4809_s14 + $0x28] sm:$0xff] %v2002_v4  ;;  %v1987_v16 = vsub.f32 1.0, %v1979_v26 }
 0x38b   : > { %2009 = vst [vmem:[%s4809_s14 + $0x20] sm:$0xff] %v2001_v1  ;;  %v1996_v33 = vmul.f32 %v1988_v35, %v4797_v58 }
 0x38c   : > { %v1995_v55 = vmul.f32 %v1987_v16, %v4800_v27 }
 0x38d   : > { %v2004_v14 = vadd.f32 %v3209_v9, %v1996_v33 }
 0x38e   : > { %v2003_v24 = vadd.f32 %v3210_v59, %v1995_v55 }
 0x38f   : > { %2012 = vst [vmem:[%s4809_s14 + $0x38] sm:$0xff] %v2004_v14 }
 0x390   : > { %2011 = vst [vmem:[%s4809_s14 + $0x30] sm:$0xff] %v2003_v24 }
 0x391   : > { %3396 = shalt.err (!%p3393_p10)
}
 0x392   : > { %s3397_s30 = scalar_lea.hbm %s4838_s16, 1024  ;;  %s3401_s29 = scalar_lea.hbm %s5159_s13, 8192 }
 0x393   : > { %p3398_p9 = scmp.ne.s32.totalorder %s4838_s16, %s3397_s30  ;;  %p3402_p12 = scmp.lt.u32.totalorder %s4838_s16, %s5159_s13 }
 0x394   : > { %p3403_p4 = scmp.lt.u32.totalorder %s3401_s29, %s3397_s30  ;;  %p3405_p2 = scmp.lt.u32.totalorder %s3397_s30, %s4838_s16 }
 0x395   : > { %p3399_p11 = pnand %p3398_p9, %p3736_p3 }
 0x396   : > { %p3404_p8 = por %p3403_p4, %p3402_p12 }
 0x397   : > { %p3400_p1 = pneg %p3399_p11 }
 0x398   : > { %p3406_p6 = por %p3405_p2, %p3404_p8 }
 0x39a   : > { %p3407_p0 = pnand %p3406_p6, %p3400_p1 }
 0x39c   : > { %3410 = shalt.err (!%p3407_p0)
}
 0x39d   : > { %s3508_s5 = smov 128   ;;  %s3509_s15 = smov 8  }
 0x39e   : > { %3015 = dma.vmem_to_hbm [thread:$0]  (%p3736_p3), %s4832_s24, 1024, %s4838_s16, %s2014_s6, %s3508_s5, %s3508_s5, %s3509_s15  }
 0x39f PF: > { %s5160_s17 = sld [smem:[#allocation20_spill]]  ;;  %s5161_s11 = sld [smem:[#allocation22_spill]] }
 0x3a0   : > { %p3050_p5 = scmp.ge.s32.totalorder %s3497_s28, 2 }
 0x3a5   : > { %s2044_s12 = sand.u32 1, %s5160_s17   ;;  %p5162_p7 = scmp.ne.s32.totalorder %s5161_s11, 0 }
 0x3a6   : > { %s2045_s4 = scalar_lea.sflag [#allocation4], %s2044_s12 }
 0x3a7   : > { %p3038_p13 = pnand %p3050_p5, %p5162_p7 }
 0x3a9   : > { %3464 = dma.done.wait (!%p3038_p13), %s2045_s4, 1024  }
 0x3aa   : > { %3466 = vsyncadd (!%p3038_p13), %s2045_s4, 4294966272  ;;  %s27_s28 = sadd.s32 1, %s3497_s28   ;;  %s5163_s8 = sld [smem:[#allocation23_spill]] }
 0x3ab   : > { %p24_p10 = scmp.ge.s32.totalorder %s27_s28, 10   ;;  %s5164_s21 = smov %s3473_s22 }
 0x3ac   : > { %s5165_s22 = smov %s3477_s23  ;;  %s5166_s23 = smov %s3752_s19 }
 0x3ad   : > { %s5167_s24 = smov %s3489_s26  ;;  %s5168_s25 = smov %s3493_s27 }
 0x3ae   : > { %s5169_s26 = smov %s5172_s10  ;;  %26 = sbr.rel (!%p24_p10) target bundleno = 18 (0x12), region = 120 }
 0x3b0   : > { %s5170_s27 = smov %s5163_s8 }
 0x3b5   :  { %2050 = vsyncpa [#allocation3], 1 }
 0x3b6   :  { %2052 = vsyncpa [#allocation3 + $0x1], 1 }
 0x3b7   :  { %2053 = vsyncpa [#allocation6], 1 }
 0x3b8   :  { %2055 = vsyncpa [#allocation6 + $0x1], 1 }
 0x3b9   :  { %2056 = vsyncpa [#allocation9], 1 }
 0x3ba   :  { %2057 = vsyncpa [#allocation12], 1 }
 0x3bb   :  { %2058 = vsyncpa [#allocation4], 1 }
 0x3bc   :  { %2060 = vsyncpa [#allocation4 + $0x1], 1 }

</bundles_post_ra>
